<compile_context>
chip_gen: v6e
topology: v6e:2x2x1
jax: 0.10.0
libtpu: 0.0.40
codegen_flags: <defaults>
</compile_context>

<pallas_src>
import jax
import jax.numpy as jnp
from jax import lax
from jax.experimental import pallas as pl
from jax.experimental.pallas import tpu as pltpu

LANE = 128
MATMUL_DTYPE = jnp.bfloat16      # matmul operands; accumulation / bias / ReLU stay f32

_WEIGHT_KEYS = ("w1", "b1", "w2", "b2", "w3", "b3", "wf1", "bf1", "wf2", "bf2")


# ----------------------------------------------------------------------------
# Fused kernel: conv1 + ReLU + conv2 + ReLU + conv3 + ReLU + fc1 + ReLU + fc2
# ----------------------------------------------------------------------------
def _critic_fused_kernel(x_ref, w1_ref, b1_ref, w2_ref, b2_ref,
                         w3_ref, b3_ref, wf1_ref, bf1_ref,
                         wf2_ref, bf2_ref, o_ref):
    hb, wb, tn, _ = x_ref.shape          # (9, 9, TILE_N, 16*Cin), batch on sublanes
    oh1, ow1 = hb - 1, wb - 1            # conv1 output spatial (2x2/s1 on s2d input)
    assert oh1 == 8 and ow1 == 8, "kernel specialised to 36x36 inputs (8x8 conv1 map)"
    c1p = w1_ref.shape[-1]               # 128 (lane-padded channel width)
    cdt = w1_ref.dtype                   # matmul dtype (bf16 by default)

    xv = x_ref[...]                      # whole tile, loaded once

    # ---- conv1: 8x8/stride4 == 2x2/stride1 over space-to-depth(4) input.
    #      Offset slices are on non-minor axes only -> no relayout copies.
    m1 = oh1 * ow1 * tn
    acc1 = jnp.zeros((m1, c1p), jnp.float32)
    for a in range(2):
        for b in range(2):
            patch = xv[a:a + oh1, b:b + ow1]                 # (8, 8, tn, 16*Cin)
            patch = patch.reshape(m1, patch.shape[-1])        # rows = (p, q, img)
            acc1 = acc1 + jnp.dot(patch, w1_ref[a, b],
                                  preferred_element_type=jnp.float32)
    y1 = jnp.maximum(acc1 + b1_ref[...], 0.0).astype(cdt)     # single bias+ReLU pass
    y1 = y1.reshape(oh1, ow1, tn, c1p)

    # ---- conv2 (4x4/s2 -> 3x3): accumulate over the 16 kernel offsets with all
    #      9 output positions stacked into M = 9*tn.  The concat is along the
    #      sublane axis at tile-aligned (tn % 8 == 0) boundaries: no cross-lane
    #      relayout, and one bias+ReLU pass instead of 9.
    rows = [[y1[p, q] for q in range(ow1)] for p in range(oh1)]   # (tn, 128) tiles
    m2 = 9 * tn
    acc2 = jnp.zeros((m2, c1p), jnp.float32)
    for i in range(4):
        for j in range(4):
            chunk = jnp.concatenate(
                [rows[2 * r + i][2 * s + j] for r in range(3) for s in range(3)],
                axis=0)                                        # (9*tn, 128), rows (r, s, img)
            acc2 = acc2 + jnp.dot(chunk, w2_ref[4 * i + j],
                                  preferred_element_type=jnp.float32)
    y2 = jnp.maximum(acc2 + b2_ref[...], 0.0).astype(cdt)
    y2 = y2.reshape(9, tn, c1p)

    # ---- conv3 (3x3/s1 -> 1x1): full contraction over the 9 positions.
    acc3 = jnp.zeros((tn, c1p), jnp.float32)
    for k in range(9):
        acc3 = acc3 + jnp.dot(y2[k], w3_ref[k],
                              preferred_element_type=jnp.float32)
    y3 = jnp.maximum(acc3 + b3_ref[...], 0.0).astype(cdt)     # (tn, 128); cols 0..63 valid

    # ---- critic head: fc1 + ReLU + fc2 (everything stays in VMEM).
    h = jnp.dot(y3, wf1_ref[...], preferred_element_type=jnp.float32) + bf1_ref[...]
    h = jnp.maximum(h, 0.0).astype(cdt)                        # (tn, 512)
    v = jnp.dot(h, wf2_ref[...], preferred_element_type=jnp.float32) + bf2_ref[...]
    o_ref[...] = v.astype(o_ref.dtype)                         # (tn, 128); col 0 = value


# ----------------------------------------------------------------------------
# BlockSpec helpers
# ----------------------------------------------------------------------------
def _resident_pipeline_mode():
    # Weights/biases are grid-invariant: a single VMEM buffer suffices (default
    # double-buffering would just burn VMEM, which matters most on v7x).
    try:
        mode = pl.Buffered(1)
        pl.BlockSpec((8, LANE), lambda i: (0, 0), pipeline_mode=mode)   # probe
        return mode
    except Exception:                     # older JAX without pipeline_mode
        return None


_RESIDENT_MODE = _resident_pipeline_mode()


def _const_spec(shape):
    nd = len(shape)

    def index_map(i):
        return (0,) * nd

    if _RESIDENT_MODE is not None:
        return pl.BlockSpec(shape, index_map, pipeline_mode=_RESIDENT_MODE)
    return pl.BlockSpec(shape, index_map)


def _round_up(x, m):
    return ((x + m - 1) // m) * m


# ----------------------------------------------------------------------------
# Parameter construction + one-time rearrangement / padding for the kernel
# ----------------------------------------------------------------------------
def init_params(key, in_ch, conv_out_size):
    ks = jax.random.split(key, 5)

    def w(k, shape, scale=0.1):
        # TODO(synk): PyTorch uses orthogonal_(gain=1.0); a scaled normal is a
        # deterministic synthetic stand-in (same shapes, zero biases).
        return scale * jax.random.normal(k, shape, jnp.float32)

    return {
        "conv1_w": w(ks[0], (8, 8, in_ch, 32)),   # HWIO
        "conv1_b": jnp.zeros((32,), jnp.float32),
        "conv2_w": w(ks[1], (4, 4, 32, 64)),
        "conv2_b": jnp.zeros((64,), jnp.float32),
        "conv3_w": w(ks[2], (3, 3, 64, 64)),
        "conv3_b": jnp.zeros((64,), jnp.float32),
        "fc1_w": w(ks[3], (conv_out_size, 512)),
        "fc1_b": jnp.zeros((512,), jnp.float32),
        "fc2_w": w(ks[4], (512, 1)),
        "fc2_b": jnp.zeros((1,), jnp.float32),
    }


def _pad_axis(x, axis, target):
    pad = target - x.shape[axis]
    if pad <= 0:
        return x
    cfg = [(0, 0)] * x.ndim
    cfg[axis] = (0, pad)
    return jnp.pad(x, cfg)


def prepare_params(params, dtype=MATMUL_DTYPE):
    """One-time layout plumbing: s2d-rearranged conv1 weight, 128-lane padding,
    bf16 matmul operands (biases stay f32 for the f32 bias+ReLU epilogues)."""
    s1 = 4
    w1 = params["conv1_w"]                                    # (8, 8, Cin, 32) HWIO
    kh, kw, cin, c1 = w1.shape
    w1r = w1.reshape(kh // s1, s1, kw // s1, s1, cin, c1)     # (a, dh, b, dw, ci, co)
    w1r = w1r.transpose(0, 2, 1, 3, 4, 5)                     # (a, b, dh, dw, ci, co)
    w1r = w1r.reshape(kh // s1, kw // s1, s1 * s1 * cin, c1)  # rows = (dh, dw, ci)
    w1r = _pad_axis(w1r, 3, LANE)                             # (2, 2, 16*Cin, 128)

    w2r = _pad_axis(_pad_axis(params["conv2_w"], 2, LANE), 3, LANE)   # (4, 4, 128, 128)
    w2r = w2r.reshape(16, LANE, LANE)                         # row index = 4*i + j
    w3r = _pad_axis(_pad_axis(params["conv3_w"], 2, LANE), 3, LANE)   # (3, 3, 128, 128)
    w3r = w3r.reshape(9, LANE, LANE)                          # row index = 3*r + s

    wf1 = _pad_axis(params["fc1_w"], 0, LANE)                 # (128, 512)
    wf2 = _pad_axis(params["fc2_w"], 1, LANE)                 # (512, 128)

    def bias(b, width=None):
        b = b.reshape(1, -1)
        return (_pad_axis(b, 1, width) if width else b).astype(jnp.float32)

    return {
        "w1": w1r.astype(dtype), "b1": bias(params["conv1_b"], LANE),
        "w2": w2r.astype(dtype), "b2": bias(params["conv2_b"], LANE),
        "w3": w3r.astype(dtype), "b3": bias(params["conv3_b"], LANE),
        "wf1": wf1.astype(dtype), "bf1": bias(params["fc1_b"]),
        "wf2": wf2.astype(dtype), "bf2": bias(params["fc2_b"], LANE),
    }


# ----------------------------------------------------------------------------
# Forward pass (returns the scalar state value, shape (N, 1))
# ----------------------------------------------------------------------------
def critic_forward(kparams, state_nchw, *, tile_n=128):
    cdt = kparams["w1"].dtype
    n, cin, hgt, wid = state_nchw.shape
    s1 = 4
    assert hgt % s1 == 0 and wid % s1 == 0
    hb, wb = hgt // s1, wid // s1
    # TODO(synk): kernel is specialised to conv3 collapsing to 1x1 spatial
    # (36x36 -> 8x8 -> 3x3 -> 1x1); larger resolutions need an extra spatial
    # grid axis on top of the batch tiling.
    assert hb == 9 and wb == 9, "fused kernel expects 36x36 inputs"

    # NCHW -> space-to-depth(4) -> (hblk, wblk, batch, 16*Cin).  Pure
    # permutation (no duplication); batch sits on the sublane axis so every
    # conv offset slice inside the kernel is on non-minor axes.
    x = jnp.transpose(state_nchw, (0, 2, 3, 1))
    x = x.reshape(n, hb, s1, wb, s1, cin).transpose(0, 1, 3, 2, 4, 5)
    x = x.reshape(n, hb, wb, s1 * s1 * cin)
    x = jnp.transpose(x, (1, 2, 0, 3)).astype(cdt)            # (9, 9, N, 16*Cin)

    # Batch padding / tiling: M is always a multiple of 8.  TILE_N=128 keeps the
    # per-step VMEM footprint ~15 MiB, which also fits v7x's smaller VMEM.
    tile_n = min(tile_n, _round_up(n, 8))
    n_pad = _round_up(n, tile_n)
    if n_pad != n:
        x = jnp.pad(x, ((0, 0), (0, 0), (0, n_pad - n), (0, 0)))
    grid = (n_pad // tile_n,)

    x_spec = pl.BlockSpec((hb, wb, tile_n, x.shape[-1]), lambda i: (0, 0, i, 0))
    in_specs = [x_spec] + [_const_spec(kparams[k].shape) for k in _WEIGHT_KEYS]
    out_spec = pl.BlockSpec((tile_n, LANE), lambda i: (i, 0))

    flops = 2 * n_pad * (64 * (64 * cin) * 32 + 9 * 512 * 64 + 576 * 64
                         + 64 * 512 + 512)
    bytes_accessed = (x.size * x.dtype.itemsize + n_pad * LANE * 4
                      + sum(kparams[k].size * kparams[k].dtype.itemsize
                            for k in _WEIGHT_KEYS))
    vmem_limit = 32 * 1024 * 1024 if tile_n >= 64 else None

    out = pl.pallas_call(
        _critic_fused_kernel,
        grid=grid,
        in_specs=in_specs,
        out_specs=out_spec,
        out_shape=jax.ShapeDtypeStruct((n_pad, LANE), jnp.float32),
        compiler_params=pltpu.CompilerParams(
            dimension_semantics=("parallel",),
            vmem_limit_bytes=vmem_limit),
        cost_estimate=pl.CostEstimate(flops=flops, transcendentals=0,
                                      bytes_accessed=bytes_accessed),
    )(x, *(kparams[k] for k in _WEIGHT_KEYS))
    return out[:n, :1]                                        # (N, 1) critic value


# ----------------------------------------------------------------------------
# Pure-JAX reference for verification
# ----------------------------------------------------------------------------
def critic_forward_ref(params, state_nchw):
    dn = ("NHWC", "HWIO", "NHWC")
    x = jnp.transpose(state_nchw, (0, 2, 3, 1)).astype(jnp.float32)
    for wn, bn, s in (("conv1_w", "conv1_b", 4),
                      ("conv2_w", "conv2_b", 2),
                      ("conv3_w", "conv3_b", 1)):
        x = lax.conv_general_dilated(x, params[wn], (s, s), "VALID",
                                     dimension_numbers=dn) + params[bn]
        x = jnp.maximum(x, 0.0)
    x = jnp.transpose(x, (0, 3, 1, 2)).reshape(x.shape[0], -1)   # NCHW flatten
    h = jnp.maximum(x @ params["fc1_w"] + params["fc1_b"], 0.0)
    return h @ params["fc2_w"] + params["fc2_b"]


def _check(got, want, tag):
    err = float(jnp.max(jnp.abs(got - want)))
    tol = 5e-2 * (float(jnp.max(jnp.abs(want))) + 1.0)       # bf16 matmul operands
    assert err <= tol, f"{tag}: max abs err {err:.4f} > tol {tol:.4f}"


if __name__ == "__main__":
    root = jax.random.PRNGKey(0)
    kx1, kx2, kp = jax.random.split(root, 3)

    # Smallest input for which the 8/4 -> 4/2 -> 3/1 conv stack reaches 1x1:
    # 36x36 -> 8x8 -> 3x3 -> 1x1, so conv_out_size = 64.
    N, C, H, W = 2, 4, 36, 36
    h1 = (H - 8) // 4 + 1
    h2 = (h1 - 4) // 2 + 1
    h3 = (h2 - 3) // 1 + 1
    assert h3 == 1
    conv_out_size = 64 * h3 * h3

    params = init_params(kp, C, conv_out_size)
    kparams = prepare_params(params)          # one-time pad/rearrange/bf16 cast

    fwd = jax.jit(critic_forward, static_argnames=("tile_n",))

    state = jax.random.normal(kx1, (N, C, H, W), jnp.float32)
    value = jax.block_until_ready(fwd(kparams, state))
    assert value.shape == (N, 1)
    _check(value, critic_forward_ref(params, state), "batch=2")

    # Second run: batch not a multiple of the tile -> padded, 2-step "parallel" grid.
    N2 = 11
    state2 = jax.random.normal(kx2, (N2, C, H, W), jnp.float32)
    value2 = jax.block_until_ready(fwd(kparams, state2, tile_n=8))
    assert value2.shape == (N2, 1)
    _check(value2, critic_forward_ref(params, state2), "batch=11")

    print("KERNEL_OK")
</pallas_src>

<mosaic_0001>
module attributes {stable_mosaic.version = 11 : i64} {
  func.func @_critic_fused_kernel(%arg0: i32, %arg1: memref<9x9x8x64xbf16, #tpu.memory_space<vmem>>, %arg2: memref<2x2x64x128xbf16, #tpu.memory_space<vmem>>, %arg3: memref<1x128xf32, #tpu.memory_space<vmem>>, %arg4: memref<16x128x128xbf16, #tpu.memory_space<vmem>>, %arg5: memref<1x128xf32, #tpu.memory_space<vmem>>, %arg6: memref<9x128x128xbf16, #tpu.memory_space<vmem>>, %arg7: memref<1x128xf32, #tpu.memory_space<vmem>>, %arg8: memref<128x512xbf16, #tpu.memory_space<vmem>>, %arg9: memref<1x512xf32, #tpu.memory_space<vmem>>, %arg10: memref<512x128xbf16, #tpu.memory_space<vmem>>, %arg11: memref<1x128xf32, #tpu.memory_space<vmem>>, %arg12: memref<8x128xf32, #tpu.memory_space<vmem>>) attributes {dimension_semantics = [#tpu.dimension_semantics<parallel>], iteration_bounds = array<i64: 1>, scalar_prefetch = 0 : i64, scratch_operands = 0 : i64, tpu.core_type = #tpu.core_type<tc>, window_params = [{transform_indices = @transform_0, window_bounds = array<i64: 9, 9, 8, 64>}, {pipeline_mode = #tpu.pipeline_mode<synchronous>, transform_indices = @transform_1, window_bounds = array<i64: 2, 2, 64, 128>}, {pipeline_mode = #tpu.pipeline_mode<synchronous>, transform_indices = @transform_2, window_bounds = array<i64: 1, 128>}, {pipeline_mode = #tpu.pipeline_mode<synchronous>, transform_indices = @transform_3, window_bounds = array<i64: 16, 128, 128>}, {pipeline_mode = #tpu.pipeline_mode<synchronous>, transform_indices = @transform_4, window_bounds = array<i64: 1, 128>}, {pipeline_mode = #tpu.pipeline_mode<synchronous>, transform_indices = @transform_5, window_bounds = array<i64: 9, 128, 128>}, {pipeline_mode = #tpu.pipeline_mode<synchronous>, transform_indices = @transform_6, window_bounds = array<i64: 1, 128>}, {pipeline_mode = #tpu.pipeline_mode<synchronous>, transform_indices = @transform_7, window_bounds = array<i64: 128, 512>}, {pipeline_mode = #tpu.pipeline_mode<synchronous>, transform_indices = @transform_8, window_bounds = array<i64: 1, 512>}, {pipeline_mode = #tpu.pipeline_mode<synchronous>, transform_indices = @transform_9, window_bounds = array<i64: 512, 128>}, {pipeline_mode = #tpu.pipeline_mode<synchronous>, transform_indices = @transform_10, window_bounds = array<i64: 1, 128>}, {transform_indices = @transform_11, window_bounds = array<i64: 8, 128>}]} {
    %c0 = arith.constant 0 : index
    %c0_0 = arith.constant 0 : index
    %c0_1 = arith.constant 0 : index
    %c0_2 = arith.constant 0 : index
    %0 = vector.load %arg1[%c0, %c0_0, %c0_1, %c0_2] : memref<9x9x8x64xbf16, #tpu.memory_space<vmem>>, vector<9x9x8x64xbf16>
    %cst = arith.constant 0.000000e+00 : f32
    %1 = vector.broadcast %cst : f32 to vector<512x128xf32>
    %2 = vector.extract_strided_slice %0 {offsets = [0, 0, 0, 0], sizes = [8, 8, 8, 64], strides = [1, 1, 1, 1]} : vector<9x9x8x64xbf16> to vector<8x8x8x64xbf16>
    %3 = vector.shape_cast %2 : vector<8x8x8x64xbf16> to vector<512x64xbf16>
    %c0_3 = arith.constant 0 : index
    %c0_4 = arith.constant 0 : index
    %c0_5 = arith.constant 0 : index
    %c0_6 = arith.constant 0 : index
    %4 = vector.load %arg2[%c0_3, %c0_4, %c0_5, %c0_6] : memref<2x2x64x128xbf16, #tpu.memory_space<vmem>>, vector<1x1x64x128xbf16>
    %5 = vector.shape_cast %4 : vector<1x1x64x128xbf16> to vector<64x128xbf16>
    %cst_7 = arith.constant dense<0.000000e+00> : vector<512x128xf32>
    %6 = tpu.matmul %3, %5, %cst_7 {dimension_numbers = #tpu.dot_dimension_numbers<[1], [0], [0], [1], [0, 0, 1, 1], [], []>} : vector<512x64xbf16>, vector<64x128xbf16>, vector<512x128xf32> -> vector<512x128xf32>
    %7 = arith.addf %1, %6 : vector<512x128xf32>
    %8 = vector.extract_strided_slice %0 {offsets = [0, 1, 0, 0], sizes = [8, 8, 8, 64], strides = [1, 1, 1, 1]} : vector<9x9x8x64xbf16> to vector<8x8x8x64xbf16>
    %9 = vector.shape_cast %8 : vector<8x8x8x64xbf16> to vector<512x64xbf16>
    %c0_8 = arith.constant 0 : index
    %c1 = arith.constant 1 : index
    %c0_9 = arith.constant 0 : index
    %c0_10 = arith.constant 0 : index
    %10 = vector.load %arg2[%c0_8, %c1, %c0_9, %c0_10] : memref<2x2x64x128xbf16, #tpu.memory_space<vmem>>, vector<1x1x64x128xbf16>
    %11 = vector.shape_cast %10 : vector<1x1x64x128xbf16> to vector<64x128xbf16>
    %cst_11 = arith.constant dense<0.000000e+00> : vector<512x128xf32>
    %12 = tpu.matmul %9, %11, %cst_11 {dimension_numbers = #tpu.dot_dimension_numbers<[1], [0], [0], [1], [0, 0, 1, 1], [], []>} : vector<512x64xbf16>, vector<64x128xbf16>, vector<512x128xf32> -> vector<512x128xf32>
    %13 = arith.addf %7, %12 : vector<512x128xf32>
    %14 = vector.extract_strided_slice %0 {offsets = [1, 0, 0, 0], sizes = [8, 8, 8, 64], strides = [1, 1, 1, 1]} : vector<9x9x8x64xbf16> to vector<8x8x8x64xbf16>
    %15 = vector.shape_cast %14 : vector<8x8x8x64xbf16> to vector<512x64xbf16>
    %c1_12 = arith.constant 1 : index
    %c0_13 = arith.constant 0 : index
    %c0_14 = arith.constant 0 : index
    %c0_15 = arith.constant 0 : index
    %16 = vector.load %arg2[%c1_12, %c0_13, %c0_14, %c0_15] : memref<2x2x64x128xbf16, #tpu.memory_space<vmem>>, vector<1x1x64x128xbf16>
    %17 = vector.shape_cast %16 : vector<1x1x64x128xbf16> to vector<64x128xbf16>
    %cst_16 = arith.constant dense<0.000000e+00> : vector<512x128xf32>
    %18 = tpu.matmul %15, %17, %cst_16 {dimension_numbers = #tpu.dot_dimension_numbers<[1], [0], [0], [1], [0, 0, 1, 1], [], []>} : vector<512x64xbf16>, vector<64x128xbf16>, vector<512x128xf32> -> vector<512x128xf32>
    %19 = arith.addf %13, %18 : vector<512x128xf32>
    %20 = vector.extract_strided_slice %0 {offsets = [1, 1, 0, 0], sizes = [8, 8, 8, 64], strides = [1, 1, 1, 1]} : vector<9x9x8x64xbf16> to vector<8x8x8x64xbf16>
    %21 = vector.shape_cast %20 : vector<8x8x8x64xbf16> to vector<512x64xbf16>
    %c1_17 = arith.constant 1 : index
    %c1_18 = arith.constant 1 : index
    %c0_19 = arith.constant 0 : index
    %c0_20 = arith.constant 0 : index
    %22 = vector.load %arg2[%c1_17, %c1_18, %c0_19, %c0_20] : memref<2x2x64x128xbf16, #tpu.memory_space<vmem>>, vector<1x1x64x128xbf16>
    %23 = vector.shape_cast %22 : vector<1x1x64x128xbf16> to vector<64x128xbf16>
    %cst_21 = arith.constant dense<0.000000e+00> : vector<512x128xf32>
    %24 = tpu.matmul %21, %23, %cst_21 {dimension_numbers = #tpu.dot_dimension_numbers<[1], [0], [0], [1], [0, 0, 1, 1], [], []>} : vector<512x64xbf16>, vector<64x128xbf16>, vector<512x128xf32> -> vector<512x128xf32>
    %25 = arith.addf %19, %24 : vector<512x128xf32>
    %c0_22 = arith.constant 0 : index
    %c0_23 = arith.constant 0 : index
    %26 = vector.load %arg3[%c0_22, %c0_23] : memref<1x128xf32, #tpu.memory_space<vmem>>, vector<1x128xf32>
    %27 = vector.broadcast %26 : vector<1x128xf32> to vector<512x128xf32>
    %28 = arith.addf %25, %27 : vector<512x128xf32>
    %cst_24 = arith.constant 0.000000e+00 : f32
    %29 = vector.broadcast %cst_24 : f32 to vector<512x128xf32>
    %30 = arith.maximumf %28, %29 : vector<512x128xf32>
    %31 = arith.truncf %30 : vector<512x128xf32> to vector<512x128xbf16>
    %32 = vector.shape_cast %31 : vector<512x128xbf16> to vector<8x8x8x128xbf16>
    %33 = vector.extract_strided_slice %32 {offsets = [0, 0, 0, 0], sizes = [1, 1, 8, 128], strides = [1, 1, 1, 1]} : vector<8x8x8x128xbf16> to vector<1x1x8x128xbf16>
    %34 = vector.shape_cast %33 : vector<1x1x8x128xbf16> to vector<8x128xbf16>
    %35 = vector.extract_strided_slice %32 {offsets = [0, 1, 0, 0], sizes = [1, 1, 8, 128], strides = [1, 1, 1, 1]} : vector<8x8x8x128xbf16> to vector<1x1x8x128xbf16>
    %36 = vector.shape_cast %35 : vector<1x1x8x128xbf16> to vector<8x128xbf16>
    %37 = vector.extract_strided_slice %32 {offsets = [0, 2, 0, 0], sizes = [1, 1, 8, 128], strides = [1, 1, 1, 1]} : vector<8x8x8x128xbf16> to vector<1x1x8x128xbf16>
    %38 = vector.shape_cast %37 : vector<1x1x8x128xbf16> to vector<8x128xbf16>
    %39 = vector.extract_strided_slice %32 {offsets = [0, 3, 0, 0], sizes = [1, 1, 8, 128], strides = [1, 1, 1, 1]} : vector<8x8x8x128xbf16> to vector<1x1x8x128xbf16>
    %40 = vector.shape_cast %39 : vector<1x1x8x128xbf16> to vector<8x128xbf16>
    %41 = vector.extract_strided_slice %32 {offsets = [0, 4, 0, 0], sizes = [1, 1, 8, 128], strides = [1, 1, 1, 1]} : vector<8x8x8x128xbf16> to vector<1x1x8x128xbf16>
    %42 = vector.shape_cast %41 : vector<1x1x8x128xbf16> to vector<8x128xbf16>
    %43 = vector.extract_strided_slice %32 {offsets = [0, 5, 0, 0], sizes = [1, 1, 8, 128], strides = [1, 1, 1, 1]} : vector<8x8x8x128xbf16> to vector<1x1x8x128xbf16>
    %44 = vector.shape_cast %43 : vector<1x1x8x128xbf16> to vector<8x128xbf16>
    %45 = vector.extract_strided_slice %32 {offsets = [0, 6, 0, 0], sizes = [1, 1, 8, 128], strides = [1, 1, 1, 1]} : vector<8x8x8x128xbf16> to vector<1x1x8x128xbf16>
    %46 = vector.shape_cast %45 : vector<1x1x8x128xbf16> to vector<8x128xbf16>
    %47 = vector.extract_strided_slice %32 {offsets = [0, 7, 0, 0], sizes = [1, 1, 8, 128], strides = [1, 1, 1, 1]} : vector<8x8x8x128xbf16> to vector<1x1x8x128xbf16>
    %48 = vector.shape_cast %47 : vector<1x1x8x128xbf16> to vector<8x128xbf16>
    %49 = vector.extract_strided_slice %32 {offsets = [1, 0, 0, 0], sizes = [1, 1, 8, 128], strides = [1, 1, 1, 1]} : vector<8x8x8x128xbf16> to vector<1x1x8x128xbf16>
    %50 = vector.shape_cast %49 : vector<1x1x8x128xbf16> to vector<8x128xbf16>
    %51 = vector.extract_strided_slice %32 {offsets = [1, 1, 0, 0], sizes = [1, 1, 8, 128], strides = [1, 1, 1, 1]} : vector<8x8x8x128xbf16> to vector<1x1x8x128xbf16>
    %52 = vector.shape_cast %51 : vector<1x1x8x128xbf16> to vector<8x128xbf16>
    %53 = vector.extract_strided_slice %32 {offsets = [1, 2, 0, 0], sizes = [1, 1, 8, 128], strides = [1, 1, 1, 1]} : vector<8x8x8x128xbf16> to vector<1x1x8x128xbf16>
    %54 = vector.shape_cast %53 : vector<1x1x8x128xbf16> to vector<8x128xbf16>
    %55 = vector.extract_strided_slice %32 {offsets = [1, 3, 0, 0], sizes = [1, 1, 8, 128], strides = [1, 1, 1, 1]} : vector<8x8x8x128xbf16> to vector<1x1x8x128xbf16>
    %56 = vector.shape_cast %55 : vector<1x1x8x128xbf16> to vector<8x128xbf16>
    %57 = vector.extract_strided_slice %32 {offsets = [1, 4, 0, 0], sizes = [1, 1, 8, 128], strides = [1, 1, 1, 1]} : vector<8x8x8x128xbf16> to vector<1x1x8x128xbf16>
    %58 = vector.shape_cast %57 : vector<1x1x8x128xbf16> to vector<8x128xbf16>
    %59 = vector.extract_strided_slice %32 {offsets = [1, 5, 0, 0], sizes = [1, 1, 8, 128], strides = [1, 1, 1, 1]} : vector<8x8x8x128xbf16> to vector<1x1x8x128xbf16>
    %60 = vector.shape_cast %59 : vector<1x1x8x128xbf16> to vector<8x128xbf16>
    %61 = vector.extract_strided_slice %32 {offsets = [1, 6, 0, 0], sizes = [1, 1, 8, 128], strides = [1, 1, 1, 1]} : vector<8x8x8x128xbf16> to vector<1x1x8x128xbf16>
    %62 = vector.shape_cast %61 : vector<1x1x8x128xbf16> to vector<8x128xbf16>
    %63 = vector.extract_strided_slice %32 {offsets = [1, 7, 0, 0], sizes = [1, 1, 8, 128], strides = [1, 1, 1, 1]} : vector<8x8x8x128xbf16> to vector<1x1x8x128xbf16>
    %64 = vector.shape_cast %63 : vector<1x1x8x128xbf16> to vector<8x128xbf16>
    %65 = vector.extract_strided_slice %32 {offsets = [2, 0, 0, 0], sizes = [1, 1, 8, 128], strides = [1, 1, 1, 1]} : vector<8x8x8x128xbf16> to vector<1x1x8x128xbf16>
    %66 = vector.shape_cast %65 : vector<1x1x8x128xbf16> to vector<8x128xbf16>
    %67 = vector.extract_strided_slice %32 {offsets = [2, 1, 0, 0], sizes = [1, 1, 8, 128], strides = [1, 1, 1, 1]} : vector<8x8x8x128xbf16> to vector<1x1x8x128xbf16>
    %68 = vector.shape_cast %67 : vector<1x1x8x128xbf16> to vector<8x128xbf16>
    %69 = vector.extract_strided_slice %32 {offsets = [2, 2, 0, 0], sizes = [1, 1, 8, 128], strides = [1, 1, 1, 1]} : vector<8x8x8x128xbf16> to vector<1x1x8x128xbf16>
    %70 = vector.shape_cast %69 : vector<1x1x8x128xbf16> to vector<8x128xbf16>
    %71 = vector.extract_strided_slice %32 {offsets = [2, 3, 0, 0], sizes = [1, 1, 8, 128], strides = [1, 1, 1, 1]} : vector<8x8x8x128xbf16> to vector<1x1x8x128xbf16>
    %72 = vector.shape_cast %71 : vector<1x1x8x128xbf16> to vector<8x128xbf16>
    %73 = vector.extract_strided_slice %32 {offsets = [2, 4, 0, 0], sizes = [1, 1, 8, 128], strides = [1, 1, 1, 1]} : vector<8x8x8x128xbf16> to vector<1x1x8x128xbf16>
    %74 = vector.shape_cast %73 : vector<1x1x8x128xbf16> to vector<8x128xbf16>
    %75 = vector.extract_strided_slice %32 {offsets = [2, 5, 0, 0], sizes = [1, 1, 8, 128], strides = [1, 1, 1, 1]} : vector<8x8x8x128xbf16> to vector<1x1x8x128xbf16>
    %76 = vector.shape_cast %75 : vector<1x1x8x128xbf16> to vector<8x128xbf16>
    %77 = vector.extract_strided_slice %32 {offsets = [2, 6, 0, 0], sizes = [1, 1, 8, 128], strides = [1, 1, 1, 1]} : vector<8x8x8x128xbf16> to vector<1x1x8x128xbf16>
    %78 = vector.shape_cast %77 : vector<1x1x8x128xbf16> to vector<8x128xbf16>
    %79 = vector.extract_strided_slice %32 {offsets = [2, 7, 0, 0], sizes = [1, 1, 8, 128], strides = [1, 1, 1, 1]} : vector<8x8x8x128xbf16> to vector<1x1x8x128xbf16>
    %80 = vector.shape_cast %79 : vector<1x1x8x128xbf16> to vector<8x128xbf16>
    %81 = vector.extract_strided_slice %32 {offsets = [3, 0, 0, 0], sizes = [1, 1, 8, 128], strides = [1, 1, 1, 1]} : vector<8x8x8x128xbf16> to vector<1x1x8x128xbf16>
    %82 = vector.shape_cast %81 : vector<1x1x8x128xbf16> to vector<8x128xbf16>
    %83 = vector.extract_strided_slice %32 {offsets = [3, 1, 0, 0], sizes = [1, 1, 8, 128], strides = [1, 1, 1, 1]} : vector<8x8x8x128xbf16> to vector<1x1x8x128xbf16>
    %84 = vector.shape_cast %83 : vector<1x1x8x128xbf16> to vector<8x128xbf16>
    %85 = vector.extract_strided_slice %32 {offsets = [3, 2, 0, 0], sizes = [1, 1, 8, 128], strides = [1, 1, 1, 1]} : vector<8x8x8x128xbf16> to vector<1x1x8x128xbf16>
    %86 = vector.shape_cast %85 : vector<1x1x8x128xbf16> to vector<8x128xbf16>
    %87 = vector.extract_strided_slice %32 {offsets = [3, 3, 0, 0], sizes = [1, 1, 8, 128], strides = [1, 1, 1, 1]} : vector<8x8x8x128xbf16> to vector<1x1x8x128xbf16>
    %88 = vector.shape_cast %87 : vector<1x1x8x128xbf16> to vector<8x128xbf16>
    %89 = vector.extract_strided_slice %32 {offsets = [3, 4, 0, 0], sizes = [1, 1, 8, 128], strides = [1, 1, 1, 1]} : vector<8x8x8x128xbf16> to vector<1x1x8x128xbf16>
    %90 = vector.shape_cast %89 : vector<1x1x8x128xbf16> to vector<8x128xbf16>
    %91 = vector.extract_strided_slice %32 {offsets = [3, 5, 0, 0], sizes = [1, 1, 8, 128], strides = [1, 1, 1, 1]} : vector<8x8x8x128xbf16> to vector<1x1x8x128xbf16>
    %92 = vector.shape_cast %91 : vector<1x1x8x128xbf16> to vector<8x128xbf16>
    %93 = vector.extract_strided_slice %32 {offsets = [3, 6, 0, 0], sizes = [1, 1, 8, 128], strides = [1, 1, 1, 1]} : vector<8x8x8x128xbf16> to vector<1x1x8x128xbf16>
    %94 = vector.shape_cast %93 : vector<1x1x8x128xbf16> to vector<8x128xbf16>
    %95 = vector.extract_strided_slice %32 {offsets = [3, 7, 0, 0], sizes = [1, 1, 8, 128], strides = [1, 1, 1, 1]} : vector<8x8x8x128xbf16> to vector<1x1x8x128xbf16>
    %96 = vector.shape_cast %95 : vector<1x1x8x128xbf16> to vector<8x128xbf16>
    %97 = vector.extract_strided_slice %32 {offsets = [4, 0, 0, 0], sizes = [1, 1, 8, 128], strides = [1, 1, 1, 1]} : vector<8x8x8x128xbf16> to vector<1x1x8x128xbf16>
    %98 = vector.shape_cast %97 : vector<1x1x8x128xbf16> to vector<8x128xbf16>
    %99 = vector.extract_strided_slice %32 {offsets = [4, 1, 0, 0], sizes = [1, 1, 8, 128], strides = [1, 1, 1, 1]} : vector<8x8x8x128xbf16> to vector<1x1x8x128xbf16>
    %100 = vector.shape_cast %99 : vector<1x1x8x128xbf16> to vector<8x128xbf16>
    %101 = vector.extract_strided_slice %32 {offsets = [4, 2, 0, 0], sizes = [1, 1, 8, 128], strides = [1, 1, 1, 1]} : vector<8x8x8x128xbf16> to vector<1x1x8x128xbf16>
    %102 = vector.shape_cast %101 : vector<1x1x8x128xbf16> to vector<8x128xbf16>
    %103 = vector.extract_strided_slice %32 {offsets = [4, 3, 0, 0], sizes = [1, 1, 8, 128], strides = [1, 1, 1, 1]} : vector<8x8x8x128xbf16> to vector<1x1x8x128xbf16>
    %104 = vector.shape_cast %103 : vector<1x1x8x128xbf16> to vector<8x128xbf16>
    %105 = vector.extract_strided_slice %32 {offsets = [4, 4, 0, 0], sizes = [1, 1, 8, 128], strides = [1, 1, 1, 1]} : vector<8x8x8x128xbf16> to vector<1x1x8x128xbf16>
    %106 = vector.shape_cast %105 : vector<1x1x8x128xbf16> to vector<8x128xbf16>
    %107 = vector.extract_strided_slice %32 {offsets = [4, 5, 0, 0], sizes = [1, 1, 8, 128], strides = [1, 1, 1, 1]} : vector<8x8x8x128xbf16> to vector<1x1x8x128xbf16>
    %108 = vector.shape_cast %107 : vector<1x1x8x128xbf16> to vector<8x128xbf16>
    %109 = vector.extract_strided_slice %32 {offsets = [4, 6, 0, 0], sizes = [1, 1, 8, 128], strides = [1, 1, 1, 1]} : vector<8x8x8x128xbf16> to vector<1x1x8x128xbf16>
    %110 = vector.shape_cast %109 : vector<1x1x8x128xbf16> to vector<8x128xbf16>
    %111 = vector.extract_strided_slice %32 {offsets = [4, 7, 0, 0], sizes = [1, 1, 8, 128], strides = [1, 1, 1, 1]} : vector<8x8x8x128xbf16> to vector<1x1x8x128xbf16>
    %112 = vector.shape_cast %111 : vector<1x1x8x128xbf16> to vector<8x128xbf16>
    %113 = vector.extract_strided_slice %32 {offsets = [5, 0, 0, 0], sizes = [1, 1, 8, 128], strides = [1, 1, 1, 1]} : vector<8x8x8x128xbf16> to vector<1x1x8x128xbf16>
    %114 = vector.shape_cast %113 : vector<1x1x8x128xbf16> to vector<8x128xbf16>
    %115 = vector.extract_strided_slice %32 {offsets = [5, 1, 0, 0], sizes = [1, 1, 8, 128], strides = [1, 1, 1, 1]} : vector<8x8x8x128xbf16> to vector<1x1x8x128xbf16>
    %116 = vector.shape_cast %115 : vector<1x1x8x128xbf16> to vector<8x128xbf16>
    %117 = vector.extract_strided_slice %32 {offsets = [5, 2, 0, 0], sizes = [1, 1, 8, 128], strides = [1, 1, 1, 1]} : vector<8x8x8x128xbf16> to vector<1x1x8x128xbf16>
    %118 = vector.shape_cast %117 : vector<1x1x8x128xbf16> to vector<8x128xbf16>
    %119 = vector.extract_strided_slice %32 {offsets = [5, 3, 0, 0], sizes = [1, 1, 8, 128], strides = [1, 1, 1, 1]} : vector<8x8x8x128xbf16> to vector<1x1x8x128xbf16>
    %120 = vector.shape_cast %119 : vector<1x1x8x128xbf16> to vector<8x128xbf16>
    %121 = vector.extract_strided_slice %32 {offsets = [5, 4, 0, 0], sizes = [1, 1, 8, 128], strides = [1, 1, 1, 1]} : vector<8x8x8x128xbf16> to vector<1x1x8x128xbf16>
    %122 = vector.shape_cast %121 : vector<1x1x8x128xbf16> to vector<8x128xbf16>
    %123 = vector.extract_strided_slice %32 {offsets = [5, 5, 0, 0], sizes = [1, 1, 8, 128], strides = [1, 1, 1, 1]} : vector<8x8x8x128xbf16> to vector<1x1x8x128xbf16>
    %124 = vector.shape_cast %123 : vector<1x1x8x128xbf16> to vector<8x128xbf16>
    %125 = vector.extract_strided_slice %32 {offsets = [5, 6, 0, 0], sizes = [1, 1, 8, 128], strides = [1, 1, 1, 1]} : vector<8x8x8x128xbf16> to vector<1x1x8x128xbf16>
    %126 = vector.shape_cast %125 : vector<1x1x8x128xbf16> to vector<8x128xbf16>
    %127 = vector.extract_strided_slice %32 {offsets = [5, 7, 0, 0], sizes = [1, 1, 8, 128], strides = [1, 1, 1, 1]} : vector<8x8x8x128xbf16> to vector<1x1x8x128xbf16>
    %128 = vector.shape_cast %127 : vector<1x1x8x128xbf16> to vector<8x128xbf16>
    %129 = vector.extract_strided_slice %32 {offsets = [6, 0, 0, 0], sizes = [1, 1, 8, 128], strides = [1, 1, 1, 1]} : vector<8x8x8x128xbf16> to vector<1x1x8x128xbf16>
    %130 = vector.shape_cast %129 : vector<1x1x8x128xbf16> to vector<8x128xbf16>
    %131 = vector.extract_strided_slice %32 {offsets = [6, 1, 0, 0], sizes = [1, 1, 8, 128], strides = [1, 1, 1, 1]} : vector<8x8x8x128xbf16> to vector<1x1x8x128xbf16>
    %132 = vector.shape_cast %131 : vector<1x1x8x128xbf16> to vector<8x128xbf16>
    %133 = vector.extract_strided_slice %32 {offsets = [6, 2, 0, 0], sizes = [1, 1, 8, 128], strides = [1, 1, 1, 1]} : vector<8x8x8x128xbf16> to vector<1x1x8x128xbf16>
    %134 = vector.shape_cast %133 : vector<1x1x8x128xbf16> to vector<8x128xbf16>
    %135 = vector.extract_strided_slice %32 {offsets = [6, 3, 0, 0], sizes = [1, 1, 8, 128], strides = [1, 1, 1, 1]} : vector<8x8x8x128xbf16> to vector<1x1x8x128xbf16>
    %136 = vector.shape_cast %135 : vector<1x1x8x128xbf16> to vector<8x128xbf16>
    %137 = vector.extract_strided_slice %32 {offsets = [6, 4, 0, 0], sizes = [1, 1, 8, 128], strides = [1, 1, 1, 1]} : vector<8x8x8x128xbf16> to vector<1x1x8x128xbf16>
    %138 = vector.shape_cast %137 : vector<1x1x8x128xbf16> to vector<8x128xbf16>
    %139 = vector.extract_strided_slice %32 {offsets = [6, 5, 0, 0], sizes = [1, 1, 8, 128], strides = [1, 1, 1, 1]} : vector<8x8x8x128xbf16> to vector<1x1x8x128xbf16>
    %140 = vector.shape_cast %139 : vector<1x1x8x128xbf16> to vector<8x128xbf16>
    %141 = vector.extract_strided_slice %32 {offsets = [6, 6, 0, 0], sizes = [1, 1, 8, 128], strides = [1, 1, 1, 1]} : vector<8x8x8x128xbf16> to vector<1x1x8x128xbf16>
    %142 = vector.shape_cast %141 : vector<1x1x8x128xbf16> to vector<8x128xbf16>
    %143 = vector.extract_strided_slice %32 {offsets = [6, 7, 0, 0], sizes = [1, 1, 8, 128], strides = [1, 1, 1, 1]} : vector<8x8x8x128xbf16> to vector<1x1x8x128xbf16>
    %144 = vector.shape_cast %143 : vector<1x1x8x128xbf16> to vector<8x128xbf16>
    %145 = vector.extract_strided_slice %32 {offsets = [7, 0, 0, 0], sizes = [1, 1, 8, 128], strides = [1, 1, 1, 1]} : vector<8x8x8x128xbf16> to vector<1x1x8x128xbf16>
    %146 = vector.shape_cast %145 : vector<1x1x8x128xbf16> to vector<8x128xbf16>
    %147 = vector.extract_strided_slice %32 {offsets = [7, 1, 0, 0], sizes = [1, 1, 8, 128], strides = [1, 1, 1, 1]} : vector<8x8x8x128xbf16> to vector<1x1x8x128xbf16>
    %148 = vector.shape_cast %147 : vector<1x1x8x128xbf16> to vector<8x128xbf16>
    %149 = vector.extract_strided_slice %32 {offsets = [7, 2, 0, 0], sizes = [1, 1, 8, 128], strides = [1, 1, 1, 1]} : vector<8x8x8x128xbf16> to vector<1x1x8x128xbf16>
    %150 = vector.shape_cast %149 : vector<1x1x8x128xbf16> to vector<8x128xbf16>
    %151 = vector.extract_strided_slice %32 {offsets = [7, 3, 0, 0], sizes = [1, 1, 8, 128], strides = [1, 1, 1, 1]} : vector<8x8x8x128xbf16> to vector<1x1x8x128xbf16>
    %152 = vector.shape_cast %151 : vector<1x1x8x128xbf16> to vector<8x128xbf16>
    %153 = vector.extract_strided_slice %32 {offsets = [7, 4, 0, 0], sizes = [1, 1, 8, 128], strides = [1, 1, 1, 1]} : vector<8x8x8x128xbf16> to vector<1x1x8x128xbf16>
    %154 = vector.shape_cast %153 : vector<1x1x8x128xbf16> to vector<8x128xbf16>
    %155 = vector.extract_strided_slice %32 {offsets = [7, 5, 0, 0], sizes = [1, 1, 8, 128], strides = [1, 1, 1, 1]} : vector<8x8x8x128xbf16> to vector<1x1x8x128xbf16>
    %156 = vector.shape_cast %155 : vector<1x1x8x128xbf16> to vector<8x128xbf16>
    %157 = vector.extract_strided_slice %32 {offsets = [7, 6, 0, 0], sizes = [1, 1, 8, 128], strides = [1, 1, 1, 1]} : vector<8x8x8x128xbf16> to vector<1x1x8x128xbf16>
    %158 = vector.shape_cast %157 : vector<1x1x8x128xbf16> to vector<8x128xbf16>
    %159 = vector.extract_strided_slice %32 {offsets = [7, 7, 0, 0], sizes = [1, 1, 8, 128], strides = [1, 1, 1, 1]} : vector<8x8x8x128xbf16> to vector<1x1x8x128xbf16>
    %160 = vector.shape_cast %159 : vector<1x1x8x128xbf16> to vector<8x128xbf16>
    %cst_25 = arith.constant 0.000000e+00 : f32
    %161 = vector.broadcast %cst_25 : f32 to vector<72x128xf32>
    %162 = tpu.concatenate %34, %38, %42, %66, %70, %74, %98, %102, %106 in 0 : vector<8x128xbf16>, vector<8x128xbf16>, vector<8x128xbf16>, vector<8x128xbf16>, vector<8x128xbf16>, vector<8x128xbf16>, vector<8x128xbf16>, vector<8x128xbf16>, vector<8x128xbf16> -> vector<72x128xbf16>
    %c0_26 = arith.constant 0 : index
    %c0_27 = arith.constant 0 : index
    %c0_28 = arith.constant 0 : index
    %163 = vector.load %arg4[%c0_26, %c0_27, %c0_28] : memref<16x128x128xbf16, #tpu.memory_space<vmem>>, vector<1x128x128xbf16>
    %164 = vector.shape_cast %163 : vector<1x128x128xbf16> to vector<128x128xbf16>
    %cst_29 = arith.constant dense<0.000000e+00> : vector<72x128xf32>
    %165 = tpu.matmul %162, %164, %cst_29 {dimension_numbers = #tpu.dot_dimension_numbers<[1], [0], [0], [1], [0, 0, 1, 1], [], []>} : vector<72x128xbf16>, vector<128x128xbf16>, vector<72x128xf32> -> vector<72x128xf32>
    %166 = arith.addf %161, %165 : vector<72x128xf32>
    %167 = tpu.concatenate %36, %40, %44, %68, %72, %76, %100, %104, %108 in 0 : vector<8x128xbf16>, vector<8x128xbf16>, vector<8x128xbf16>, vector<8x128xbf16>, vector<8x128xbf16>, vector<8x128xbf16>, vector<8x128xbf16>, vector<8x128xbf16>, vector<8x128xbf16> -> vector<72x128xbf16>
    %c1_30 = arith.constant 1 : index
    %c0_31 = arith.constant 0 : index
    %c0_32 = arith.constant 0 : index
    %168 = vector.load %arg4[%c1_30, %c0_31, %c0_32] : memref<16x128x128xbf16, #tpu.memory_space<vmem>>, vector<1x128x128xbf16>
    %169 = vector.shape_cast %168 : vector<1x128x128xbf16> to vector<128x128xbf16>
    %cst_33 = arith.constant dense<0.000000e+00> : vector<72x128xf32>
    %170 = tpu.matmul %167, %169, %cst_33 {dimension_numbers = #tpu.dot_dimension_numbers<[1], [0], [0], [1], [0, 0, 1, 1], [], []>} : vector<72x128xbf16>, vector<128x128xbf16>, vector<72x128xf32> -> vector<72x128xf32>
    %171 = arith.addf %166, %170 : vector<72x128xf32>
    %172 = tpu.concatenate %38, %42, %46, %70, %74, %78, %102, %106, %110 in 0 : vector<8x128xbf16>, vector<8x128xbf16>, vector<8x128xbf16>, vector<8x128xbf16>, vector<8x128xbf16>, vector<8x128xbf16>, vector<8x128xbf16>, vector<8x128xbf16>, vector<8x128xbf16> -> vector<72x128xbf16>
    %c2 = arith.constant 2 : index
    %c0_34 = arith.constant 0 : index
    %c0_35 = arith.constant 0 : index
    %173 = vector.load %arg4[%c2, %c0_34, %c0_35] : memref<16x128x128xbf16, #tpu.memory_space<vmem>>, vector<1x128x128xbf16>
    %174 = vector.shape_cast %173 : vector<1x128x128xbf16> to vector<128x128xbf16>
    %cst_36 = arith.constant dense<0.000000e+00> : vector<72x128xf32>
    %175 = tpu.matmul %172, %174, %cst_36 {dimension_numbers = #tpu.dot_dimension_numbers<[1], [0], [0], [1], [0, 0, 1, 1], [], []>} : vector<72x128xbf16>, vector<128x128xbf16>, vector<72x128xf32> -> vector<72x128xf32>
    %176 = arith.addf %171, %175 : vector<72x128xf32>
    %177 = tpu.concatenate %40, %44, %48, %72, %76, %80, %104, %108, %112 in 0 : vector<8x128xbf16>, vector<8x128xbf16>, vector<8x128xbf16>, vector<8x128xbf16>, vector<8x128xbf16>, vector<8x128xbf16>, vector<8x128xbf16>, vector<8x128xbf16>, vector<8x128xbf16> -> vector<72x128xbf16>
    %c3 = arith.constant 3 : index
    %c0_37 = arith.constant 0 : index
    %c0_38 = arith.constant 0 : index
    %178 = vector.load %arg4[%c3, %c0_37, %c0_38] : memref<16x128x128xbf16, #tpu.memory_space<vmem>>, vector<1x128x128xbf16>
    %179 = vector.shape_cast %178 : vector<1x128x128xbf16> to vector<128x128xbf16>
    %cst_39 = arith.constant dense<0.000000e+00> : vector<72x128xf32>
    %180 = tpu.matmul %177, %179, %cst_39 {dimension_numbers = #tpu.dot_dimension_numbers<[1], [0], [0], [1], [0, 0, 1, 1], [], []>} : vector<72x128xbf16>, vector<128x128xbf16>, vector<72x128xf32> -> vector<72x128xf32>
    %181 = arith.addf %176, %180 : vector<72x128xf32>
    %182 = tpu.concatenate %50, %54, %58, %82, %86, %90, %114, %118, %122 in 0 : vector<8x128xbf16>, vector<8x128xbf16>, vector<8x128xbf16>, vector<8x128xbf16>, vector<8x128xbf16>, vector<8x128xbf16>, vector<8x128xbf16>, vector<8x128xbf16>, vector<8x128xbf16> -> vector<72x128xbf16>
    %c4 = arith.constant 4 : index
    %c0_40 = arith.constant 0 : index
    %c0_41 = arith.constant 0 : index
    %183 = vector.load %arg4[%c4, %c0_40, %c0_41] : memref<16x128x128xbf16, #tpu.memory_space<vmem>>, vector<1x128x128xbf16>
    %184 = vector.shape_cast %183 : vector<1x128x128xbf16> to vector<128x128xbf16>
    %cst_42 = arith.constant dense<0.000000e+00> : vector<72x128xf32>
    %185 = tpu.matmul %182, %184, %cst_42 {dimension_numbers = #tpu.dot_dimension_numbers<[1], [0], [0], [1], [0, 0, 1, 1], [], []>} : vector<72x128xbf16>, vector<128x128xbf16>, vector<72x128xf32> -> vector<72x128xf32>
    %186 = arith.addf %181, %185 : vector<72x128xf32>
    %187 = tpu.concatenate %52, %56, %60, %84, %88, %92, %116, %120, %124 in 0 : vector<8x128xbf16>, vector<8x128xbf16>, vector<8x128xbf16>, vector<8x128xbf16>, vector<8x128xbf16>, vector<8x128xbf16>, vector<8x128xbf16>, vector<8x128xbf16>, vector<8x128xbf16> -> vector<72x128xbf16>
    %c5 = arith.constant 5 : index
    %c0_43 = arith.constant 0 : index
    %c0_44 = arith.constant 0 : index
    %188 = vector.load %arg4[%c5, %c0_43, %c0_44] : memref<16x128x128xbf16, #tpu.memory_space<vmem>>, vector<1x128x128xbf16>
    %189 = vector.shape_cast %188 : vector<1x128x128xbf16> to vector<128x128xbf16>
    %cst_45 = arith.constant dense<0.000000e+00> : vector<72x128xf32>
    %190 = tpu.matmul %187, %189, %cst_45 {dimension_numbers = #tpu.dot_dimension_numbers<[1], [0], [0], [1], [0, 0, 1, 1], [], []>} : vector<72x128xbf16>, vector<128x128xbf16>, vector<72x128xf32> -> vector<72x128xf32>
    %191 = arith.addf %186, %190 : vector<72x128xf32>
    %192 = tpu.concatenate %54, %58, %62, %86, %90, %94, %118, %122, %126 in 0 : vector<8x128xbf16>, vector<8x128xbf16>, vector<8x128xbf16>, vector<8x128xbf16>, vector<8x128xbf16>, vector<8x128xbf16>, vector<8x128xbf16>, vector<8x128xbf16>, vector<8x128xbf16> -> vector<72x128xbf16>
    %c6 = arith.constant 6 : index
    %c0_46 = arith.constant 0 : index
    %c0_47 = arith.constant 0 : index
    %193 = vector.load %arg4[%c6, %c0_46, %c0_47] : memref<16x128x128xbf16, #tpu.memory_space<vmem>>, vector<1x128x128xbf16>
    %194 = vector.shape_cast %193 : vector<1x128x128xbf16> to vector<128x128xbf16>
    %cst_48 = arith.constant dense<0.000000e+00> : vector<72x128xf32>
    %195 = tpu.matmul %192, %194, %cst_48 {dimension_numbers = #tpu.dot_dimension_numbers<[1], [0], [0], [1], [0, 0, 1, 1], [], []>} : vector<72x128xbf16>, vector<128x128xbf16>, vector<72x128xf32> -> vector<72x128xf32>
    %196 = arith.addf %191, %195 : vector<72x128xf32>
    %197 = tpu.concatenate %56, %60, %64, %88, %92, %96, %120, %124, %128 in 0 : vector<8x128xbf16>, vector<8x128xbf16>, vector<8x128xbf16>, vector<8x128xbf16>, vector<8x128xbf16>, vector<8x128xbf16>, vector<8x128xbf16>, vector<8x128xbf16>, vector<8x128xbf16> -> vector<72x128xbf16>
    %c7 = arith.constant 7 : index
    %c0_49 = arith.constant 0 : index
    %c0_50 = arith.constant 0 : index
    %198 = vector.load %arg4[%c7, %c0_49, %c0_50] : memref<16x128x128xbf16, #tpu.memory_space<vmem>>, vector<1x128x128xbf16>
    %199 = vector.shape_cast %198 : vector<1x128x128xbf16> to vector<128x128xbf16>
    %cst_51 = arith.constant dense<0.000000e+00> : vector<72x128xf32>
    %200 = tpu.matmul %197, %199, %cst_51 {dimension_numbers = #tpu.dot_dimension_numbers<[1], [0], [0], [1], [0, 0, 1, 1], [], []>} : vector<72x128xbf16>, vector<128x128xbf16>, vector<72x128xf32> -> vector<72x128xf32>
    %201 = arith.addf %196, %200 : vector<72x128xf32>
    %202 = tpu.concatenate %66, %70, %74, %98, %102, %106, %130, %134, %138 in 0 : vector<8x128xbf16>, vector<8x128xbf16>, vector<8x128xbf16>, vector<8x128xbf16>, vector<8x128xbf16>, vector<8x128xbf16>, vector<8x128xbf16>, vector<8x128xbf16>, vector<8x128xbf16> -> vector<72x128xbf16>
    %c8 = arith.constant 8 : index
    %c0_52 = arith.constant 0 : index
    %c0_53 = arith.constant 0 : index
    %203 = vector.load %arg4[%c8, %c0_52, %c0_53] : memref<16x128x128xbf16, #tpu.memory_space<vmem>>, vector<1x128x128xbf16>
    %204 = vector.shape_cast %203 : vector<1x128x128xbf16> to vector<128x128xbf16>
    %cst_54 = arith.constant dense<0.000000e+00> : vector<72x128xf32>
    %205 = tpu.matmul %202, %204, %cst_54 {dimension_numbers = #tpu.dot_dimension_numbers<[1], [0], [0], [1], [0, 0, 1, 1], [], []>} : vector<72x128xbf16>, vector<128x128xbf16>, vector<72x128xf32> -> vector<72x128xf32>
    %206 = arith.addf %201, %205 : vector<72x128xf32>
    %207 = tpu.concatenate %68, %72, %76, %100, %104, %108, %132, %136, %140 in 0 : vector<8x128xbf16>, vector<8x128xbf16>, vector<8x128xbf16>, vector<8x128xbf16>, vector<8x128xbf16>, vector<8x128xbf16>, vector<8x128xbf16>, vector<8x128xbf16>, vector<8x128xbf16> -> vector<72x128xbf16>
    %c9 = arith.constant 9 : index
    %c0_55 = arith.constant 0 : index
    %c0_56 = arith.constant 0 : index
    %208 = vector.load %arg4[%c9, %c0_55, %c0_56] : memref<16x128x128xbf16, #tpu.memory_space<vmem>>, vector<1x128x128xbf16>
    %209 = vector.shape_cast %208 : vector<1x128x128xbf16> to vector<128x128xbf16>
    %cst_57 = arith.constant dense<0.000000e+00> : vector<72x128xf32>
    %210 = tpu.matmul %207, %209, %cst_57 {dimension_numbers = #tpu.dot_dimension_numbers<[1], [0], [0], [1], [0, 0, 1, 1], [], []>} : vector<72x128xbf16>, vector<128x128xbf16>, vector<72x128xf32> -> vector<72x128xf32>
    %211 = arith.addf %206, %210 : vector<72x128xf32>
    %212 = tpu.concatenate %70, %74, %78, %102, %106, %110, %134, %138, %142 in 0 : vector<8x128xbf16>, vector<8x128xbf16>, vector<8x128xbf16>, vector<8x128xbf16>, vector<8x128xbf16>, vector<8x128xbf16>, vector<8x128xbf16>, vector<8x128xbf16>, vector<8x128xbf16> -> vector<72x128xbf16>
    %c10 = arith.constant 10 : index
    %c0_58 = arith.constant 0 : index
    %c0_59 = arith.constant 0 : index
    %213 = vector.load %arg4[%c10, %c0_58, %c0_59] : memref<16x128x128xbf16, #tpu.memory_space<vmem>>, vector<1x128x128xbf16>
    %214 = vector.shape_cast %213 : vector<1x128x128xbf16> to vector<128x128xbf16>
    %cst_60 = arith.constant dense<0.000000e+00> : vector<72x128xf32>
    %215 = tpu.matmul %212, %214, %cst_60 {dimension_numbers = #tpu.dot_dimension_numbers<[1], [0], [0], [1], [0, 0, 1, 1], [], []>} : vector<72x128xbf16>, vector<128x128xbf16>, vector<72x128xf32> -> vector<72x128xf32>
    %216 = arith.addf %211, %215 : vector<72x128xf32>
    %217 = tpu.concatenate %72, %76, %80, %104, %108, %112, %136, %140, %144 in 0 : vector<8x128xbf16>, vector<8x128xbf16>, vector<8x128xbf16>, vector<8x128xbf16>, vector<8x128xbf16>, vector<8x128xbf16>, vector<8x128xbf16>, vector<8x128xbf16>, vector<8x128xbf16> -> vector<72x128xbf16>
    %c11 = arith.constant 11 : index
    %c0_61 = arith.constant 0 : index
    %c0_62 = arith.constant 0 : index
    %218 = vector.load %arg4[%c11, %c0_61, %c0_62] : memref<16x128x128xbf16, #tpu.memory_space<vmem>>, vector<1x128x128xbf16>
    %219 = vector.shape_cast %218 : vector<1x128x128xbf16> to vector<128x128xbf16>
    %cst_63 = arith.constant dense<0.000000e+00> : vector<72x128xf32>
    %220 = tpu.matmul %217, %219, %cst_63 {dimension_numbers = #tpu.dot_dimension_numbers<[1], [0], [0], [1], [0, 0, 1, 1], [], []>} : vector<72x128xbf16>, vector<128x128xbf16>, vector<72x128xf32> -> vector<72x128xf32>
    %221 = arith.addf %216, %220 : vector<72x128xf32>
    %222 = tpu.concatenate %82, %86, %90, %114, %118, %122, %146, %150, %154 in 0 : vector<8x128xbf16>, vector<8x128xbf16>, vector<8x128xbf16>, vector<8x128xbf16>, vector<8x128xbf16>, vector<8x128xbf16>, vector<8x128xbf16>, vector<8x128xbf16>, vector<8x128xbf16> -> vector<72x128xbf16>
    %c12 = arith.constant 12 : index
    %c0_64 = arith.constant 0 : index
    %c0_65 = arith.constant 0 : index
    %223 = vector.load %arg4[%c12, %c0_64, %c0_65] : memref<16x128x128xbf16, #tpu.memory_space<vmem>>, vector<1x128x128xbf16>
    %224 = vector.shape_cast %223 : vector<1x128x128xbf16> to vector<128x128xbf16>
    %cst_66 = arith.constant dense<0.000000e+00> : vector<72x128xf32>
    %225 = tpu.matmul %222, %224, %cst_66 {dimension_numbers = #tpu.dot_dimension_numbers<[1], [0], [0], [1], [0, 0, 1, 1], [], []>} : vector<72x128xbf16>, vector<128x128xbf16>, vector<72x128xf32> -> vector<72x128xf32>
    %226 = arith.addf %221, %225 : vector<72x128xf32>
    %227 = tpu.concatenate %84, %88, %92, %116, %120, %124, %148, %152, %156 in 0 : vector<8x128xbf16>, vector<8x128xbf16>, vector<8x128xbf16>, vector<8x128xbf16>, vector<8x128xbf16>, vector<8x128xbf16>, vector<8x128xbf16>, vector<8x128xbf16>, vector<8x128xbf16> -> vector<72x128xbf16>
    %c13 = arith.constant 13 : index
    %c0_67 = arith.constant 0 : index
    %c0_68 = arith.constant 0 : index
    %228 = vector.load %arg4[%c13, %c0_67, %c0_68] : memref<16x128x128xbf16, #tpu.memory_space<vmem>>, vector<1x128x128xbf16>
    %229 = vector.shape_cast %228 : vector<1x128x128xbf16> to vector<128x128xbf16>
    %cst_69 = arith.constant dense<0.000000e+00> : vector<72x128xf32>
    %230 = tpu.matmul %227, %229, %cst_69 {dimension_numbers = #tpu.dot_dimension_numbers<[1], [0], [0], [1], [0, 0, 1, 1], [], []>} : vector<72x128xbf16>, vector<128x128xbf16>, vector<72x128xf32> -> vector<72x128xf32>
    %231 = arith.addf %226, %230 : vector<72x128xf32>
    %232 = tpu.concatenate %86, %90, %94, %118, %122, %126, %150, %154, %158 in 0 : vector<8x128xbf16>, vector<8x128xbf16>, vector<8x128xbf16>, vector<8x128xbf16>, vector<8x128xbf16>, vector<8x128xbf16>, vector<8x128xbf16>, vector<8x128xbf16>, vector<8x128xbf16> -> vector<72x128xbf16>
    %c14 = arith.constant 14 : index
    %c0_70 = arith.constant 0 : index
    %c0_71 = arith.constant 0 : index
    %233 = vector.load %arg4[%c14, %c0_70, %c0_71] : memref<16x128x128xbf16, #tpu.memory_space<vmem>>, vector<1x128x128xbf16>
    %234 = vector.shape_cast %233 : vector<1x128x128xbf16> to vector<128x128xbf16>
    %cst_72 = arith.constant dense<0.000000e+00> : vector<72x128xf32>
    %235 = tpu.matmul %232, %234, %cst_72 {dimension_numbers = #tpu.dot_dimension_numbers<[1], [0], [0], [1], [0, 0, 1, 1], [], []>} : vector<72x128xbf16>, vector<128x128xbf16>, vector<72x128xf32> -> vector<72x128xf32>
    %236 = arith.addf %231, %235 : vector<72x128xf32>
    %237 = tpu.concatenate %88, %92, %96, %120, %124, %128, %152, %156, %160 in 0 : vector<8x128xbf16>, vector<8x128xbf16>, vector<8x128xbf16>, vector<8x128xbf16>, vector<8x128xbf16>, vector<8x128xbf16>, vector<8x128xbf16>, vector<8x128xbf16>, vector<8x128xbf16> -> vector<72x128xbf16>
    %c15 = arith.constant 15 : index
    %c0_73 = arith.constant 0 : index
    %c0_74 = arith.constant 0 : index
    %238 = vector.load %arg4[%c15, %c0_73, %c0_74] : memref<16x128x128xbf16, #tpu.memory_space<vmem>>, vector<1x128x128xbf16>
    %239 = vector.shape_cast %238 : vector<1x128x128xbf16> to vector<128x128xbf16>
    %cst_75 = arith.constant dense<0.000000e+00> : vector<72x128xf32>
    %240 = tpu.matmul %237, %239, %cst_75 {dimension_numbers = #tpu.dot_dimension_numbers<[1], [0], [0], [1], [0, 0, 1, 1], [], []>} : vector<72x128xbf16>, vector<128x128xbf16>, vector<72x128xf32> -> vector<72x128xf32>
    %241 = arith.addf %236, %240 : vector<72x128xf32>
    %c0_76 = arith.constant 0 : index
    %c0_77 = arith.constant 0 : index
    %242 = vector.load %arg5[%c0_76, %c0_77] : memref<1x128xf32, #tpu.memory_space<vmem>>, vector<1x128xf32>
    %243 = vector.broadcast %242 : vector<1x128xf32> to vector<72x128xf32>
    %244 = arith.addf %241, %243 : vector<72x128xf32>
    %cst_78 = arith.constant 0.000000e+00 : f32
    %245 = vector.broadcast %cst_78 : f32 to vector<72x128xf32>
    %246 = arith.maximumf %244, %245 : vector<72x128xf32>
    %247 = arith.truncf %246 : vector<72x128xf32> to vector<72x128xbf16>
    %248 = vector.shape_cast %247 : vector<72x128xbf16> to vector<9x8x128xbf16>
    %cst_79 = arith.constant 0.000000e+00 : f32
    %249 = vector.broadcast %cst_79 : f32 to vector<8x128xf32>
    %250 = vector.extract_strided_slice %248 {offsets = [0, 0, 0], sizes = [1, 8, 128], strides = [1, 1, 1]} : vector<9x8x128xbf16> to vector<1x8x128xbf16>
    %251 = vector.shape_cast %250 : vector<1x8x128xbf16> to vector<8x128xbf16>
    %c0_80 = arith.constant 0 : index
    %c0_81 = arith.constant 0 : index
    %c0_82 = arith.constant 0 : index
    %252 = vector.load %arg6[%c0_80, %c0_81, %c0_82] : memref<9x128x128xbf16, #tpu.memory_space<vmem>>, vector<1x128x128xbf16>
    %253 = vector.shape_cast %252 : vector<1x128x128xbf16> to vector<128x128xbf16>
    %cst_83 = arith.constant dense<0.000000e+00> : vector<8x128xf32>
    %254 = tpu.matmul %251, %253, %cst_83 {dimension_numbers = #tpu.dot_dimension_numbers<[1], [0], [0], [1], [0, 0, 1, 1], [], []>} : vector<8x128xbf16>, vector<128x128xbf16>, vector<8x128xf32> -> vector<8x128xf32>
    %255 = arith.addf %249, %254 : vector<8x128xf32>
    %256 = vector.extract_strided_slice %248 {offsets = [1, 0, 0], sizes = [1, 8, 128], strides = [1, 1, 1]} : vector<9x8x128xbf16> to vector<1x8x128xbf16>
    %257 = vector.shape_cast %256 : vector<1x8x128xbf16> to vector<8x128xbf16>
    %c1_84 = arith.constant 1 : index
    %c0_85 = arith.constant 0 : index
    %c0_86 = arith.constant 0 : index
    %258 = vector.load %arg6[%c1_84, %c0_85, %c0_86] : memref<9x128x128xbf16, #tpu.memory_space<vmem>>, vector<1x128x128xbf16>
    %259 = vector.shape_cast %258 : vector<1x128x128xbf16> to vector<128x128xbf16>
    %cst_87 = arith.constant dense<0.000000e+00> : vector<8x128xf32>
    %260 = tpu.matmul %257, %259, %cst_87 {dimension_numbers = #tpu.dot_dimension_numbers<[1], [0], [0], [1], [0, 0, 1, 1], [], []>} : vector<8x128xbf16>, vector<128x128xbf16>, vector<8x128xf32> -> vector<8x128xf32>
    %261 = arith.addf %255, %260 : vector<8x128xf32>
    %262 = vector.extract_strided_slice %248 {offsets = [2, 0, 0], sizes = [1, 8, 128], strides = [1, 1, 1]} : vector<9x8x128xbf16> to vector<1x8x128xbf16>
    %263 = vector.shape_cast %262 : vector<1x8x128xbf16> to vector<8x128xbf16>
    %c2_88 = arith.constant 2 : index
    %c0_89 = arith.constant 0 : index
    %c0_90 = arith.constant 0 : index
    %264 = vector.load %arg6[%c2_88, %c0_89, %c0_90] : memref<9x128x128xbf16, #tpu.memory_space<vmem>>, vector<1x128x128xbf16>
    %265 = vector.shape_cast %264 : vector<1x128x128xbf16> to vector<128x128xbf16>
    %cst_91 = arith.constant dense<0.000000e+00> : vector<8x128xf32>
    %266 = tpu.matmul %263, %265, %cst_91 {dimension_numbers = #tpu.dot_dimension_numbers<[1], [0], [0], [1], [0, 0, 1, 1], [], []>} : vector<8x128xbf16>, vector<128x128xbf16>, vector<8x128xf32> -> vector<8x128xf32>
    %267 = arith.addf %261, %266 : vector<8x128xf32>
    %268 = vector.extract_strided_slice %248 {offsets = [3, 0, 0], sizes = [1, 8, 128], strides = [1, 1, 1]} : vector<9x8x128xbf16> to vector<1x8x128xbf16>
    %269 = vector.shape_cast %268 : vector<1x8x128xbf16> to vector<8x128xbf16>
    %c3_92 = arith.constant 3 : index
    %c0_93 = arith.constant 0 : index
    %c0_94 = arith.constant 0 : index
    %270 = vector.load %arg6[%c3_92, %c0_93, %c0_94] : memref<9x128x128xbf16, #tpu.memory_space<vmem>>, vector<1x128x128xbf16>
    %271 = vector.shape_cast %270 : vector<1x128x128xbf16> to vector<128x128xbf16>
    %cst_95 = arith.constant dense<0.000000e+00> : vector<8x128xf32>
    %272 = tpu.matmul %269, %271, %cst_95 {dimension_numbers = #tpu.dot_dimension_numbers<[1], [0], [0], [1], [0, 0, 1, 1], [], []>} : vector<8x128xbf16>, vector<128x128xbf16>, vector<8x128xf32> -> vector<8x128xf32>
    %273 = arith.addf %267, %272 : vector<8x128xf32>
    %274 = vector.extract_strided_slice %248 {offsets = [4, 0, 0], sizes = [1, 8, 128], strides = [1, 1, 1]} : vector<9x8x128xbf16> to vector<1x8x128xbf16>
    %275 = vector.shape_cast %274 : vector<1x8x128xbf16> to vector<8x128xbf16>
    %c4_96 = arith.constant 4 : index
    %c0_97 = arith.constant 0 : index
    %c0_98 = arith.constant 0 : index
    %276 = vector.load %arg6[%c4_96, %c0_97, %c0_98] : memref<9x128x128xbf16, #tpu.memory_space<vmem>>, vector<1x128x128xbf16>
    %277 = vector.shape_cast %276 : vector<1x128x128xbf16> to vector<128x128xbf16>
    %cst_99 = arith.constant dense<0.000000e+00> : vector<8x128xf32>
    %278 = tpu.matmul %275, %277, %cst_99 {dimension_numbers = #tpu.dot_dimension_numbers<[1], [0], [0], [1], [0, 0, 1, 1], [], []>} : vector<8x128xbf16>, vector<128x128xbf16>, vector<8x128xf32> -> vector<8x128xf32>
    %279 = arith.addf %273, %278 : vector<8x128xf32>
    %280 = vector.extract_strided_slice %248 {offsets = [5, 0, 0], sizes = [1, 8, 128], strides = [1, 1, 1]} : vector<9x8x128xbf16> to vector<1x8x128xbf16>
    %281 = vector.shape_cast %280 : vector<1x8x128xbf16> to vector<8x128xbf16>
    %c5_100 = arith.constant 5 : index
    %c0_101 = arith.constant 0 : index
    %c0_102 = arith.constant 0 : index
    %282 = vector.load %arg6[%c5_100, %c0_101, %c0_102] : memref<9x128x128xbf16, #tpu.memory_space<vmem>>, vector<1x128x128xbf16>
    %283 = vector.shape_cast %282 : vector<1x128x128xbf16> to vector<128x128xbf16>
    %cst_103 = arith.constant dense<0.000000e+00> : vector<8x128xf32>
    %284 = tpu.matmul %281, %283, %cst_103 {dimension_numbers = #tpu.dot_dimension_numbers<[1], [0], [0], [1], [0, 0, 1, 1], [], []>} : vector<8x128xbf16>, vector<128x128xbf16>, vector<8x128xf32> -> vector<8x128xf32>
    %285 = arith.addf %279, %284 : vector<8x128xf32>
    %286 = vector.extract_strided_slice %248 {offsets = [6, 0, 0], sizes = [1, 8, 128], strides = [1, 1, 1]} : vector<9x8x128xbf16> to vector<1x8x128xbf16>
    %287 = vector.shape_cast %286 : vector<1x8x128xbf16> to vector<8x128xbf16>
    %c6_104 = arith.constant 6 : index
    %c0_105 = arith.constant 0 : index
    %c0_106 = arith.constant 0 : index
    %288 = vector.load %arg6[%c6_104, %c0_105, %c0_106] : memref<9x128x128xbf16, #tpu.memory_space<vmem>>, vector<1x128x128xbf16>
    %289 = vector.shape_cast %288 : vector<1x128x128xbf16> to vector<128x128xbf16>
    %cst_107 = arith.constant dense<0.000000e+00> : vector<8x128xf32>
    %290 = tpu.matmul %287, %289, %cst_107 {dimension_numbers = #tpu.dot_dimension_numbers<[1], [0], [0], [1], [0, 0, 1, 1], [], []>} : vector<8x128xbf16>, vector<128x128xbf16>, vector<8x128xf32> -> vector<8x128xf32>
    %291 = arith.addf %285, %290 : vector<8x128xf32>
    %292 = vector.extract_strided_slice %248 {offsets = [7, 0, 0], sizes = [1, 8, 128], strides = [1, 1, 1]} : vector<9x8x128xbf16> to vector<1x8x128xbf16>
    %293 = vector.shape_cast %292 : vector<1x8x128xbf16> to vector<8x128xbf16>
    %c7_108 = arith.constant 7 : index
    %c0_109 = arith.constant 0 : index
    %c0_110 = arith.constant 0 : index
    %294 = vector.load %arg6[%c7_108, %c0_109, %c0_110] : memref<9x128x128xbf16, #tpu.memory_space<vmem>>, vector<1x128x128xbf16>
    %295 = vector.shape_cast %294 : vector<1x128x128xbf16> to vector<128x128xbf16>
    %cst_111 = arith.constant dense<0.000000e+00> : vector<8x128xf32>
    %296 = tpu.matmul %293, %295, %cst_111 {dimension_numbers = #tpu.dot_dimension_numbers<[1], [0], [0], [1], [0, 0, 1, 1], [], []>} : vector<8x128xbf16>, vector<128x128xbf16>, vector<8x128xf32> -> vector<8x128xf32>
    %297 = arith.addf %291, %296 : vector<8x128xf32>
    %298 = vector.extract_strided_slice %248 {offsets = [8, 0, 0], sizes = [1, 8, 128], strides = [1, 1, 1]} : vector<9x8x128xbf16> to vector<1x8x128xbf16>
    %299 = vector.shape_cast %298 : vector<1x8x128xbf16> to vector<8x128xbf16>
    %c8_112 = arith.constant 8 : index
    %c0_113 = arith.constant 0 : index
    %c0_114 = arith.constant 0 : index
    %300 = vector.load %arg6[%c8_112, %c0_113, %c0_114] : memref<9x128x128xbf16, #tpu.memory_space<vmem>>, vector<1x128x128xbf16>
    %301 = vector.shape_cast %300 : vector<1x128x128xbf16> to vector<128x128xbf16>
    %cst_115 = arith.constant dense<0.000000e+00> : vector<8x128xf32>
    %302 = tpu.matmul %299, %301, %cst_115 {dimension_numbers = #tpu.dot_dimension_numbers<[1], [0], [0], [1], [0, 0, 1, 1], [], []>} : vector<8x128xbf16>, vector<128x128xbf16>, vector<8x128xf32> -> vector<8x128xf32>
    %303 = arith.addf %297, %302 : vector<8x128xf32>
    %c0_116 = arith.constant 0 : index
    %c0_117 = arith.constant 0 : index
    %304 = vector.load %arg7[%c0_116, %c0_117] : memref<1x128xf32, #tpu.memory_space<vmem>>, vector<1x128xf32>
    %305 = vector.broadcast %304 : vector<1x128xf32> to vector<8x128xf32>
    %306 = arith.addf %303, %305 : vector<8x128xf32>
    %cst_118 = arith.constant 0.000000e+00 : f32
    %307 = vector.broadcast %cst_118 : f32 to vector<8x128xf32>
    %308 = arith.maximumf %306, %307 : vector<8x128xf32>
    %309 = arith.truncf %308 : vector<8x128xf32> to vector<8x128xbf16>
    %c0_119 = arith.constant 0 : index
    %c0_120 = arith.constant 0 : index
    %310 = vector.load %arg8[%c0_119, %c0_120] : memref<128x512xbf16, #tpu.memory_space<vmem>>, vector<128x512xbf16>
    %cst_121 = arith.constant dense<0.000000e+00> : vector<8x512xf32>
    %311 = tpu.matmul %309, %310, %cst_121 {dimension_numbers = #tpu.dot_dimension_numbers<[1], [0], [0], [1], [0, 0, 1, 1], [], []>} : vector<8x128xbf16>, vector<128x512xbf16>, vector<8x512xf32> -> vector<8x512xf32>
    %c0_122 = arith.constant 0 : index
    %c0_123 = arith.constant 0 : index
    %312 = vector.load %arg9[%c0_122, %c0_123] : memref<1x512xf32, #tpu.memory_space<vmem>>, vector<1x512xf32>
    %313 = vector.broadcast %312 : vector<1x512xf32> to vector<8x512xf32>
    %314 = arith.addf %311, %313 : vector<8x512xf32>
    %cst_124 = arith.constant 0.000000e+00 : f32
    %315 = vector.broadcast %cst_124 : f32 to vector<8x512xf32>
    %316 = arith.maximumf %314, %315 : vector<8x512xf32>
    %317 = arith.truncf %316 : vector<8x512xf32> to vector<8x512xbf16>
    %c0_125 = arith.constant 0 : index
    %c0_126 = arith.constant 0 : index
    %318 = vector.load %arg10[%c0_125, %c0_126] : memref<512x128xbf16, #tpu.memory_space<vmem>>, vector<512x128xbf16>
    %cst_127 = arith.constant dense<0.000000e+00> : vector<8x128xf32>
    %319 = tpu.matmul %317, %318, %cst_127 {dimension_numbers = #tpu.dot_dimension_numbers<[1], [0], [0], [1], [0, 0, 1, 1], [], []>} : vector<8x512xbf16>, vector<512x128xbf16>, vector<8x128xf32> -> vector<8x128xf32>
    %c0_128 = arith.constant 0 : index
    %c0_129 = arith.constant 0 : index
    %320 = vector.load %arg11[%c0_128, %c0_129] : memref<1x128xf32, #tpu.memory_space<vmem>>, vector<1x128xf32>
    %321 = vector.broadcast %320 : vector<1x128xf32> to vector<8x128xf32>
    %322 = arith.addf %319, %321 : vector<8x128xf32>
    %c0_130 = arith.constant 0 : index
    %c0_131 = arith.constant 0 : index
    %323 = vector.load %arg12[%c0_130, %c0_131] : memref<8x128xf32, #tpu.memory_space<vmem>>, vector<8x128xf32>
    tpu.vector_store %arg12[%c0_130, %c0_131], %322 {strides = array<i32>} : memref<8x128xf32, #tpu.memory_space<vmem>>, vector<8x128xf32>,
    return
  }
  func.func @transform_0(%arg0: i32) -> (i32, i32, i32, i32) {
    %c0_i32 = arith.constant 0 : i32
    %c0_i32_0 = arith.constant 0 : i32
    %c0_i32_1 = arith.constant 0 : i32
    %c0_i32_2 = arith.constant 0 : i32
    return %c0_i32, %c0_i32_0, %arg0, %c0_i32_1 : i32, i32, i32, i32
  }
  func.func @transform_1(%arg0: i32) -> (i32, i32, i32, i32) {
    %c0_i32 = arith.constant 0 : i32
    %c0_i32_0 = arith.constant 0 : i32
    %c0_i32_1 = arith.constant 0 : i32
    %c0_i32_2 = arith.constant 0 : i32
    %c0_i32_3 = arith.constant 0 : i32
    return %c0_i32, %c0_i32_0, %c0_i32_1, %c0_i32_2 : i32, i32, i32, i32
  }
  func.func @transform_2(%arg0: i32) -> (i32, i32) {
    %c0_i32 = arith.constant 0 : i32
    %c0_i32_0 = arith.constant 0 : i32
    %c0_i32_1 = arith.constant 0 : i32
    return %c0_i32, %c0_i32_0 : i32, i32
  }
  func.func @transform_3(%arg0: i32) -> (i32, i32, i32) {
    %c0_i32 = arith.constant 0 : i32
    %c0_i32_0 = arith.constant 0 : i32
    %c0_i32_1 = arith.constant 0 : i32
    %c0_i32_2 = arith.constant 0 : i32
    return %c0_i32, %c0_i32_0, %c0_i32_1 : i32, i32, i32
  }
  func.func @transform_4(%arg0: i32) -> (i32, i32) {
    %c0_i32 = arith.constant 0 : i32
    %c0_i32_0 = arith.constant 0 : i32
    %c0_i32_1 = arith.constant 0 : i32
    return %c0_i32, %c0_i32_0 : i32, i32
  }
  func.func @transform_5(%arg0: i32) -> (i32, i32, i32) {
    %c0_i32 = arith.constant 0 : i32
    %c0_i32_0 = arith.constant 0 : i32
    %c0_i32_1 = arith.constant 0 : i32
    %c0_i32_2 = arith.constant 0 : i32
    return %c0_i32, %c0_i32_0, %c0_i32_1 : i32, i32, i32
  }
  func.func @transform_6(%arg0: i32) -> (i32, i32) {
    %c0_i32 = arith.constant 0 : i32
    %c0_i32_0 = arith.constant 0 : i32
    %c0_i32_1 = arith.constant 0 : i32
    return %c0_i32, %c0_i32_0 : i32, i32
  }
  func.func @transform_7(%arg0: i32) -> (i32, i32) {
    %c0_i32 = arith.constant 0 : i32
    %c0_i32_0 = arith.constant 0 : i32
    %c0_i32_1 = arith.constant 0 : i32
    return %c0_i32, %c0_i32_0 : i32, i32
  }
  func.func @transform_8(%arg0: i32) -> (i32, i32) {
    %c0_i32 = arith.constant 0 : i32
    %c0_i32_0 = arith.constant 0 : i32
    %c0_i32_1 = arith.constant 0 : i32
    return %c0_i32, %c0_i32_0 : i32, i32
  }
  func.func @transform_9(%arg0: i32) -> (i32, i32) {
    %c0_i32 = arith.constant 0 : i32
    %c0_i32_0 = arith.constant 0 : i32
    %c0_i32_1 = arith.constant 0 : i32
    return %c0_i32, %c0_i32_0 : i32, i32
  }
  func.func @transform_10(%arg0: i32) -> (i32, i32) {
    %c0_i32 = arith.constant 0 : i32
    %c0_i32_0 = arith.constant 0 : i32
    %c0_i32_1 = arith.constant 0 : i32
    return %c0_i32, %c0_i32_0 : i32, i32
  }
  func.func @transform_11(%arg0: i32) -> (i32, i32) {
    %c0_i32 = arith.constant 0 : i32
    %c0_i32_0 = arith.constant 0 : i32
    return %arg0, %c0_i32 : i32, i32
  }
}

</mosaic_0001>

<bundles_post_ra>
// kernel: critic_forward.1
= control target key start
LH: loop header
LB: loop body
LE: loop exit
PB: predicated region body
PF: predicated region fallthrough
CT: control target
= control target key end

     0   :  { %vm321_vm0 = vcmask 523264   ;;  %vm9419_vm1 = vmmov 0   ;;  %vm2329_vm2 = vcmask 1043456   ;;  %s12447_s1 = inlined_call_operand.vmem [shape: bf16[2,2,64,128], index: 1, kind: input, shape index: {}]   ;;  %s12448_s0 = inlined_call_operand.vmem [shape: bf16[9,9,8,64], index: 0, kind: input, shape index: {}]   ;;  %s12449_s3 = inlined_call_operand.vmem [shape: bf16[16,128,128], index: 3, kind: input, shape index: {}]   ;;  %s12450_s2 = inlined_call_operand.vmem [shape: f32[1,128], index: 2, kind: input, shape index: {}]   ;;  %s12451_s5 = inlined_call_operand.vmem [shape: bf16[9,128,128], index: 5, kind: input, shape index: {}]   ;;  %s12452_s4 = inlined_call_operand.vmem [shape: f32[1,128], index: 4, kind: input, shape index: {}]   ;;  %s12453_s7 = inlined_call_operand.vmem [shape: bf16[128,512], index: 7, kind: input, shape index: {}]   ;;  %s12454_s9 = inlined_call_operand.vmem [shape: bf16[512,128], index: 9, kind: input, shape index: {}]   ;;  %s12455_s6 = inlined_call_operand.vmem [shape: f32[1,128], index: 6, kind: input, shape index: {}]   ;;  %s12456_s8 = inlined_call_operand.vmem [shape: f32[1,512], index: 8, kind: input, shape index: {}]   ;;  %s12457_s10 = inlined_call_operand.vmem [shape: f32[1,128], index: 10, kind: input, shape index: {}]   ;;  %s12458_s11 = inlined_call_operand.vmem [shape: f32[8,128], index: 11, kind: output, shape index: {}]  }
   0x1   :  { %v9048_v0 = vld [vmem:[%s12447_s1 + $0x38] sm:$0xff]   ;;  %v9049_v1 = vld [vmem:[%s12447_s1 + $0x30] sm:$0xff]   ;;  %v9050_v2 = vld [vmem:[%s12447_s1 + $0x28] sm:$0xff]  }
   0x2   :  { %7993 = vmatprep.subr.bf16.mxu0 %v9048_v0  ;;  %9037 = vmatprep.subr.bf16.mxu1 %v9048_v0  ;;  %v9493_v3 = vld [vmem:[%s12448_s0 + $0x4] sm:$0xf]  ;;  %v9498_v4 = vld [vmem:[%s12448_s0 + $0x8] sm:$0xf]  ;;  %v9505_v6 = vld [vmem:[%s12448_s0 + $0x100] sm:$0xf] }
   0x3   :  { %7994 = vmatpush3.bf16.msra.mxu0 %v9048_v0  ;;  %9041 = vmatpush3.bf16.msra.mxu1 %v9048_v0  ;;  %v6502_v5 = vcombine.low %v9493_v3, %v9498_v4  ;;  %v104_v7 = vld [vmem:[%s12448_s0 + $0x104] sm:$0xf]  ;;  %v105_v8 = vld [vmem:[%s12448_s0 + $0x108] sm:$0xf]  ;;  %v9527_v12 = vld [vmem:[%s12448_s0 + $0xc] sm:$0xf] }
   0x4   :  { %7995 = vmatprep.subr.bf16.mxu0 %v9049_v1  ;;  %9038 = vmatprep.subr.bf16.mxu1 %v9049_v1  ;;  %v9514_v9 = vcombine.low %v9505_v6, %v104_v7  ;;  %v9516_v10 = vcombine.low %v104_v7, %v105_v8  ;;  %v9051_v11 = vld [vmem:[%s12447_s1 + $0x20] sm:$0xff]   ;;  %v9532_v13 = vld [vmem:[%s12448_s0 + $0x10] sm:$0xf]  ;;  %v106_v14 = vld [vmem:[%s12448_s0 + $0x10c] sm:$0xf]  ;;  %v6571_v47 = vcombine.low %v9498_v4, %v9527_v12 }
   0x5   :  { %8001 = vmatprep.mubr.msk.bf16.mxu0 %vm321_vm0, %v6502_v5  ;;  %v9060_v15 = vld [vmem:[%s12447_s1 + $0x18] sm:$0xff]   ;;  %v9543_v16 = vld [vmem:[%s12448_s0 + $0x14] sm:$0xf]  ;;  %v107_v18 = vld [vmem:[%s12448_s0 + $0x110] sm:$0xf]  ;;  %v6503_v20 = vcombine.low %v9527_v12, %v9532_v13  ;;  %v9558_v21 = vcombine.low %v105_v8, %v106_v14 }
   0x6   :  { %8057 = vmatprep.mubr.msk.bf16.mxu1 %vm321_vm0, %v9514_v9  ;;  %v9548_v17 = vld [vmem:[%s12448_s0 + $0x18] sm:$0xf]  ;;  %v108_v19 = vld [vmem:[%s12448_s0 + $0x114] sm:$0xf]  ;;  %v9576_v27 = vcombine.low %v106_v14, %v107_v18  ;;  %v9582_v28 = vld [vmem:[%s12448_s0 + $0x1c] sm:$0xf]  ;;  %v6572_v50 = vcombine.low %v9532_v13, %v9543_v16 }
   0x7   :  { %7996 = vmatpush3.bf16.msra.mxu0 %v9049_v1  ;;  %9042 = vmatpush3.bf16.msra.mxu1 %v9049_v1  ;;  %v6504_v22 = vcombine.low %v9543_v16, %v9548_v17  ;;  %v9061_v23 = vld [vmem:[%s12447_s1 + $0x10] sm:$0xff]   ;;  %v9565_v24 = vcombine.low %v107_v18, %v108_v19  ;;  %v109_v25 = vld [vmem:[%s12448_s0 + $0x118] sm:$0xf]  ;;  %v47_v29 = vld [vmem:[%s12448_s0 + $0x20] sm:$0xf]  ;;  %v6573_v60 = vcombine.low %v9548_v17, %v9582_v28 }
   0x8   :  { %7997 = vmatprep.subr.bf16.mxu0 %v9050_v2  ;;  %9039 = vmatprep.subr.bf16.mxu1 %v9050_v2  ;;  %v9075_v26 = vld [vmem:[%s12447_s1 + $0x58] sm:$0xff]   ;;  %v9590_v31 = vcombine.low %v108_v19, %v109_v25  ;;  %v9066_v32 = vld [vmem:[%s12447_s1 + $0x8] sm:$0xff]   ;;  %v39_v35 = vld [vmem:[%s12448_s0] sm:$0xf]  ;;  %v6505_v36 = vcombine.low %v9582_v28, %v47_v29 }
   0x9   :  { %v110_v30 = vld [vmem:[%s12448_s0 + $0x11c] sm:$0xf]  ;;  %v49_v33 = vld [vmem:[%s12448_s0 + $0x28] sm:$0xf]  ;;  %v9603_v34 = vld [vmem:[%s12448_s0 + $0x2c] sm:$0xf]  ;;  %v6570_v39 = vcombine.low %v39_v35, %v9493_v3 }
   0xa   :  { %v9609_v37 = vcombine.low %v109_v25, %v110_v30  ;;  %v9612_v38 = vcombine.low %v49_v33, %v9603_v34  ;;  %v9067_v40 = vld [vmem:[%s12447_s1] sm:$0xff]   ;;  %v9093_v41 = vld [vmem:[%s12447_s1 + $0x50] sm:$0xff]   ;;  %v9070_v44 = vld [vmem:[%s12447_s1 + $0x78] sm:$0xff]  }
   0xb   :  { %7998 = vmatpush3.bf16.msra.mxu0 %v9050_v2  ;;  %9043 = vmatpush3.bf16.msra.mxu1 %v9050_v2  ;;  %v51_v42 = vld [vmem:[%s12448_s0 + $0x30] sm:$0xf]  ;;  %v52_v43 = vld [vmem:[%s12448_s0 + $0x34] sm:$0xf]  ;;  %v53_v45 = vld [vmem:[%s12448_s0 + $0x38] sm:$0xf] }
   0xc   :  { %7999 = vmatprep.subr.bf16.mxu0 %v9051_v11  ;;  %9040 = vmatprep.subr.bf16.mxu1 %v9051_v11  ;;  %12464 = vst [vmem:[#allocation2_spill] sm:$0xff] %v9609_v37  ;;  %v54_v46 = vld [vmem:[%s12448_s0 + $0x3c] sm:$0xf]  ;;  %v9644_v48 = vcombine.low %v51_v42, %v52_v43  ;;  %v9088_v51 = vld [vmem:[%s12447_s1 + $0x70] sm:$0xff]   ;;  %v9107_v52 = vld [vmem:[%s12447_s1 + $0x48] sm:$0xff]   ;;  %v9716_v7 = vcombine.low %v9603_v34, %v51_v42 }
   0xd   :  { %v9646_v49 = vcombine.low %v53_v45, %v54_v46  ;;  %v55_v53 = vld [vmem:[%s12448_s0 + $0x40] sm:$0xf]  ;;  %v56_v54 = vld [vmem:[%s12448_s0 + $0x44] sm:$0xf]  ;;  %v58_v55 = vld [vmem:[%s12448_s0 + $0x4c] sm:$0xf] }
   0xe   :  { %v59_v56 = vld [vmem:[%s12448_s0 + $0x50] sm:$0xf]  ;;  %v48_v57 = vld [vmem:[%s12448_s0 + $0x24] sm:$0xf]  ;;  %v9106_v58 = vld [vmem:[%s12447_s1 + $0x68] sm:$0xff]   ;;  %v9680_v59 = vcombine.low %v55_v53, %v56_v54  ;;  %v9747_v18 = vcombine.low %v54_v46, %v55_v53 }
   0xf   :  { %8000 = vmatpush3.bf16.msra.mxu0 %v9051_v11  ;;  %9044 = vmatpush3.bf16.msra.mxu1 %v9051_v11  ;;  %v9120_v61 = vld [vmem:[%s12447_s1 + $0x40] sm:$0xff]   ;;  %v9687_v62 = vcombine.low %v58_v55, %v59_v56  ;;  %v9689_v63 = vcombine.low %v48_v57, %v49_v33  ;;  %v60_v1 = vld [vmem:[%s12448_s0 + $0x54] sm:$0xf]  ;;  %v61_v2 = vld [vmem:[%s12448_s0 + $0x58] sm:$0xf]  ;;  %v9720_v11 = vcombine.low %v52_v43, %v53_v45 }
  0x10   :  { %8065 = vmatprep.subr.bf16.mxu1 %v9060_v15  ;;  %8137 = vmatprep.subr.bf16.mxu0 %v9075_v26  ;;  %v9123_v0 = vld [vmem:[%s12447_s1 + $0x60] sm:$0xff]   ;;  %v62_v3 = vld [vmem:[%s12448_s0 + $0x5c] sm:$0xf]  ;;  %v9713_v5 = vcombine.low %v60_v1, %v61_v2  ;;  %v65_v13 = vld [vmem:[%s12448_s0 + $0x68] sm:$0xf]  ;;  %v9775_v29 = vcombine.low %v59_v56, %v60_v1 }
  0x11   :  { %v63_v4 = vld [vmem:[%s12448_s0 + $0x60] sm:$0xf]  ;;  %v64_v12 = vld [vmem:[%s12448_s0 + $0x64] sm:$0xf]  ;;  %v67_v14 = vld [vmem:[%s12448_s0 + $0x70] sm:$0xf] }
  0x12   :  { %8002 = vmatmul.mubr.msk.bf16.vlgmr.msra.gmra.mxu0 %vm321_vm0, %v6503_v20  ;;  %8058 = vmatmul.mubr.msk.bf16.vlgmr.msra.gmra.mxu1 %vm321_vm0, %v9558_v21  ;;  %v9718_v8 = vcombine.low %v62_v3, %v63_v4  ;;  %v57_v16 = vld [vmem:[%s12448_s0 + $0x48] sm:$0xf]  ;;  %v9745_v17 = vcombine.low %v64_v12, %v65_v13  ;;  %v71_v25 = vld [vmem:[%s12448_s0 + $0x80] sm:$0xf]  ;;  %v74_v34 = vld [vmem:[%s12448_s0 + $0x8c] sm:$0xf] }
  0x13   :  { %8066 = vmatpush3.bf16.msra.mxu1 %v9060_v15  ;;  %8005 = vmatprep.mubr.msk.bf16.mxu0 %vm321_vm0, %v6504_v22  ;;  %v68_v15 = vld [vmem:[%s12448_s0 + $0x74] sm:$0xf]  ;;  %v9751_v20 = vcombine.low %v57_v16, %v58_v55  ;;  %v69_v22 = vld [vmem:[%s12448_s0 + $0x78] sm:$0xf]  ;;  %v73_v33 = vld [vmem:[%s12448_s0 + $0x88] sm:$0xf] }
  0x14   :  { %8067 = vmatprep.subr.bf16.mxu1 %v9061_v23  ;;  %8061 = vmatprep.mubr.msk.bf16.mxu1 %vm321_vm0, %v9565_v24  ;;  %v9749_v19 = vcombine.low %v67_v14, %v68_v15  ;;  %v76_v35 = vld [vmem:[%s12448_s0 + $0x94] sm:$0xf]  ;;  %v79_v45 = vld [vmem:[%s12448_s0 + $0xa0] sm:$0xf]  ;;  %v80_v46 = vld [vmem:[%s12448_s0 + $0xa4] sm:$0xf] }
  0x15   :  { %8138 = vmatpush3.bf16.msra.mxu0 %v9075_v26  ;;  %v72_v26 = vld [vmem:[%s12448_s0 + $0x84] sm:$0xf]  ;;  %v82_v54 = vld [vmem:[%s12448_s0 + $0xac] sm:$0xf]  ;;  %v83_v55 = vld [vmem:[%s12448_s0 + $0xb0] sm:$0xf]  ;;  %v9897_v16 = vcombine.low %v79_v45, %v80_v46 }
  0x16   :  { %8139 = vmatprep.subr.bf16.mxu0 %v9093_v41  ;;  %v9777_v30 = vcombine.low %v71_v25, %v72_v26  ;;  %v85_v56 = vld [vmem:[%s12448_s0 + $0xb8] sm:$0xf]  ;;  %v86_v57 = vld [vmem:[%s12448_s0 + $0xbc] sm:$0xf] }
  0x17   :  { %8068 = vmatpush3.bf16.msra.mxu1 %v9061_v23  ;;  %v70_v23 = vld [vmem:[%s12448_s0 + $0x7c] sm:$0xf] }
  0x18   :  { %8069 = vmatprep.subr.bf16.mxu1 %v9066_v32  ;;  %v9773_v28 = vcombine.low %v69_v22, %v70_v23  ;;  %v9838_v53 = vcombine.low %v70_v23, %v71_v25  ;;  %v92_v23 = vld [vmem:[%s12448_s0 + $0xd4] sm:$0xf]  ;;  %v94_v25 = vld [vmem:[%s12448_s0 + $0xdc] sm:$0xf] }
  0x19   :  { %8140 = vmatpush3.bf16.msra.mxu0 %v9093_v41  ;;  %v9806_v41 = vcombine.low %v63_v4, %v64_v12  ;;  %v89_v4 = vld [vmem:[%s12448_s0 + $0xc8] sm:$0xf]  ;;  %v90_v12 = vld [vmem:[%s12448_s0 + $0xcc] sm:$0xf] }
  0x1a   :  { %8006 = vmatmul.mubr.msk.bf16.gmra.mxu0 %vm321_vm0, %v6505_v36  ;;  %8062 = vmatmul.mubr.msk.bf16.gmra.mxu1 %vm321_vm0, %v9609_v37  ;;  %v77_v36 = vld [vmem:[%s12448_s0 + $0x98] sm:$0xf] }
  0x1b   :  { %8070 = vmatpush3.bf16.msra.mxu1 %v9066_v32  ;;  %8009 = vmatprep.mubr.msk.bf16.mxu0 %vm321_vm0, %v9612_v38  ;;  %v9779_v32 = vcombine.low %v61_v2, %v62_v3  ;;  %v9808_v42 = vcombine.low %v76_v35, %v77_v36  ;;  %v87_v2 = vld [vmem:[%s12448_s0 + $0xc0] sm:$0xf]  ;;  %v88_v3 = vld [vmem:[%s12448_s0 + $0xc4] sm:$0xf] }
  0x1c   :  { %8071 = vmatprep.subr.bf16.mxu1 %v9067_v40  ;;  %8073 = vmatprep.mubr.msk.bf16.mxu1 %vm321_vm0, %v6570_v39  ;;  %v66_v39 = vld [vmem:[%s12448_s0 + $0x6c] sm:$0xf]  ;;  %v9891_v13 = vcombine.low %v87_v2, %v88_v3 }
  0x1d   :  { %8141 = vmatprep.subr.bf16.mxu0 %v9107_v52  ;;  %v9810_v43 = vcombine.low %v66_v39, %v67_v14 }
  0x1e   :  { %8142 = vmatpush3.bf16.msra.mxu0 %v9107_v52 }
  0x1f   :  { %8072 = vmatpush3.bf16.msra.mxu1 %v9067_v40  ;;  %8143 = vmatprep.subr.bf16.mxu0 %v9120_v61  ;;  %v9804_v40 = vcombine.low %v73_v33, %v74_v34 }
  0x20   :  { %8209 = vmatprep.subr.bf16.mxu1 %v9070_v44 }
  0x22   :  { %8010 = vmatmul.mubr.msk.bf16.gmra.mxu0 %vm321_vm0, %v9644_v48  ;;  %8074 = vmatmul.mubr.msk.bf16.vlgmr.msra.gmra.mxu1 %vm321_vm0, %v6571_v47  ;;  %v81_v47 = vld [vmem:[%s12448_s0 + $0xa8] sm:$0xf] }
  0x23   :  { %8210 = vmatpush3.bf16.msra.mxu1 %v9070_v44  ;;  %8013 = vmatprep.mubr.msk.bf16.mxu0 %vm321_vm0, %v9646_v49  ;;  %v78_v44 = vld [vmem:[%s12448_s0 + $0x9c] sm:$0xf]  ;;  %v9836_v52 = vcombine.low %v80_v46, %v81_v47  ;;  %v98_v46 = vld [vmem:[%s12448_s0 + $0xec] sm:$0xf] }
  0x24   :  { %8077 = vmatprep.mubr.msk.bf16.mxu1 %vm321_vm0, %v6572_v50  ;;  %8211 = vmatprep.subr.bf16.mxu1 %v9088_v51  ;;  %v9832_v50 = vcombine.low %v78_v44, %v79_v45  ;;  %v9893_v14 = vcombine.low %v77_v36, %v78_v44  ;;  %v96_v44 = vld [vmem:[%s12448_s0 + $0xe4] sm:$0xf]  ;;  %v97_v45 = vld [vmem:[%s12448_s0 + $0xe8] sm:$0xf] }
  0x25   :  { %8144 = vmatpush3.bf16.msra.mxu0 %v9120_v61  ;;  %v9865_v61 = vcombine.low %v72_v26, %v73_v33  ;;  %v95_v26 = vld [vmem:[%s12448_s0 + $0xe0] sm:$0xf]  ;;  %v84_v33 = vld [vmem:[%s12448_s0 + $0xb4] sm:$0xf] }
  0x26   :  { %v9926_v36 = vcombine.low %v94_v25, %v95_v26  ;;  %v9928_v39 = vcombine.low %v84_v33, %v85_v56  ;;  %v9989_v37 = vcombine.low %v95_v26, %v96_v44  ;;  %v9147_v26 = vld [vmem:[%s12449_s3 + $0x50] sm:$0xff]  }
  0x27   :  { %8212 = vmatpush3.bf16.msra.mxu1 %v9088_v51  ;;  %v9834_v51 = vcombine.low %v68_v15, %v69_v22  ;;  %v9895_v15 = vcombine.low %v89_v4, %v90_v12  ;;  %v91_v22 = vld [vmem:[%s12448_s0 + $0xd0] sm:$0xf] }
  0x28   :  { %8213 = vmatprep.subr.bf16.mxu1 %v9106_v58  ;;  %v9922_v34 = vcombine.low %v91_v22, %v92_v23  ;;  %v9977_v23 = vcombine.low %v90_v12, %v91_v22 }
  0x2a   :  { %8014 = vmatmul.mubr.msk.bf16.gmra.mxu0 %vm321_vm0, %v9680_v59  ;;  %8078 = vmatmul.mubr.msk.bf16.gmra.mxu1 %vm321_vm0, %v6573_v60  ;;  %v9863_v60 = vcombine.low %v82_v54, %v83_v55  ;;  %v9952_v55 = vcombine.low %v86_v57, %v87_v2  ;;  %v101_v2 = vld [vmem:[%s12448_s0 + $0xf8] sm:$0xf] }
  0x2b   :  { %8017 = vmatprep.mubr.msk.bf16.mxu0 %vm321_vm0, %v9687_v62  ;;  %8081 = vmatprep.mubr.msk.bf16.mxu1 %vm321_vm0, %v9689_v63 }
  0x2c   :  { %8214 = vmatpush3.bf16.msra.mxu1 %v9106_v58  ;;  %v75_v58 = vld [vmem:[%s12448_s0 + $0x90] sm:$0xf] }
  0x2d   :  { %8215 = vmatprep.subr.bf16.mxu1 %v9123_v0  ;;  %v9869_v1 = vcombine.low %v75_v58, %v76_v35  ;;  %v9924_v35 = vcombine.low %v81_v47, %v82_v54  ;;  %v99_v47 = vld [vmem:[%s12448_s0 + $0xf0] sm:$0xf]  ;;  %v9950_v54 = vcombine.low %v96_v44, %v97_v45  ;;  %v9956_v58 = vcombine.low %v88_v3, %v89_v4  ;;  %v93_v3 = vld [vmem:[%s12448_s0 + $0xd8] sm:$0xf] }
  0x2e   :  { %v9979_v33 = vcombine.low %v93_v3, %v94_v25 }
  0x30   :  { %8216 = vmatpush3.bf16.msra.mxu1 %v9123_v0  ;;  %v9867_v0 = vcombine.low %v85_v56, %v86_v57  ;;  %v9954_v56 = vcombine.low %v98_v46, %v99_v47  ;;  %v100_v57 = vld [vmem:[%s12448_s0 + $0xf4] sm:$0xf] }
  0x31   :  { %v9975_v4 = vcombine.low %v100_v57, %v101_v2  ;;  %v9991_v2 = vcombine.low %v97_v45, %v98_v46  ;;  %v10004_v12 = vcombine.low %v99_v47, %v100_v57 }
  0x32   :  { %8018 = vmatmul.mubr.msk.bf16.gmra.mxu0 %vm321_vm0, %v9713_v5  ;;  %8082 = vmatmul.mubr.msk.bf16.gmra.mxu1 %vm321_vm0, %v9716_v7 }
  0x33   :  { %8021 = vmatprep.mubr.msk.bf16.mxu0 %vm321_vm0, %v9718_v8  ;;  %8085 = vmatprep.mubr.msk.bf16.mxu1 %vm321_vm0, %v9720_v11 }
  0x3a   :  { %8022 = vmatmul.mubr.msk.bf16.gmra.mxu0 %vm321_vm0, %v9745_v17  ;;  %8086 = vmatmul.mubr.msk.bf16.gmra.mxu1 %vm321_vm0, %v9747_v18 }
  0x3b   :  { %8025 = vmatprep.mubr.msk.bf16.mxu0 %vm321_vm0, %v9749_v19  ;;  %8089 = vmatprep.mubr.msk.bf16.mxu1 %vm321_vm0, %v9751_v20 }
  0x42   :  { %8026 = vmatmul.mubr.msk.bf16.gmra.mxu0 %vm321_vm0, %v9773_v28  ;;  %8090 = vmatmul.mubr.msk.bf16.gmra.mxu1 %vm321_vm0, %v9775_v29 }
  0x43   :  { %8029 = vmatprep.mubr.msk.bf16.mxu0 %vm321_vm0, %v9777_v30  ;;  %8093 = vmatprep.mubr.msk.bf16.mxu1 %vm321_vm0, %v9779_v32 }
  0x4a   :  { %8030 = vmatmul.mubr.msk.bf16.gmra.mxu0 %vm321_vm0, %v9804_v40  ;;  %8094 = vmatmul.mubr.msk.bf16.gmra.mxu1 %vm321_vm0, %v9806_v41 }
  0x4b   :  { %8033 = vmatprep.mubr.msk.bf16.mxu0 %vm321_vm0, %v9808_v42  ;;  %8097 = vmatprep.mubr.msk.bf16.mxu1 %vm321_vm0, %v9810_v43 }
  0x52   :  { %8034 = vmatmul.mubr.msk.bf16.gmra.mxu0 %vm321_vm0, %v9832_v50  ;;  %8098 = vmatmul.mubr.msk.bf16.gmra.mxu1 %vm321_vm0, %v9834_v51 }
  0x53   :  { %8037 = vmatprep.mubr.msk.bf16.mxu0 %vm321_vm0, %v9836_v52  ;;  %8101 = vmatprep.mubr.msk.bf16.mxu1 %vm321_vm0, %v9838_v53 }
  0x5a   :  { %8038 = vmatmul.mubr.msk.bf16.gmra.mxu0 %vm321_vm0, %v9863_v60  ;;  %8102 = vmatmul.mubr.msk.bf16.gmra.mxu1 %vm321_vm0, %v9865_v61 }
  0x5b   :  { %8041 = vmatprep.mubr.msk.bf16.mxu0 %vm321_vm0, %v9867_v0  ;;  %8105 = vmatprep.mubr.msk.bf16.mxu1 %vm321_vm0, %v9869_v1 }
  0x62   :  { %8042 = vmatmul.mubr.msk.bf16.gmra.mxu0 %vm321_vm0, %v9891_v13  ;;  %8106 = vmatmul.mubr.msk.bf16.gmra.mxu1 %vm321_vm0, %v9893_v14 }
  0x63   :  { %8045 = vmatprep.mubr.msk.bf16.mxu0 %vm321_vm0, %v9895_v15  ;;  %8109 = vmatprep.mubr.msk.bf16.mxu1 %vm321_vm0, %v9897_v16 }
  0x6a   :  { %8046 = vmatmul.mubr.msk.bf16.gmra.mxu0 %vm321_vm0, %v9922_v34  ;;  %8110 = vmatmul.mubr.msk.bf16.gmra.mxu1 %vm321_vm0, %v9924_v35 }
  0x6b   :  { %8049 = vmatprep.mubr.msk.bf16.mxu0 %vm321_vm0, %v9926_v36  ;;  %8113 = vmatprep.mubr.msk.bf16.mxu1 %vm321_vm0, %v9928_v39 }
  0x72   :  { %8050 = vmatmul.mubr.msk.bf16.gmra.mxu0 %vm321_vm0, %v9950_v54  ;;  %8114 = vmatmul.mubr.msk.bf16.gmra.mxu1 %vm321_vm0, %v9952_v55 }
  0x73   :  { %8053 = vmatprep.mubr.msk.bf16.mxu0 %vm321_vm0, %v9954_v56  ;;  %8117 = vmatprep.mubr.msk.bf16.mxu1 %vm321_vm0, %v9956_v58 }
  0x7a   :  { %8054 = vmatmul.mubr.msk.bf16.gmra.mxu0 %vm321_vm0, %v9975_v4  ;;  %8118 = vmatmul.mubr.msk.bf16.gmra.mxu1 %vm321_vm0, %v9977_v23 }
  0x7b   :  { %8121 = vmatprep.mubr.msk.bf16.mxu1 %vm321_vm0, %v9979_v33  ;;  %8145 = vmatprep.mubr.msk.bf16.mxu0 %vm321_vm0, %v9689_v63  ;;  %v102_v63 = vld [vmem:[%s12448_s0 + $0xfc] sm:$0xf] }
  0x7c   :  { %v10007_v22 = vcombine.low %v102_v63, %v9505_v6  ;;  %v12460_v6 = vmov 0.0  }
  0x7d   :  { %8281 = vmatprep.subr.bf16.mxu0 %v12460_v6  ;;  %8317 = vmatprep.subr.bf16.mxu1 %v12460_v6 }
  0x82   :  { %8122 = vmatmul.mubr.msk.bf16.gmra.mxu1 %vm321_vm0, %v9989_v37  ;;  %8146 = vmatmul.mubr.msk.bf16.vlgmr.msra.gmra.mxu0 %vm321_vm0, %v9716_v7  ;;  %v9136_v7 = vld [vmem:[%s12449_s3 + $0x78] sm:$0xff]  }
  0x83   :  { %8125 = vmatprep.mubr.msk.bf16.mxu1 %vm321_vm0, %v9991_v2  ;;  %8149 = vmatprep.mubr.msk.bf16.mxu0 %vm321_vm0, %v9720_v11  ;;  %v9137_v11 = vld [vmem:[%s12449_s3 + $0x38] sm:$0xff]  }
  0x84   :  { %8282 = vmatpush3.bf16.msra.mxu0 %v9136_v7 }
  0x85   :  { %8283 = vmatprep.subr.bf16.mxu0 %v12460_v6 }
  0x8a   :  { %8126 = vmatmul.mubr.msk.bf16.gmra.mxu1 %vm321_vm0, %v10004_v12  ;;  %8150 = vmatmul.mubr.msk.bf16.gmra.mxu0 %vm321_vm0, %v9747_v18 }
  0x8b   :  { %8129 = vmatprep.mubr.msk.bf16.mxu1 %vm321_vm0, %v10007_v22  ;;  %8153 = vmatprep.mubr.msk.bf16.mxu0 %vm321_vm0, %v9751_v20 }
  0x92   :  { %8130 = vmatmul.mubr.msk.bf16.gmra.mxu1 %vm321_vm0, %v9516_v10  ;;  %8154 = vmatmul.mubr.msk.bf16.gmra.mxu0 %vm321_vm0, %v9775_v29 }
  0x93   :  { %8133 = vmatprep.mubr.msk.bf16.mxu1 %vm321_vm0, %v9576_v27  ;;  %8157 = vmatprep.mubr.msk.bf16.mxu0 %vm321_vm0, %v9779_v32 }
  0x9a   :  { %8134 = vmatmul.mubr.msk.bf16.gmra.mxu1 %vm321_vm0, %v9590_v31  ;;  %8158 = vmatmul.mubr.msk.bf16.gmra.mxu0 %vm321_vm0, %v9806_v41 }
  0x9b   :  { %8161 = vmatprep.mubr.msk.bf16.mxu0 %vm321_vm0, %v9810_v43  ;;  %8217 = vmatprep.mubr.msk.bf16.mxu1 %vm321_vm0, %v9612_v38  ;;  %v9138_v38 = vld [vmem:[%s12449_s3 + $0x70] sm:$0xff]   ;;  %v9145_v43 = vld [vmem:[%s12449_s3 + $0x18] sm:$0xff]  }
  0x9c   :  { %8284 = vmatpush3.bf16.msra.mxu0 %v9138_v38  ;;  %v9151_v38 = vld [vmem:[%s12449_s3 + $0x40] sm:$0xff]  }
  0x9d   :  { %8285 = vmatprep.subr.bf16.mxu0 %v12460_v6 }
  0xa2   :  { %8162 = vmatmul.mubr.msk.bf16.gmra.mxu0 %vm321_vm0, %v9834_v51  ;;  %8218 = vmatmul.mubr.msk.bf16.vlgmr.msra.gmra.mxu1 %vm321_vm0, %v9644_v48  ;;  %v9139_v48 = vld [vmem:[%s12449_s3 + $0x30] sm:$0xff]  }
  0xa3   :  { %8165 = vmatprep.mubr.msk.bf16.mxu0 %vm321_vm0, %v9838_v53  ;;  %8221 = vmatprep.mubr.msk.bf16.mxu1 %vm321_vm0, %v9646_v49  ;;  %v9140_v49 = vld [vmem:[%s12449_s3 + $0x68] sm:$0xff]  }
  0xa4   :  { %8318 = vmatpush3.bf16.msra.mxu1 %v9137_v11  ;;  %8286 = vmatpush3.bf16.msra.mxu0 %v9140_v49 }
  0xa5   :  { %8319 = vmatprep.subr.bf16.mxu1 %v12460_v6  ;;  %8287 = vmatprep.subr.bf16.mxu0 %v12460_v6 }
  0xa8   :  { %8320 = vmatpush3.bf16.msra.mxu1 %v9139_v48 }
  0xa9   :  { %8321 = vmatprep.subr.bf16.mxu1 %v12460_v6 }
  0xaa   :  { %8166 = vmatmul.mubr.msk.bf16.gmra.mxu0 %vm321_vm0, %v9865_v61  ;;  %8222 = vmatmul.mubr.msk.bf16.gmra.mxu1 %vm321_vm0, %v9680_v59  ;;  %v9141_v59 = vld [vmem:[%s12449_s3 + $0x28] sm:$0xff]  }
  0xab   :  { %8169 = vmatprep.mubr.msk.bf16.mxu0 %vm321_vm0, %v9869_v1  ;;  %8225 = vmatprep.mubr.msk.bf16.mxu1 %vm321_vm0, %v9687_v62  ;;  %v9142_v62 = vld [vmem:[%s12449_s3 + $0x60] sm:$0xff]  }
  0xac   :  { %8322 = vmatpush3.bf16.msra.mxu1 %v9141_v59  ;;  %8288 = vmatpush3.bf16.msra.mxu0 %v9142_v62  ;;  %v111_v1 = vld [vmem:[%s12448_s0 + $0x120] sm:$0xf] }
  0xad   :  { %8323 = vmatprep.subr.bf16.mxu1 %v12460_v6  ;;  %8289 = vmatprep.subr.bf16.mxu0 %v12460_v6 }
  0xb2   :  { %8170 = vmatmul.mubr.msk.bf16.gmra.mxu0 %vm321_vm0, %v9893_v14  ;;  %8226 = vmatmul.mubr.msk.bf16.gmra.mxu1 %vm321_vm0, %v9713_v5  ;;  %v9143_v5 = vld [vmem:[%s12449_s3 + $0x20] sm:$0xff]  }
  0xb3   :  { %8173 = vmatprep.mubr.msk.bf16.mxu0 %vm321_vm0, %v9897_v16  ;;  %8229 = vmatprep.mubr.msk.bf16.mxu1 %vm321_vm0, %v9718_v8 }
  0xb4   :  { %8324 = vmatpush3.bf16.msra.mxu1 %v9143_v5 }
  0xb5   :  { %8325 = vmatprep.subr.bf16.mxu1 %v12460_v6 }
  0xb8   :  { %8326 = vmatpush3.bf16.msra.mxu1 %v9145_v43 }
  0xb9   :  { %8327 = vmatprep.subr.bf16.mxu1 %v12460_v6 }
  0xba   :  { %8174 = vmatmul.mubr.msk.bf16.gmra.mxu0 %vm321_vm0, %v9924_v35  ;;  %8230 = vmatmul.mubr.msk.bf16.gmra.mxu1 %vm321_vm0, %v9745_v17 }
  0xbb   :  { %8177 = vmatprep.mubr.msk.bf16.mxu0 %vm321_vm0, %v9928_v39  ;;  %8233 = vmatprep.mubr.msk.bf16.mxu1 %vm321_vm0, %v9749_v19 }
  0xc2   :  { %8178 = vmatmul.mubr.msk.bf16.gmra.mxu0 %vm321_vm0, %v9952_v55  ;;  %8234 = vmatmul.mubr.msk.bf16.gmra.mxu1 %vm321_vm0, %v9773_v28  ;;  %v10198_v55 = vld [vmem:[%s12448_s0 + $0x128] sm:$0xf] }
  0xc3   :  { %8181 = vmatprep.mubr.msk.bf16.mxu0 %vm321_vm0, %v9956_v58  ;;  %8237 = vmatprep.mubr.msk.bf16.mxu1 %vm321_vm0, %v9777_v30  ;;  %v10203_v58 = vld [vmem:[%s12448_s0 + $0x12c] sm:$0xf] }
  0xca   :  { %8182 = vmatmul.mubr.msk.bf16.gmra.mxu0 %vm321_vm0, %v9977_v23  ;;  %8238 = vmatmul.mubr.msk.bf16.gmra.mxu1 %vm321_vm0, %v9804_v40  ;;  %v9144_v40 = vld [vmem:[%s12449_s3 + $0x58] sm:$0xff]   ;;  %v10213_v23 = vld [vmem:[%s12448_s0 + $0x130] sm:$0xf] }
  0xcb   :  { %8185 = vmatprep.mubr.msk.bf16.mxu0 %vm321_vm0, %v9979_v33  ;;  %8241 = vmatprep.mubr.msk.bf16.mxu1 %vm321_vm0, %v9808_v42  ;;  %v9149_v33 = vld [vmem:[%s12449_s3 + $0x48] sm:$0xff]  }
  0xcc   :  { %8290 = vmatpush3.bf16.msra.mxu0 %v9144_v40 }
  0xcd   :  { %8291 = vmatprep.subr.bf16.mxu0 %v12460_v6 }
  0xd0   :  { %8292 = vmatpush3.bf16.msra.mxu0 %v9147_v26 }
  0xd1   :  { %8293 = vmatprep.subr.bf16.mxu0 %v12460_v6 }
  0xd2   :  { %v8003_v8 = vpop.f32.mrf.mxu0  ;;  %v10115_v17 = vpop.f32.mrf.mxu1  ;;  %8186 = vmatmul.mubr.msk.bf16.gmra.mxu0 %vm321_vm0, %v9989_v37  ;;  %8242 = vmatmul.mubr.msk.bf16.gmra.mxu1 %vm321_vm0, %v9832_v50 }
  0xd3   :  { %12465 = vst [vmem:[#allocation3_spill] sm:$0xff] %v10115_v17  ;;  %8189 = vmatprep.mubr.msk.bf16.mxu0 %vm321_vm0, %v9991_v2  ;;  %8245 = vmatprep.mubr.msk.bf16.mxu1 %vm321_vm0, %v9836_v52  ;;  %v9150_v2 = vld [vmem:[%s12449_s3] sm:$0xff]  }
  0xd4   :  { %v452_v18 = vpop.f32.mrf.mxu0  ;;  %v10125_v19 = vpop.f32.mrf.mxu1  ;;  %8294 = vmatpush3.bf16.msra.mxu0 %v9149_v33 }
  0xd5   :  { %12466 = vst [vmem:[#allocation4_spill] sm:$0xff] %v10125_v19  ;;  %8295 = vmatprep.subr.bf16.mxu0 %v12460_v6 }
  0xd6   :  { %v8004_v20 = vpop.f32.mrf.mxu0  ;;  %v10127_v28 = vpop.f32.mrf.mxu1 }
  0xd7   :  { %12467 = vst [vmem:[#allocation5_spill] sm:$0xff] %v10127_v28 }
  0xd8   :  { %v455_v29 = vpop.f32.mrf.mxu0  ;;  %v10129_v30 = vpop.f32.mrf.mxu1  ;;  %8296 = vmatpush3.bf16.msra.mxu0 %v9151_v38 }
  0xd9   :  { %12468 = vst [vmem:[#allocation6_spill] sm:$0xff] %v10129_v30  ;;  %8353 = vmatprep.subr.bf16.mxu0 %v12460_v6 }
  0xda   :  { %v8007_v32 = vpop.f32.mrf.mxu0  ;;  %v10131_v37 = vpop.f32.mrf.mxu1  ;;  %8190 = vmatmul.mubr.msk.bf16.gmra.mxu0 %vm321_vm0, %v10004_v12  ;;  %8246 = vmatmul.mubr.msk.bf16.gmra.mxu1 %vm321_vm0, %v9863_v60  ;;  %v9146_v60 = vld [vmem:[%s12449_s3 + $0x10] sm:$0xff]  }
  0xdb   :  { %12469 = vst [vmem:[#allocation7_spill] sm:$0xff] %v10131_v37  ;;  %8193 = vmatprep.mubr.msk.bf16.mxu0 %vm321_vm0, %v10007_v22  ;;  %8249 = vmatprep.mubr.msk.bf16.mxu1 %vm321_vm0, %v9867_v0 }
  0xdc   :  { %v468_v41 = vpop.f32.mrf.mxu0  ;;  %v10144_v42 = vpop.f32.mrf.mxu1  ;;  %8328 = vmatpush3.bf16.msra.mxu1 %v9146_v60 }
  0xdd   :  { %12470 = vst [vmem:[#allocation8_spill] sm:$0xff] %v10144_v42  ;;  %8329 = vmatprep.subr.bf16.mxu1 %v12460_v6 }
  0xde   :  { %v8008_v50 = vpop.f32.mrf.mxu0  ;;  %v10149_v51 = vpop.f32.mrf.mxu1 }
  0xdf   :  { %12471 = vst [vmem:[#allocation9_spill] sm:$0xff] %v10149_v51 }
  0xe0   :  { %v471_v52 = vpop.f32.mrf.mxu0  ;;  %v10152_v53 = vpop.f32.mrf.mxu1 }
  0xe1   :  { %12472 = vst [vmem:[#allocation10_spill] sm:$0xff] %v10152_v53 }
  0xe2   :  { %v10158_v61 = vpop.f32.mrf.mxu0  ;;  %v8075_v0 = vpop.f32.mrf.mxu1  ;;  %8194 = vmatmul.mubr.msk.bf16.gmra.mxu0 %vm321_vm0, %v9516_v10  ;;  %8250 = vmatmul.mubr.msk.bf16.gmra.mxu1 %vm321_vm0, %v9891_v13  ;;  %v10176_v10 = vld [vmem:[%s12448_s0 + $0x124] sm:$0xf] }
  0xe3   :  { %v10167_v14 = vadd.f32 %v8075_v0, %v8003_v8  ;;  %8197 = vmatprep.mubr.msk.bf16.mxu0 %vm321_vm0, %v9576_v27  ;;  %8253 = vmatprep.mubr.msk.bf16.mxu1 %vm321_vm0, %v9895_v15  ;;  %v9148_v27 = vld [vmem:[%s12449_s3 + $0x8] sm:$0xff]   ;;  %v6646_v44 = vcombine.low %v111_v1, %v10176_v10  ;;  %v10251_v8 = vld [vmem:[%s12448_s0 + $0x138] sm:$0xf] }
  0xe4   :  { %v484_v16 = vpop.f32.mrf.mxu0  ;;  %v909_v25 = vpop.f32.mrf.mxu1  ;;  %8330 = vmatpush3.bf16.msra.mxu1 %v9148_v27 }
  0xe5   :  { %v10178_v13 = vadd.f32 %v909_v25, %v452_v18  ;;  %8331 = vmatprep.subr.bf16.mxu1 %v12460_v6  ;;  %v10256_v18 = vld [vmem:[%s12448_s0 + $0x13c] sm:$0xf] }
  0xe6   :  { %v8012_v15 = vpop.f32.mrf.mxu0  ;;  %v8076_v35 = vpop.f32.mrf.mxu1  ;;  %v6649_v60 = vcombine.low %v10251_v8, %v10256_v18 }
  0xe7   :  { %v10187_v39 = vadd.f32 %v8076_v35, %v8004_v20 }
  0xe8   :  { %v10190_v45 = vpop.f32.mrf.mxu0  ;;  %v912_v46 = vpop.f32.mrf.mxu1  ;;  %8332 = vmatpush3.bf16.msra.mxu1 %v9150_v2 }
  0xe9   :  { %v10193_v47 = vadd.f32 %v912_v46, %v455_v29  ;;  %8389 = vmatprep.subr.bf16.mxu1 %v12460_v6 }
  0xea   :  { %v8015_v57 = vpop.f32.mrf.mxu0  ;;  %v8079_v3 = vpop.f32.mrf.mxu1  ;;  %8198 = vmatmul.mubr.msk.bf16.gmra.mxu0 %vm321_vm0, %v9590_v31  ;;  %8254 = vmatmul.mubr.msk.bf16.gmra.mxu1 %vm321_vm0, %v9922_v34  ;;  %v10229_v31 = vld [vmem:[%s12448_s0 + $0x134] sm:$0xf] }
  0xeb   :  { %v10221_v63 = vadd.f32 %v8079_v3, %v8007_v32  ;;  %8201 = vmatprep.mubr.msk.bf16.mxu0 %vm321_vm0, %v6646_v44  ;;  %8257 = vmatprep.mubr.msk.bf16.mxu1 %vm321_vm0, %v9926_v36  ;;  %v6647_v36 = vcombine.low %v10198_v55, %v10203_v58  ;;  %v6648_v49 = vcombine.low %v10213_v23, %v10229_v31 }
  0xec   :  { %v500_v34 = vpop.f32.mrf.mxu0  ;;  %v925_v12 = vpop.f32.mrf.mxu1 }
  0xed   :  { %v10231_v22 = vadd.f32 %v925_v12, %v468_v41 }
  0xee   :  { %v8016_v7 = vpop.f32.mrf.mxu0  ;;  %v8080_v11 = vpop.f32.mrf.mxu1 }
  0xef   :  { %v10240_v48 = vadd.f32 %v8080_v11, %v8008_v50 }
  0xf0   :  { %v10244_v59 = vpop.f32.mrf.mxu0  ;;  %v928_v62 = vpop.f32.mrf.mxu1 }
  0xf1   :  { %v10246_v5 = vadd.f32 %v928_v62, %v471_v52 }
  0xf2   :  { %v8019_v20 = vpop.f32.mrf.mxu0  ;;  %v8083_v29 = vpop.f32.mrf.mxu1  ;;  %8202 = vmatmul.mubr.msk.bf16.gmra.mxu0 %vm321_vm0, %v6647_v36  ;;  %8258 = vmatmul.mubr.msk.bf16.gmra.mxu1 %vm321_vm0, %v9950_v54  ;;  %v6694_v36 = vcombine.low %v10176_v10, %v10198_v55  ;;  %v6695_v10 = vcombine.low %v10203_v58, %v10213_v23  ;;  %v119_v58 = vld [vmem:[%s12448_s0 + $0x140] sm:$0xf] }
  0xf3   :  { %v10263_v32 = vadd.f32 %v8083_v29, %v10158_v61  ;;  %8205 = vmatprep.mubr.msk.bf16.mxu0 %vm321_vm0, %v6648_v49  ;;  %8261 = vmatprep.mubr.msk.bf16.mxu1 %vm321_vm0, %v9954_v56 }
  0xf4   :  { %v516_v40 = vpop.f32.mrf.mxu0  ;;  %v941_v41 = vpop.f32.mrf.mxu1 }
  0xf5   :  { %v10268_v43 = vadd.f32 %v941_v41, %v484_v16 }
  0xf6   :  { %v8020_v50 = vpop.f32.mrf.mxu0  ;;  %v8084_v52 = vpop.f32.mrf.mxu1 }
  0xf7   :  { %v10272_v0 = vadd.f32 %v8084_v52, %v8012_v15 }
  0xf8   :  { %v10274_v54 = vpop.f32.mrf.mxu0  ;;  %v10276_v61 = vpop.f32.mrf.mxu1 }
  0xfa   :  { %v8023_v1 = vpop.f32.mrf.mxu0  ;;  %v8087_v25 = vpop.f32.mrf.mxu1  ;;  %8206 = vmatmul.mubr.msk.bf16.gmra.mxu0 %vm321_vm0, %v6649_v60  ;;  %8262 = vmatmul.mubr.msk.bf16.gmra.mxu1 %vm321_vm0, %v9975_v4  ;;  %v6696_v60 = vcombine.low %v10229_v31, %v10251_v8 }
  0xfb   :  { %v10281_v56 = vadd.f32 %v8087_v25, %v8015_v57  ;;  %8265 = vmatprep.mubr.msk.bf16.mxu1 %vm321_vm0, %v9514_v9  ;;  %8297 = vmatprep.mubr.msk.bf16.mxu0 %vm9419_vm1, %v12460_v6 }
  0xfc   :  { %v532_v16 = vpop.f32.mrf.mxu0  ;;  %v957_v26 = vpop.f32.mrf.mxu1 }
  0xfd   :  { %v10287_v27 = vadd.f32 %v957_v26, %v500_v34 }
  0xfe   :  { %v8024_v15 = vpop.f32.mrf.mxu0  ;;  %v8088_v35 = vpop.f32.mrf.mxu1 }
  0xff   :  { %v10289_v44 = vadd.f32 %v8088_v35, %v8016_v7 }
 0x100   :  { %v10291_v46 = vpop.f32.mrf.mxu0  ;;  %v10293_v4 = vpop.f32.mrf.mxu1 }
 0x102   :  { %v8027_v57 = vpop.f32.mrf.mxu0  ;;  %v8091_v3 = vpop.f32.mrf.mxu1  ;;  %8266 = vmatmul.mubr.msk.bf16.gmra.mxu1 %vm321_vm0, %v9558_v21 }
 0x103   :  { %v10297_v9 = vadd.f32 %v8091_v3, %v8019_v20  ;;  %8269 = vmatprep.mubr.msk.bf16.mxu1 %vm321_vm0, %v9565_v24  ;;  %v12473_v20 = vld [vmem:[#allocation2_spill] sm:$0xff] }
 0x104   :  { %v548_v33 = vpop.f32.mrf.mxu0  ;;  %v973_v2 = vpop.f32.mrf.mxu1 }
 0x105   :  { %v10301_v34 = vadd.f32 %v973_v2, %v516_v40  ;;  %v6697_v2 = vcombine.low %v10256_v18, %v119_v58 }
 0x106   :  { %v8028_v12 = vpop.f32.mrf.mxu0  ;;  %v8092_v7 = vpop.f32.mrf.mxu1 }
 0x107   :  { %v10303_v11 = vadd.f32 %v8092_v7, %v8020_v50 }
 0x108   :  { %v10307_v38 = vpop.f32.mrf.mxu0  ;;  %v10309_v49 = vpop.f32.mrf.mxu1 }
 0x10a   :  { %v8031_v21 = vpop.f32.mrf.mxu0  ;;  %v8095_v62 = vpop.f32.mrf.mxu1  ;;  %8270 = vmatmul.mubr.msk.bf16.gmra.mxu1 %vm321_vm0, %v12473_v20 }
 0x10b   :  { %v10313_v24 = vadd.f32 %v8095_v62, %v8023_v1  ;;  %8273 = vmatprep.mubr.msk.bf16.mxu1 %vm321_vm0, %v6694_v36 }
 0x10c   :  { %v564_v29 = vpop.f32.mrf.mxu0  ;;  %v989_v40 = vpop.f32.mrf.mxu1 }
 0x10d   :  { %v10316_v41 = vadd.f32 %v989_v40, %v532_v16 }
 0x10e   :  { %v8032_v55 = vpop.f32.mrf.mxu0  ;;  %v8096_v50 = vpop.f32.mrf.mxu1 }
 0x10f   :  { %v10320_v52 = vadd.f32 %v8096_v50, %v8024_v15 }
 0x110   :  { %v10324_v25 = vpop.f32.mrf.mxu0  ;;  %v10326_v1 = vpop.f32.mrf.mxu1 }
 0x111   :  { %12474 = vst [vmem:[#allocation2_spill] sm:$0xff] %v10324_v25 }
 0x112   :  { %v8035_v26 = vpop.f32.mrf.mxu0  ;;  %v8099_v35 = vpop.f32.mrf.mxu1  ;;  %8274 = vmatmul.mubr.msk.bf16.gmra.mxu1 %vm321_vm0, %v6695_v10 }
 0x113   :  { %v10329_v16 = vadd.f32 %v8099_v35, %v8027_v57  ;;  %8277 = vmatprep.mubr.msk.bf16.mxu1 %vm321_vm0, %v6696_v60 }
 0x114   :  { %v580_v23 = vpop.f32.mrf.mxu0  ;;  %v1005_v15 = vpop.f32.mrf.mxu1 }
 0x115   :  { %v10335_v3 = vadd.f32 %v1005_v15, %v548_v33 }
 0x116   :  { %v8036_v31 = vpop.f32.mrf.mxu0  ;;  %v8100_v8 = vpop.f32.mrf.mxu1 }
 0x117   :  { %v10338_v7 = vadd.f32 %v8100_v8, %v8028_v12 }
 0x118   :  { %v10340_v36 = vpop.f32.mrf.mxu0  ;;  %v10342_v57 = vpop.f32.mrf.mxu1 }
 0x11a   :  { %v8039_v62 = vpop.f32.mrf.mxu0  ;;  %v8103_v20 = vpop.f32.mrf.mxu1  ;;  %8278 = vmatmul.mubr.msk.bf16.gmra.mxu1 %vm321_vm0, %v6697_v2 }
 0x11b   :  { %v10345_v40 = vadd.f32 %v8103_v20, %v8031_v21  ;;  %8333 = vmatprep.mubr.msk.bf16.mxu1 %vm9419_vm1, %v12460_v6 }
 0x11c   :  { %v596_v33 = vpop.f32.mrf.mxu0  ;;  %v1021_v10 = vpop.f32.mrf.mxu1 }
 0x11d   :  { %v10349_v50 = vadd.f32 %v1021_v10, %v564_v29 }
 0x11e   :  { %v8040_v18 = vpop.f32.mrf.mxu0  ;;  %v8104_v12 = vpop.f32.mrf.mxu1 }
 0x11f   :  { %v10351_v60 = vadd.f32 %v8104_v12, %v8032_v55 }
 0x120   :  { %v10353_v35 = vpop.f32.mrf.mxu0  ;;  %v10355_v58 = vpop.f32.mrf.mxu1 }
 0x121   :  { %12475 = vst [vmem:[#allocation11_spill] sm:$0xff] %v10353_v35  ;;  %12476 = vst [vmem:[#allocation12_spill] sm:$0xff] %v10355_v58 }
 0x122   :  { %v8043_v15 = vpop.f32.mrf.mxu0  ;;  %v8107_v8 = vpop.f32.mrf.mxu1 }
 0x123   :  { %v10357_v2 = vadd.f32 %v8107_v8, %v8035_v26 }
 0x124   :  { %v612_v21 = vpop.f32.mrf.mxu0  ;;  %v1037_v20 = vpop.f32.mrf.mxu1 }
 0x125   :  { %v10359_v53 = vadd.f32 %v1037_v20, %v580_v23 }
 0x126   :  { %v8044_v6 = vpop.f32.mrf.mxu0  ;;  %v8108_v30 = vpop.f32.mrf.mxu1 }
 0x127   :  { %v10361_v29 = vadd.f32 %v8108_v30, %v8036_v31 }
 0x128   :  { %v10363_v10 = vpop.f32.mrf.mxu0  ;;  %v10365_v55 = vpop.f32.mrf.mxu1 }
 0x129   :  { %12477 = vst [vmem:[#allocation13_spill] sm:$0xff] %v10361_v29  ;;  %12478 = vst [vmem:[#allocation14_spill] sm:$0xff] %v10363_v10 }
 0x12a   :  { %v8047_v12 = vpop.f32.mrf.mxu0  ;;  %v8111_v51 = vpop.f32.mrf.mxu1 }
 0x12b   :  { %v10367_v42 = vadd.f32 %v8111_v51, %v8039_v62 }
 0x12c   :  { %v628_v37 = vpop.f32.mrf.mxu0  ;;  %v1053_v28 = vpop.f32.mrf.mxu1 }
 0x12d   :  { %12479 = vst [vmem:[#allocation15_spill] sm:$0xff] %v10367_v42  ;;  %v10369_v26 = vadd.f32 %v1053_v28, %v596_v33 }
 0x12e   :  { %v8048_v8 = vpop.f32.mrf.mxu0  ;;  %v8112_v19 = vpop.f32.mrf.mxu1 }
 0x12f   :  { %12480 = vst [vmem:[#allocation16_spill] sm:$0xff] %v10369_v26  ;;  %v10371_v23 = vadd.f32 %v8112_v19, %v8040_v18 }
 0x130   :  { %v10373_v20 = vpop.f32.mrf.mxu0  ;;  %v10375_v30 = vpop.f32.mrf.mxu1 }
 0x131   :  { %12481 = vst [vmem:[#allocation17_spill] sm:$0xff] %v10371_v23  ;;  %12482 = vst [vmem:[#allocation18_spill] sm:$0xff] %v10373_v20 }
 0x132   :  { %12483 = vst [vmem:[#allocation19_spill] sm:$0xff] %v10375_v30  ;;  %v8051_v31 = vpop.f32.mrf.mxu0  ;;  %v8115_v17 = vpop.f32.mrf.mxu1 }
 0x133   :  { %v10377_v10 = vadd.f32 %v8115_v17, %v8043_v15 }
 0x134   :  { %v644_v35 = vpop.f32.mrf.mxu0  ;;  %v1069_v58 = vpop.f32.mrf.mxu1 }
 0x135   :  { %12484 = vst [vmem:[#allocation20_spill] sm:$0xff] %v10377_v10  ;;  %v10379_v51 = vadd.f32 %v1069_v58, %v612_v21 }
 0x136   :  { %v8052_v62 = vpop.f32.mrf.mxu0  ;;  %v8116_v42 = vpop.f32.mrf.mxu1 }
 0x137   :  { %12485 = vst [vmem:[#allocation21_spill] sm:$0xff] %v10379_v51  ;;  %v10381_v28 = vadd.f32 %v8116_v42, %v8044_v6 }
 0x138   :  { %v10383_v33 = vpop.f32.mrf.mxu0  ;;  %v10385_v19 = vpop.f32.mrf.mxu1 }
 0x139   :  { %12486 = vst [vmem:[#allocation22_spill] sm:$0xff] %v10381_v28  ;;  %12487 = vst [vmem:[#allocation23_spill] sm:$0xff] %v10383_v33 }
 0x13a   :  { %12488 = vst [vmem:[#allocation24_spill] sm:$0xff] %v10385_v19  ;;  %v8055_v18 = vpop.f32.mrf.mxu0  ;;  %v8119_v20 = vpop.f32.mrf.mxu1 }
 0x13b   :  { %v10387_v23 = vadd.f32 %v8119_v20, %v8047_v12 }
 0x13c   :  { %v660_v26 = vpop.f32.mrf.mxu0  ;;  %v1085_v30 = vpop.f32.mrf.mxu1 }
 0x13d   :  { %12489 = vst [vmem:[#allocation25_spill] sm:$0xff] %v10387_v23  ;;  %v10389_v17 = vadd.f32 %v1085_v30, %v628_v37 }
 0x13e   :  { %v8056_v15 = vpop.f32.mrf.mxu0  ;;  %v8120_v10 = vpop.f32.mrf.mxu1 }
 0x13f   :  { %12490 = vst [vmem:[#allocation26_spill] sm:$0xff] %v10389_v17  ;;  %v10391_v58 = vadd.f32 %v8120_v10, %v8048_v8 }
 0x140   :  { %v10393_v21 = vpop.f32.mrf.mxu0  ;;  %v10395_v6 = vpop.f32.mrf.mxu1 }
 0x141   :  { %12491 = vst [vmem:[#allocation27_spill] sm:$0xff] %v10391_v58  ;;  %12492 = vst [vmem:[#allocation28_spill] sm:$0xff] %v10393_v21 }
 0x142   :  { %12493 = vst [vmem:[#allocation29_spill] sm:$0xff] %v10395_v6  ;;  %v8123_v42 = vpop.f32.mrf.mxu1  ;;  %v8147_v33 = vpop.f32.mrf.mxu0 }
 0x143   :  { %v10397_v28 = vadd.f32 %v8123_v42, %v8051_v31 }
 0x144   :  { %v1101_v51 = vpop.f32.mrf.mxu1  ;;  %v1263_v19 = vpop.f32.mrf.mxu0 }
 0x145   :  { %12494 = vst [vmem:[#allocation30_spill] sm:$0xff] %v10397_v28  ;;  %v10399_v12 = vadd.f32 %v1101_v51, %v644_v35 }
 0x146   :  { %v8124_v20 = vpop.f32.mrf.mxu1  ;;  %v8148_v23 = vpop.f32.mrf.mxu0 }
 0x147   :  { %12495 = vst [vmem:[#allocation31_spill] sm:$0xff] %v10399_v12  ;;  %v10401_v37 = vadd.f32 %v8124_v20, %v8052_v62 }
 0x148   :  { %v10403_v30 = vpop.f32.mrf.mxu1  ;;  %v1266_v10 = vpop.f32.mrf.mxu0 }
 0x149   :  { %12496 = vst [vmem:[#allocation32_spill] sm:$0xff] %v10401_v37  ;;  %12497 = vst [vmem:[#allocation33_spill] sm:$0xff] %v10403_v30  ;;  %v1519_v25 = vadd.f32 %v1266_v10, %v10193_v47 }
 0x14a   :  { %v8127_v8 = vpop.f32.mrf.mxu1  ;;  %v8151_v58 = vpop.f32.mrf.mxu0 }
 0x14b   :  { %v10405_v21 = vadd.f32 %v8127_v8, %v8055_v18  ;;  %v1524_v17 = vadd.f32 %v8151_v58, %v10221_v63 }
 0x14c   :  { %v1117_v6 = vpop.f32.mrf.mxu1  ;;  %v1279_v31 = vpop.f32.mrf.mxu0 }
 0x14d   :  { %12498 = vst [vmem:[#allocation34_spill] sm:$0xff] %v10405_v21  ;;  %v10408_v42 = vadd.f32 %v1117_v6, %v660_v26  ;;  %v1522_v47 = vadd.f32 %v1279_v31, %v10231_v22  ;;  %v12510_v22 = vmov 0.0   ;;  %v9155_v31 = vld [vmem:[%s12449_s3 + $0xf0] sm:$0xff]  }
 0x14e   :  { %v8128_v28 = vpop.f32.mrf.mxu1  ;;  %v8152_v35 = vpop.f32.mrf.mxu0 }
 0x14f   :  { %12499 = vst [vmem:[#allocation35_spill] sm:$0xff] %v10408_v42  ;;  %v10410_v51 = vadd.f32 %v8128_v28, %v8056_v15  ;;  %v10413_v62 = vadd.f32 %v8152_v35, %v10240_v48 }
 0x150   :  { %v10415_v20 = vpop.f32.mrf.mxu1  ;;  %v10417_v37 = vpop.f32.mrf.mxu0 }
 0x151   :  { %12500 = vst [vmem:[#allocation36_spill] sm:$0xff] %v10410_v51  ;;  %12501 = vst [vmem:[#allocation37_spill] sm:$0xff] %v10415_v20 }
 0x152   :  { %v10419_v30 = vpop.f32.mrf.mxu1  ;;  %v8155_v18 = vpop.f32.mrf.mxu0 }
 0x153   :  { %12502 = vst [vmem:[#allocation38_spill] sm:$0xff] %v10419_v30  ;;  %v10422_v63 = vadd.f32 %v8155_v18, %v10263_v32 }
 0x154   :  { %v10424_v58 = vpop.f32.mrf.mxu1  ;;  %v1295_v26 = vpop.f32.mrf.mxu0 }
 0x155   :  { %12503 = vst [vmem:[#allocation39_spill] sm:$0xff] %v10424_v58  ;;  %v10427_v6 = vadd.f32 %v1295_v26, %v10268_v43 }
 0x156   :  { %v10429_v28 = vpop.f32.mrf.mxu1  ;;  %v8156_v48 = vpop.f32.mrf.mxu0 }
 0x157   :  { %12504 = vst [vmem:[#allocation40_spill] sm:$0xff] %v10429_v28  ;;  %v10432_v15 = vadd.f32 %v8156_v48, %v10272_v0 }
 0x158   :  { %v10434_v8 = vpop.f32.mrf.mxu1  ;;  %v10436_v35 = vpop.f32.mrf.mxu0 }
 0x159   :  { %12505 = vst [vmem:[#allocation41_spill] sm:$0xff] %v10434_v8 }
 0x15a   :  { %v10438_v20 = vpop.f32.mrf.mxu1  ;;  %v8159_v32 = vpop.f32.mrf.mxu0 }
 0x15b   :  { %12506 = vst [vmem:[#allocation42_spill] sm:$0xff] %v10438_v20  ;;  %v10441_v18 = vadd.f32 %v8159_v32, %v10281_v56  ;;  %v1520_v20 = vadd.f32 %v8147_v33, %v10167_v14 }
 0x15c   :  { %v10443_v42 = vpop.f32.mrf.mxu1  ;;  %v1311_v43 = vpop.f32.mrf.mxu0 }
 0x15d   :  { %12507 = vst [vmem:[#allocation43_spill] sm:$0xff] %v10443_v42  ;;  %v10446_v26 = vadd.f32 %v1311_v43, %v10287_v27  ;;  %v10463_v27 = vld [vmem:[%s12450_s2] ss:$0 sm:$0xff]  ;;  %v1518_v43 = vadd.f32 %v1263_v19, %v10178_v13 }
 0x15e   :  { %v10448_v12 = vpop.f32.mrf.mxu1  ;;  %v8160_v0 = vpop.f32.mrf.mxu0 }
 0x15f   :  { %12508 = vst [vmem:[#allocation44_spill] sm:$0xff] %v10448_v12  ;;  %v10451_v48 = vadd.f32 %v8160_v0, %v10289_v44  ;;  %v1521_v0 = vadd.f32 %v8148_v23, %v10187_v39 }
 0x160   :  { %v10453_v8 = vpop.f32.mrf.mxu1  ;;  %v10455_v28 = vpop.f32.mrf.mxu0 }
 0x161   :  { %12509 = vst [vmem:[#allocation45_spill] sm:$0xff] %v10453_v8 }
 0x162   :  { %v10458_v56 = vpop.f32.mrf.mxu0  ;;  %v8219_v32 = vpop.f32.mrf.mxu1 }
 0x163   :  { %v1924_v12 = vadd.f32 %v8219_v32, %v1520_v20 }
 0x164   :  { %v10466_v42 = vpop.f32.mrf.mxu0  ;;  %v1667_v44 = vpop.f32.mrf.mxu1 }
 0x165   :  { %v1995_v8 = vadd.f32 %v10463_v27, %v1924_v12  ;;  %v1922_v51 = vadd.f32 %v1667_v44, %v1518_v43 }
 0x166   :  { %v10470_v14 = vpop.f32.mrf.mxu0  ;;  %v8220_v33 = vpop.f32.mrf.mxu1 }
 0x167   :  { %v2059_v58 = vmax.f32 %v1995_v8, 0.0  ;;  %v1993_v21 = vadd.f32 %v10463_v27, %v1922_v51  ;;  %v1925_v30 = vadd.f32 %v8220_v33, %v1521_v0  ;;  %v9153_v51 = vld [vmem:[%s12449_s3 + $0xf8] sm:$0xff]  }
 0x168   :  { %v10474_v29 = vpop.f32.mrf.mxu0  ;;  %v1670_v13 = vpop.f32.mrf.mxu1 }
 0x169   :  { %v2057_v19 = vmax.f32 %v1993_v21, 0.0  ;;  %v1996_v20 = vadd.f32 %v10463_v27, %v1925_v30  ;;  %v1923_v39 = vadd.f32 %v1670_v13, %v1519_v25  ;;  %v7445_v32 = vpack.c.bf16 %v2059_v58, %v2059_v58 }
 0x16a   :  { %v10477_v23 = vpop.f32.mrf.mxu0  ;;  %v8223_v12 = vpop.f32.mrf.mxu1  ;;  %v1523_v13 = vadd.f32 %v10417_v37, %v10246_v5  ;;  %v9152_v5 = vld [vmem:[%s12449_s3 + $0xb8] sm:$0xff]  }
 0x16b   :  { %v7443_v43 = vpack.c.bf16 %v2057_v19, %v2057_v19  ;;  %v10479_v44 = vadd.f32 %v8223_v12, %v1524_v17  ;;  %v2060_v10 = vmax.f32 %v1996_v20, 0.0  ;;  %v1994_v21 = vadd.f32 %v10463_v27, %v1923_v39 }
 0x16c   :  { %v10486_v8 = vpop.f32.mrf.mxu0  ;;  %v1683_v30 = vpop.f32.mrf.mxu1 }
 0x16d   :  { %v2332_v25 = vsel %vm2329_vm2, %v7443_v43, %v7445_v32  ;;  %v2058_v0 = vmax.f32 %v1994_v21, 0.0  ;;  %v1926_v33 = vadd.f32 %v1683_v30, %v1522_v47  ;;  %v7446_v20 = vpack.c.bf16 %v2060_v10, %v2060_v10 }
 0x16e   :  { %v10489_v58 = vpop.f32.mrf.mxu0  ;;  %v8224_v17 = vpop.f32.mrf.mxu1  ;;  %8334 = vmatmul.mubr.bf16.vlgmr.msra.gmra.mxu1 %v2332_v25 }
 0x16f   :  { %v10494_v19 = vadd.f32 %v8224_v17, %v10413_v62  ;;  %8337 = vmatprep.mubr.msk.bf16.mxu1 %vm9419_vm1, %v12510_v22  ;;  %8390 = vmatpush3.bf16.msra.mxu1 %v9153_v51  ;;  %v7444_v39 = vpack.c.bf16 %v2058_v0, %v2058_v0  ;;  %v1997_v12 = vadd.f32 %v10463_v27, %v1926_v33  ;;  %v9157_v33 = vld [vmem:[%s12449_s3 + $0xe8] sm:$0xff]  }
 0x170   :  { %v10502_v43 = vpop.f32.mrf.mxu0  ;;  %v1686_v47 = vpop.f32.mrf.mxu1  ;;  %8391 = vmatprep.subr.bf16.mxu1 %v12510_v22 }
 0x171   :  { %v1927_v37 = vadd.f32 %v1686_v47, %v1523_v13  ;;  %v2061_v62 = vmax.f32 %v1997_v12, 0.0  ;;  %v2364_v30 = vsel %vm2329_vm2, %v7444_v39, %v7446_v20 }
 0x172   :  { %v8171_v51 = vpop.f32.mrf.mxu0  ;;  %v8227_v21 = vpop.f32.mrf.mxu1  ;;  %8298 = vmatmul.mubr.bf16.vlgmr.msra.gmra.mxu0 %v2364_v30  ;;  %v9159_v30 = vld [vmem:[%s12449_s3 + $0xe0] sm:$0xff]  }
 0x173   :  { %v1998_v10 = vadd.f32 %v10463_v27, %v1927_v37  ;;  %v10511_v25 = vadd.f32 %v8171_v51, %v10329_v16  ;;  %v1932_v0 = vadd.f32 %v8227_v21, %v10422_v63  ;;  %8392 = vmatpush3.bf16.msra.mxu1 %v9155_v31  ;;  %v10517_v17 = vpack.c.bf16 %v2061_v62, %v2061_v62  ;;  %v9154_v16 = vld [vmem:[%s12449_s3 + $0xb0] sm:$0xff]  }
 0x174   :  { %v1359_v13 = vpop.f32.mrf.mxu0  ;;  %v1699_v12 = vpop.f32.mrf.mxu1  ;;  %8301 = vmatprep.mubr.msk.bf16.mxu0 %vm9419_vm1, %v12510_v22  ;;  %8354 = vmatpush3.bf16.msra.mxu0 %v9152_v5  ;;  %v945_v63 = vadd.f32 %v10276_v61, %v10190_v45 }
 0x175   :  { %v2062_v31 = vmax.f32 %v1998_v10, 0.0  ;;  %v2003_v39 = vadd.f32 %v10463_v27, %v1932_v0  ;;  %v10528_v47 = vadd.f32 %v1359_v13, %v10335_v3  ;;  %8355 = vmatprep.subr.bf16.mxu0 %v12510_v22  ;;  %8393 = vmatprep.subr.bf16.mxu1 %v12510_v22  ;;  %v10534_v5 = vsel %vm2329_vm2, %v7445_v32, %v10517_v17 }
 0x176   :  { %v1930_v37 = vadd.f32 %v1699_v12, %v10427_v6  ;;  %v8172_v62 = vpop.f32.mrf.mxu0  ;;  %v8228_v51 = vpop.f32.mrf.mxu1  ;;  %v1527_v45 = vadd.f32 %v10436_v35, %v945_v63  ;;  %v9156_v35 = vld [vmem:[%s12449_s3 + $0xa8] sm:$0xff]  }
 0x177   :  { %v10538_v61 = vpack.c.bf16 %v2062_v31, %v2062_v31  ;;  %v10541_v21 = vadd.f32 %v8172_v62, %v10338_v7  ;;  %v1933_v3 = vadd.f32 %v8228_v51, %v10432_v15  ;;  %8394 = vmatpush3.bf16.msra.mxu1 %v9157_v33  ;;  %v2067_v32 = vmax.f32 %v2003_v39, 0.0 }
 0x178   :  { %v2001_v10 = vadd.f32 %v10463_v27, %v1930_v37  ;;  %v10548_v6 = vpop.f32.mrf.mxu0  ;;  %v1702_v0 = vpop.f32.mrf.mxu1  ;;  %8356 = vmatpush3.bf16.msra.mxu0 %v9154_v16  ;;  %8395 = vmatprep.subr.bf16.mxu1 %v12510_v22  ;;  %v9161_v37 = vld [vmem:[%s12449_s3 + $0xd8] sm:$0xff]  }
 0x179   :  { %v2004_v7 = vadd.f32 %v10463_v27, %v1933_v3  ;;  %v1931_v15 = vadd.f32 %v1702_v0, %v1527_v45  ;;  %8357 = vmatprep.subr.bf16.mxu0 %v12510_v22  ;;  %v10558_v63 = vsel %vm2329_vm2, %v7446_v20, %v10538_v61  ;;  %v7453_v62 = vpack.c.bf16 %v2067_v32, %v2067_v32  ;;  %v9158_v20 = vld [vmem:[%s12449_s3 + $0xa0] sm:$0xff]  }
 0x17a   :  { %v2065_v33 = vmax.f32 %v2001_v10, 0.0  ;;  %v8175_v13 = vpop.f32.mrf.mxu0  ;;  %v8231_v12 = vpop.f32.mrf.mxu1 }
 0x17b   :  { %v2002_v16 = vadd.f32 %v10463_v27, %v1931_v15  ;;  %v10562_v31 = vadd.f32 %v8175_v13, %v10345_v40  ;;  %v10565_v39 = vadd.f32 %v8231_v12, %v10441_v18  ;;  %8396 = vmatpush3.bf16.msra.mxu1 %v9159_v30  ;;  %v2068_v45 = vmax.f32 %v2004_v7, 0.0 }
 0x17c   :  { %v7451_v51 = vpack.c.bf16 %v2065_v33, %v2065_v33  ;;  %v1375_v3 = vpop.f32.mrf.mxu0  ;;  %v1715_v10 = vpop.f32.mrf.mxu1  ;;  %8358 = vmatpush3.bf16.msra.mxu0 %v9156_v35  ;;  %8397 = vmatprep.subr.bf16.mxu1 %v12510_v22  ;;  %v961_v40 = vadd.f32 %v10293_v4, %v10244_v59  ;;  %v9162_v4 = vld [vmem:[%s12449_s3 + $0xd0] sm:$0xff]  }
 0x17d   :  { %v2066_v18 = vmax.f32 %v2002_v16, 0.0  ;;  %v10577_v30 = vadd.f32 %v1375_v3, %v10349_v50  ;;  %8359 = vmatprep.subr.bf16.mxu0 %v12510_v22  ;;  %v1934_v0 = vadd.f32 %v1715_v10, %v10446_v26  ;;  %v7454_v50 = vpack.c.bf16 %v2068_v45, %v2068_v45 }
 0x17e   :  { %v10581_v32 = vsel %vm2329_vm2, %v7451_v51, %v7453_v62  ;;  %v8176_v35 = vpop.f32.mrf.mxu0  ;;  %v8232_v7 = vpop.f32.mrf.mxu1  ;;  %v1531_v15 = vadd.f32 %v10455_v28, %v961_v40  ;;  %v1536_v28 = vadd.f32 %v10458_v56, %v10297_v9  ;;  %v9164_v9 = vld [vmem:[%s12449_s3 + $0xc8] sm:$0xff]   ;;  %v1534_v56 = vadd.f32 %v10466_v42, %v10301_v34 }
 0x17f   :  { %v7452_v33 = vpack.c.bf16 %v2066_v18, %v2066_v18  ;;  %v10586_v13 = vadd.f32 %v8176_v35, %v10351_v60  ;;  %v10589_v59 = vadd.f32 %v8232_v7, %v10451_v48  ;;  %8398 = vmatpush3.bf16.msra.mxu1 %v9161_v37  ;;  %v2005_v12 = vadd.f32 %v10463_v27, %v1934_v0  ;;  %v9160_v60 = vld [vmem:[%s12449_s3 + $0x98] sm:$0xff]   ;;  %v9163_v35 = vld [vmem:[%s12449_s3 + $0x90] sm:$0xff]  }
 0x180   :  { %v10595_v26 = vpop.f32.mrf.mxu0  ;;  %v1718_v16 = vpop.f32.mrf.mxu1  ;;  %8360 = vmatpush3.bf16.msra.mxu0 %v9158_v20  ;;  %8399 = vmatprep.subr.bf16.mxu1 %v12510_v22  ;;  %v1999_v37 = vadd.f32 %v10463_v27, %v10479_v44  ;;  %v977_v7 = vadd.f32 %v10309_v49, %v10274_v54 }
 0x181   :  { %v1935_v48 = vadd.f32 %v1718_v16, %v1531_v15  ;;  %8361 = vmatprep.subr.bf16.mxu0 %v12510_v22  ;;  %v2069_v51 = vmax.f32 %v2005_v12, 0.0  ;;  %v10609_v10 = vsel %vm2329_vm2, %v7452_v33, %v7454_v50  ;;  %v1537_v15 = vadd.f32 %v10470_v14, %v10303_v11 }
 0x182   :  { %v10606_v45 = vpop.f32.mrf.mxu0  ;;  %v8235_v3 = vpop.f32.mrf.mxu1  ;;  %v2063_v42 = vmax.f32 %v1999_v37, 0.0  ;;  %v1535_v49 = vadd.f32 %v10474_v29, %v977_v7  ;;  %v1540_v29 = vadd.f32 %v10477_v23, %v10313_v24 }
 0x183   :  { %v2006_v20 = vadd.f32 %v10463_v27, %v1935_v48  ;;  %v1940_v40 = vadd.f32 %v8235_v3, %v1536_v28  ;;  %8400 = vmatpush3.bf16.msra.mxu1 %v9162_v4  ;;  %v10617_v18 = vpack.c.bf16 %v2069_v51, %v2069_v51  ;;  %v2000_v4 = vadd.f32 %v10463_v27, %v10494_v19  ;;  %v9166_v48 = vld [vmem:[%s12449_s3 + $0xc0] sm:$0xff]   ;;  %v9165_v51 = vld [vmem:[%s12449_s3 + $0x88] sm:$0xff]  }
 0x184   :  { %v10619_v44 = vpop.f32.mrf.mxu0  ;;  %v1731_v0 = vpop.f32.mrf.mxu1  ;;  %8362 = vmatpush3.bf16.msra.mxu0 %v9160_v60  ;;  %8401 = vmatprep.subr.bf16.mxu1 %v12510_v22 }
 0x185   :  { %v2070_v33 = vmax.f32 %v2006_v20, 0.0  ;;  %v2011_v34 = vadd.f32 %v10463_v27, %v1940_v40  ;;  %8363 = vmatprep.subr.bf16.mxu0 %v12510_v22  ;;  %v10635_v12 = vsel %vm2329_vm2, %v7453_v62, %v10617_v18  ;;  %v1938_v16 = vadd.f32 %v1731_v0, %v1534_v56 }
 0x186   :  { %v10637_v60 = vpop.f32.mrf.mxu0  ;;  %v8236_v54 = vpop.f32.mrf.mxu1  ;;  %v2064_v56 = vmax.f32 %v2000_v4, 0.0  ;;  %v9167_v4 = vld [vmem:[%s12449_s3 + $0x80] sm:$0xff]  }
 0x187   :  { %v10640_v11 = vpack.c.bf16 %v2070_v33, %v2070_v33  ;;  %v2075_v14 = vmax.f32 %v2011_v34, 0.0  ;;  %v1941_v28 = vadd.f32 %v8236_v54, %v1537_v15  ;;  %8402 = vmatpush3.bf16.msra.mxu1 %v9164_v9  ;;  %v2009_v19 = vadd.f32 %v10463_v27, %v1938_v16 }
 0x188   :  { %v10646_v37 = vpop.f32.mrf.mxu0  ;;  %v1734_v62 = vpop.f32.mrf.mxu1  ;;  %8364 = vmatpush3.bf16.msra.mxu0 %v9163_v35  ;;  %8403 = vmatprep.subr.bf16.mxu1 %v12510_v22  ;;  %v7449_v9 = vpack.c.bf16 %v2063_v42, %v2063_v42  ;;  %v1538_v34 = vadd.f32 %v10486_v8, %v10316_v41 }
 0x189   :  { %v10654_v3 = vpack.c.bf16 %v2075_v14, %v2075_v14  ;;  %v2012_v20 = vadd.f32 %v10463_v27, %v1941_v28  ;;  %v1939_v40 = vadd.f32 %v1734_v62, %v1535_v49  ;;  %8365 = vmatprep.subr.bf16.mxu0 %v12510_v22  ;;  %v2073_v0 = vmax.f32 %v2009_v19, 0.0 }
 0x18a   :  { %v10658_v35 = vpop.f32.mrf.mxu0  ;;  %v8239_v7 = vpop.f32.mrf.mxu1  ;;  %v10662_v15 = vsel %vm2329_vm2, %v7454_v50, %v10640_v11  ;;  %v993_v49 = vadd.f32 %v10326_v1, %v10291_v46  ;;  %v7450_v28 = vpack.c.bf16 %v2064_v56, %v2064_v56 }
 0x18b   :  { %v2076_v33 = vmax.f32 %v2012_v20, 0.0  ;;  %v2010_v24 = vadd.f32 %v10463_v27, %v1939_v40  ;;  %v1944_v23 = vadd.f32 %v8239_v7, %v1540_v29  ;;  %8404 = vmatpush3.bf16.msra.mxu1 %v9166_v48  ;;  %v7459_v16 = vpack.c.bf16 %v2073_v0, %v2073_v0 }
 0x18c   :  { %v10667_v54 = vpop.f32.mrf.mxu0  ;;  %v1747_v42 = vpop.f32.mrf.mxu1  ;;  %8366 = vmatpush3.bf16.msra.mxu0 %v9165_v51  ;;  %8461 = vmatprep.subr.bf16.mxu1 %v12510_v22  ;;  %v10675_v50 = vsel %vm2329_vm2, %v7449_v9, %v10654_v3  ;;  %v1539_v1 = vadd.f32 %v10502_v43, %v993_v49 }
 0x18d   :  { %v10679_v14 = vpack.c.bf16 %v2076_v33, %v2076_v33  ;;  %v2074_v41 = vmax.f32 %v2010_v24, 0.0  ;;  %v2015_v8 = vadd.f32 %v10463_v27, %v1944_v23  ;;  %8367 = vmatprep.subr.bf16.mxu0 %v12510_v22  ;;  %v10685_v48 = vsel %vm2329_vm2, %v7459_v16, %v10654_v3 }
 0x18e   :  { %12511 = vst [vmem:[#allocation46_spill] sm:$0xff] %v10685_v48  ;;  %v1942_v19 = vadd.f32 %v1747_v42, %v1538_v34  ;;  %v10687_v62 = vpop.f32.mrf.mxu0  ;;  %v10689_v51 = vpop.f32.mrf.mxu1  ;;  %v2336_v46 = vsel %vm2329_vm2, %v10517_v17, %v7459_v16  ;;  %v2007_v17 = vadd.f32 %v10463_v27, %v10565_v39 }
 0x18f   :  { %v7460_v29 = vpack.c.bf16 %v2074_v41, %v2074_v41  ;;  %8338 = vmatmul.mubr.bf16.gmra.mxu1 %v2336_v46  ;;  %v2079_v20 = vmax.f32 %v2015_v8, 0.0  ;;  %v10701_v0 = vsel %vm2329_vm2, %v7450_v28, %v10679_v14 }
 0x190   :  { %v2013_v40 = vadd.f32 %v10463_v27, %v1942_v19  ;;  %v10695_v9 = vpop.f32.mrf.mxu0  ;;  %v1750_v56 = vpop.f32.mrf.mxu1  ;;  %8341 = vmatprep.mubr.msk.bf16.mxu1 %vm9419_vm1, %v12510_v22  ;;  %8368 = vmatpush3.bf16.msra.mxu0 %v9167_v4  ;;  %v2071_v8 = vmax.f32 %v2007_v17, 0.0 }
 0x191   :  { %v1943_v43 = vadd.f32 %v1750_v56, %v1539_v1  ;;  %8425 = vmatprep.subr.bf16.mxu0 %v12510_v22  ;;  %v2368_v23 = vsel %vm2329_vm2, %v10538_v61, %v7460_v29  ;;  %v10712_v34 = vsel %vm2329_vm2, %v7460_v29, %v10679_v14  ;;  %v10716_v39 = vpack.c.bf16 %v2079_v20, %v2079_v20 }
 0x192   :  { %v2077_v7 = vmax.f32 %v2013_v40, 0.0  ;;  %v10706_v33 = vpop.f32.mrf.mxu0  ;;  %v8243_v24 = vpop.f32.mrf.mxu1  ;;  %12512 = vst [vmem:[#allocation47_spill] sm:$0xff] %v10712_v34  ;;  %8302 = vmatmul.mubr.bf16.gmra.mxu0 %v2368_v23  ;;  %v1009_v61 = vadd.f32 %v10342_v57, %v10307_v38 }
 0x193   :  { %v2014_v16 = vadd.f32 %v10463_v27, %v1943_v43  ;;  %v1948_v42 = vadd.f32 %v8243_v24, %v10511_v25  ;;  %8305 = vmatprep.mubr.msk.bf16.mxu0 %vm9419_vm1, %v12510_v22  ;;  %v2008_v25 = vadd.f32 %v10463_v27, %v10589_v59 }
 0x194   :  { %v10718_v4 = vpack.c.bf16 %v2077_v7, %v2077_v7  ;;  %v10720_v49 = vpop.f32.mrf.mxu0  ;;  %v1763_v41 = vpop.f32.mrf.mxu1  ;;  %v1543_v57 = vadd.f32 %v10548_v6, %v1009_v61  ;;  %v7457_v6 = vpack.c.bf16 %v2071_v8, %v2071_v8 }
 0x195   :  { %v2078_v28 = vmax.f32 %v2014_v16, 0.0  ;;  %v2019_v19 = vadd.f32 %v10463_v27, %v1948_v42  ;;  %v1946_v46 = vadd.f32 %v1763_v41, %v10528_v47  ;;  %v2072_v23 = vmax.f32 %v2008_v25, 0.0 }
 0x196   :  { %v10730_v1 = vpop.f32.mrf.mxu0  ;;  %v8244_v29 = vpop.f32.mrf.mxu1  ;;  %v10735_v20 = vsel %vm2329_vm2, %v10654_v3, %v10718_v4  ;;  %v10740_v38 = vsel %vm2329_vm2, %v10718_v4, %v10716_v39 }
 0x197   :  { %12513 = vst [vmem:[#allocation48_spill] sm:$0xff] %v10735_v20  ;;  %v10743_v40 = vpack.c.bf16 %v2078_v28, %v2078_v28  ;;  %v2083_v59 = vmax.f32 %v2019_v19, 0.0  ;;  %v1949_v47 = vadd.f32 %v8244_v29, %v10541_v21  ;;  %8342 = vmatmul.mubr.bf16.gmra.mxu1 %v10735_v20  ;;  %v2017_v56 = vadd.f32 %v10463_v27, %v1946_v46 }
 0x198   :  { %v10748_v17 = vpop.f32.mrf.mxu0  ;;  %v1766_v3 = vpop.f32.mrf.mxu1  ;;  %8345 = vmatprep.mubr.msk.bf16.mxu1 %vm9419_vm1, %v12510_v22 }
 0x199   :  { %v7469_v43 = vpack.c.bf16 %v2083_v59, %v2083_v59  ;;  %v2020_v7 = vadd.f32 %v10463_v27, %v1949_v47  ;;  %v1947_v24 = vadd.f32 %v1766_v3, %v1543_v57  ;;  %v2081_v16 = vmax.f32 %v2017_v56, 0.0 }
 0x19a   :  { %v10753_v42 = vpop.f32.mrf.mxu0  ;;  %v8247_v21 = vpop.f32.mrf.mxu1  ;;  %v10758_v41 = vsel %vm2329_vm2, %v10679_v14, %v10743_v40  ;;  %v7458_v47 = vpack.c.bf16 %v2072_v23, %v2072_v23  ;;  %v1541_v23 = vadd.f32 %v10489_v58, %v10320_v52 }
 0x19b   :  { %12514 = vst [vmem:[#allocation49_spill] sm:$0xff] %v10753_v42  ;;  %12515 = vst [vmem:[#allocation50_spill] sm:$0xff] %v10758_v41  ;;  %v2084_v61 = vmax.f32 %v2020_v7, 0.0  ;;  %v2018_v28 = vadd.f32 %v10463_v27, %v1947_v24  ;;  %v1952_v19 = vadd.f32 %v8247_v21, %v10562_v31  ;;  %8306 = vmatmul.mubr.bf16.gmra.mxu0 %v10758_v41  ;;  %v12528_v41 = vld [vmem:[#allocation15_spill] sm:$0xff] }
 0x19c   :  { %v7467_v46 = vpack.c.bf16 %v2081_v16, %v2081_v16  ;;  %v10763_v29 = vpop.f32.mrf.mxu0  ;;  %v1779_v8 = vpop.f32.mrf.mxu1  ;;  %8309 = vmatprep.mubr.msk.bf16.mxu0 %vm9419_vm1, %v12510_v22  ;;  %v10768_v25 = vsel %vm2329_vm2, %v7457_v6, %v7469_v43 }
 0x19d   :  { %12516 = vst [vmem:[#allocation51_spill] sm:$0xff] %v10768_v25  ;;  %v10770_v57 = vpack.c.bf16 %v2084_v61, %v2084_v61  ;;  %v2082_v14 = vmax.f32 %v2018_v28, 0.0  ;;  %v2023_v59 = vadd.f32 %v10463_v27, %v1952_v19  ;;  %v1950_v56 = vadd.f32 %v1779_v8, %v10577_v30 }
 0x19e   :  { %v10774_v31 = vsel %vm2329_vm2, %v7467_v46, %v7469_v43  ;;  %v10777_v3 = vpop.f32.mrf.mxu0  ;;  %v8248_v7 = vpop.f32.mrf.mxu1  ;;  %v10781_v24 = vsel %vm2329_vm2, %v10617_v18, %v7467_v46  ;;  %v1552_v18 = vadd.f32 %v10606_v45, %v10357_v2 }
 0x19f   :  { %12517 = vst [vmem:[#allocation52_spill] sm:$0xff] %v10774_v31  ;;  %12518 = vst [vmem:[#allocation53_spill] sm:$0xff] %v10777_v3  ;;  %v10783_v6 = vpack.c.bf16 %v2082_v14, %v2082_v14  ;;  %v10786_v16 = vadd.f32 %v8248_v7, %v10586_v13  ;;  %v2087_v21 = vmax.f32 %v2023_v59, 0.0  ;;  %v2021_v61 = vadd.f32 %v10463_v27, %v1950_v56  ;;  %v12520_v7 = vld [vmem:[#allocation13_spill] sm:$0xff]  ;;  %v12533_v3 = vld [vmem:[#allocation34_spill] sm:$0xff] }
 0x1a0   :  { %v10791_v28 = vpop.f32.mrf.mxu0  ;;  %v10793_v30 = vpop.f32.mrf.mxu1  ;;  %v10797_v19 = vsel %vm2329_vm2, %v7458_v47, %v10770_v57  ;;  %v1945_v13 = vadd.f32 %v10689_v51, %v1541_v23  ;;  %v1550_v59 = vadd.f32 %v10619_v44, %v10359_v53  ;;  %v1041_v51 = vadd.f32 %v10365_v55, %v10340_v36 }
 0x1a1   :  { %v2085_v46 = vmax.f32 %v2021_v61, 0.0  ;;  %v10807_v58 = vsel %vm2329_vm2, %v10783_v6, %v10770_v57  ;;  %v10811_v47 = vpack.c.bf16 %v2087_v21, %v2087_v21  ;;  %v1553_v23 = vadd.f32 %v10637_v60, %v12520_v7 }
 0x1a2   :  { %v10802_v8 = vpop.f32.mrf.mxu0  ;;  %v8251_v52 = vpop.f32.mrf.mxu1  ;;  %12519 = vst [vmem:[#allocation54_spill] sm:$0xff] %v10807_v58  ;;  %v1551_v36 = vadd.f32 %v10646_v37, %v1041_v51 }
 0x1a3   :  { %v1956_v14 = vadd.f32 %v8251_v52, %v1552_v18  ;;  %v10813_v56 = vpack.c.bf16 %v2085_v46, %v2085_v46  ;;  %v2016_v18 = vadd.f32 %v10463_v27, %v1945_v13  ;;  %v12523_v46 = vld [vmem:[#allocation2_spill] sm:$0xff] }
 0x1a4   :  { %v10815_v2 = vpop.f32.mrf.mxu0  ;;  %v1795_v45 = vpop.f32.mrf.mxu1 }
 0x1a5   :  { %v2027_v61 = vadd.f32 %v10463_v27, %v1956_v14  ;;  %v1954_v52 = vadd.f32 %v1795_v45, %v1550_v59  ;;  %v10827_v44 = vsel %vm2329_vm2, %v7469_v43, %v10813_v56  ;;  %v10832_v21 = vsel %vm2329_vm2, %v10813_v56, %v10811_v47  ;;  %v12524_v14 = vld [vmem:[#allocation12_spill] sm:$0xff]  ;;  %v12525_v59 = vld [vmem:[#allocation11_spill] sm:$0xff] }
 0x1a6   :  { %v10823_v31 = vpop.f32.mrf.mxu0  ;;  %v8252_v53 = vpop.f32.mrf.mxu1  ;;  %12522 = vst [vmem:[#allocation55_spill] sm:$0xff] %v10832_v21  ;;  %v1025_v13 = vadd.f32 %v12524_v14, %v12523_v46  ;;  %v12526_v45 = vld [vmem:[#allocation19_spill] sm:$0xff]  ;;  %v12532_v14 = vld [vmem:[#allocation38_spill] sm:$0xff] }
 0x1a7   :  { %12521 = vst [vmem:[#allocation13_spill] sm:$0xff] %v10823_v31  ;;  %v2091_v55 = vmax.f32 %v2027_v61, 0.0  ;;  %v1957_v60 = vadd.f32 %v8252_v53, %v1553_v23  ;;  %v1057_v7 = vadd.f32 %v12526_v45, %v12525_v59  ;;  %v2025_v58 = vadd.f32 %v10463_v27, %v1954_v52  ;;  %v12529_v23 = vld [vmem:[#allocation14_spill] sm:$0xff]  ;;  %v12530_v61 = vld [vmem:[#allocation24_spill] sm:$0xff]  ;;  %v12531_v46 = vld [vmem:[#allocation3_spill] sm:$0xff] }
 0x1a8   :  { %v10840_v20 = vpop.f32.mrf.mxu0  ;;  %v1798_v43 = vpop.f32.mrf.mxu1  ;;  %v1556_v31 = vadd.f32 %v10658_v35, %v12528_v41  ;;  %v1073_v53 = vadd.f32 %v12530_v61, %v12529_v23  ;;  %v1142_v34 = vadd.f32 %v12532_v14, %v12531_v46  ;;  %v2080_v59 = vmax.f32 %v2016_v18, 0.0 }
 0x1a9   :  { %12527 = vst [vmem:[#allocation2_spill] sm:$0xff] %v10840_v20  ;;  %v10844_v48 = vpack.c.bf16 %v2091_v55, %v2091_v55  ;;  %v2028_v37 = vadd.f32 %v10463_v27, %v1957_v60  ;;  %v1955_v51 = vadd.f32 %v1798_v43, %v1551_v36  ;;  %v2089_v45 = vmax.f32 %v2025_v58, 0.0  ;;  %v12534_v55 = vld [vmem:[#allocation4_spill] sm:$0xff]  ;;  %v12535_v60 = vld [vmem:[#allocation39_spill] sm:$0xff] }
 0x1aa   :  { %v8199_v52 = vpop.f32.mrf.mxu0  ;;  %v8255_v21 = vpop.f32.mrf.mxu1  ;;  %v1134_v36 = vadd.f32 %v12535_v60, %v12534_v55  ;;  %v12536_v43 = vld [vmem:[#allocation16_spill] sm:$0xff]  ;;  %v10871_v46 = vpack.c.bf16 %v2080_v59, %v2080_v59  ;;  %v1555_v55 = vadd.f32 %v10695_v9, %v1057_v7  ;;  %v12540_v59 = vld [vmem:[#allocation5_spill] sm:$0xff] }
 0x1ab   :  { %v2092_v20 = vmax.f32 %v2028_v37, 0.0  ;;  %v2026_v42 = vadd.f32 %v10463_v27, %v1955_v51  ;;  %v10853_v35 = vadd.f32 %v8199_v52, %v12533_v3  ;;  %v1960_v41 = vadd.f32 %v8255_v21, %v1556_v31  ;;  %v12538_v37 = vld [vmem:[#allocation17_spill] sm:$0xff]  ;;  %v12542_v7 = vld [vmem:[#allocation20_spill] sm:$0xff] }
 0x1ac   :  { %v1554_v23 = vadd.f32 %v10667_v54, %v12536_v43  ;;  %v7475_v61 = vpack.c.bf16 %v2089_v45, %v2089_v45  ;;  %v10859_v25 = vpop.f32.mrf.mxu0  ;;  %v1811_v18 = vpop.f32.mrf.mxu1  ;;  %v10864_v58 = vsel %vm2329_vm2, %v10716_v39, %v10844_v48  ;;  %v1557_v3 = vadd.f32 %v10687_v62, %v12538_v37 }
 0x1ad   :  { %12537 = vst [vmem:[#allocation12_spill] sm:$0xff] %v10864_v58  ;;  %v10868_v51 = vpack.c.bf16 %v2092_v20, %v2092_v20  ;;  %v2090_v31 = vmax.f32 %v2026_v42, 0.0  ;;  %v2031_v21 = vadd.f32 %v10463_v27, %v1960_v41  ;;  %v12539_v20 = vld [vmem:[#allocation36_spill] sm:$0xff] }
 0x1ae   :  { %v1958_v54 = vadd.f32 %v1811_v18, %v1554_v23  ;;  %v8200_v14 = vpop.f32.mrf.mxu0  ;;  %v8256_v45 = vpop.f32.mrf.mxu1  ;;  %v2344_v52 = vsel %vm2329_vm2, %v7475_v61, %v10844_v48  ;;  %v10877_v39 = vsel %vm2329_vm2, %v10718_v4, %v7475_v61  ;;  %v12541_v41 = vld [vmem:[#allocation40_spill] sm:$0xff]  ;;  %v1547_v4 = vadd.f32 %v10595_v26, %v1025_v13  ;;  %v12544_v26 = vld [vmem:[#allocation22_spill] sm:$0xff] }
 0x1af   :  { %v7476_v62 = vpack.c.bf16 %v2090_v31, %v2090_v31  ;;  %v10881_v60 = vadd.f32 %v8200_v14, %v12539_v20  ;;  %v1961_v42 = vadd.f32 %v8256_v45, %v1557_v3  ;;  %8346 = vmatmul.mubr.bf16.gmra.mxu1 %v2344_v52  ;;  %v1145_v43 = vadd.f32 %v12541_v41, %v12540_v59 }
 0x1b0   :  { %v2095_v23 = vmax.f32 %v2031_v21, 0.0  ;;  %v2029_v18 = vadd.f32 %v10463_v27, %v1958_v54  ;;  %v10886_v37 = vpop.f32.mrf.mxu0  ;;  %v1814_v58 = vpop.f32.mrf.mxu1  ;;  %8349 = vmatprep.mubr.msk.bf16.mxu1 %vm9419_vm1, %v12510_v22  ;;  %v10893_v9 = vsel %vm2329_vm2, %v10871_v46, %v10868_v51  ;;  %v1560_v61 = vadd.f32 %v10706_v33, %v12542_v7  ;;  %v12543_v21 = vld [vmem:[#allocation21_spill] sm:$0xff] }
 0x1b1   :  { %v2032_v3 = vadd.f32 %v10463_v27, %v1961_v42  ;;  %v1959_v31 = vadd.f32 %v1814_v58, %v1555_v55  ;;  %v1558_v54 = vadd.f32 %v10720_v49, %v12543_v21  ;;  %v2376_v20 = vsel %vm2329_vm2, %v7476_v62, %v10868_v51 }
 0x1b2   :  { %v2093_v14 = vmax.f32 %v2029_v18, 0.0  ;;  %v8203_v45 = vpop.f32.mrf.mxu0  ;;  %v8259_v52 = vpop.f32.mrf.mxu1  ;;  %v10905_v59 = vsel %vm2329_vm2, %v10743_v40, %v7476_v62  ;;  %v1561_v13 = vadd.f32 %v10730_v1, %v12544_v26  ;;  %8310 = vmatmul.mubr.bf16.gmra.mxu0 %v2376_v20  ;;  %v1951_v49 = vadd.f32 %v10793_v30, %v1547_v4  ;;  %v12547_v26 = vld [vmem:[#allocation7_spill] sm:$0xff] }
 0x1b3   :  { %v2030_v33 = vadd.f32 %v10463_v27, %v1959_v31  ;;  %v10910_v42 = vadd.f32 %v8203_v45, %v1142_v34  ;;  %v1964_v58 = vadd.f32 %v8259_v52, %v1560_v61  ;;  %v10913_v55 = vpack.c.bf16 %v2095_v23, %v2095_v23  ;;  %8313 = vmatprep.mubr.msk.bf16.mxu0 %vm9419_vm1, %v12510_v22 }
 0x1b4   :  { %v7479_v41 = vpack.c.bf16 %v2093_v14, %v2093_v14  ;;  %v2096_v18 = vmax.f32 %v2032_v3, 0.0  ;;  %v1487_v7 = vpop.f32.mrf.mxu0  ;;  %v1827_v21 = vpop.f32.mrf.mxu1  ;;  %v1559_v62 = vadd.f32 %v10748_v17, %v1073_v53  ;;  %v2024_v61 = vadd.f32 %v10463_v27, %v10786_v16 }
 0x1b5   :  { %v2094_v1 = vmax.f32 %v2030_v33, 0.0  ;;  %v2035_v31 = vadd.f32 %v10463_v27, %v1964_v58  ;;  %v10919_v34 = vadd.f32 %v1487_v7, %v1134_v36  ;;  %v1962_v30 = vadd.f32 %v1827_v21, %v1558_v54  ;;  %v12548_v33 = vld [vmem:[#allocation42_spill] sm:$0xff] }
 0x1b6   :  { %v8204_v23 = vpop.f32.mrf.mxu0  ;;  %v8260_v4 = vpop.f32.mrf.mxu1  ;;  %v10925_v3 = vsel %vm2329_vm2, %v10844_v48, %v7479_v41  ;;  %v10929_v14 = vsel %vm2329_vm2, %v7479_v41, %v10913_v55  ;;  %v2022_v16 = vadd.f32 %v10463_v27, %v1951_v49  ;;  %v10936_v54 = vpack.c.bf16 %v2096_v18, %v2096_v18 }
 0x1b7   :  { %12545 = vst [vmem:[#allocation11_spill] sm:$0xff] %v10929_v14  ;;  %v10931_v17 = vpack.c.bf16 %v2094_v1, %v2094_v1  ;;  %v2099_v53 = vmax.f32 %v2035_v31, 0.0  ;;  %v10933_v45 = vadd.f32 %v8204_v23, %v1145_v43  ;;  %v1965_v36 = vadd.f32 %v8260_v4, %v1561_v13  ;;  %8350 = vmatmul.mubr.bf16.gmra.mxu1 %v7479_v41  ;;  %v12549_v31 = vld [vmem:[#allocation8_spill] sm:$0xff] }
 0x1b8   :  { %v2033_v52 = vadd.f32 %v10463_v27, %v1962_v30  ;;  %v10939_v20 = vpop.f32.mrf.mxu0  ;;  %v1830_v48 = vpop.f32.mrf.mxu1  ;;  %8405 = vmatprep.mubr.msk.bf16.mxu1 %vm9419_vm1, %v12510_v22  ;;  %v1158_v58 = vadd.f32 %v12548_v33, %v12547_v26  ;;  %v2088_v41 = vmax.f32 %v2024_v61, 0.0  ;;  %v12550_v30 = vld [vmem:[#allocation43_spill] sm:$0xff] }
 0x1b9   :  { %12546 = vst [vmem:[#allocation19_spill] sm:$0xff] %v10939_v20  ;;  %v10945_v7 = vpack.c.bf16 %v2099_v53, %v2099_v53  ;;  %v2036_v43 = vadd.f32 %v10463_v27, %v1965_v36  ;;  %v1963_v13 = vadd.f32 %v1830_v48, %v1559_v62  ;;  %v10953_v1 = vsel %vm2329_vm2, %v10931_v17, %v10936_v54  ;;  %v9169_v48 = vld [vmem:[%s12449_s3 + $0x178] sm:$0xff]  }
 0x1ba   :  { %v2097_v49 = vmax.f32 %v2033_v52, 0.0  ;;  %v8207_v18 = vpop.f32.mrf.mxu0  ;;  %v10948_v21 = vpop.f32.mrf.mxu1  ;;  %v1150_v23 = vadd.f32 %v12550_v30, %v12549_v31  ;;  %8314 = vmatmul.mubr.bf16.gmra.mxu0 %v10931_v17  ;;  %v2086_v62 = vmax.f32 %v2022_v16, 0.0  ;;  %v10979_v31 = vpack.c.bf16 %v2088_v41, %v2088_v41 }
 0x1bb   :  { %v2100_v4 = vmax.f32 %v2036_v43, 0.0  ;;  %v2034_v53 = vadd.f32 %v10463_v27, %v1963_v13  ;;  %v10958_v26 = vadd.f32 %v8207_v18, %v1158_v58  ;;  %8369 = vmatprep.mubr.msk.bf16.mxu0 %vm9419_vm1, %v12510_v22  ;;  %v10971_v33 = vsel %vm2329_vm2, %v10811_v47, %v10945_v7  ;;  %v12552_v58 = vld [vmem:[#allocation9_spill] sm:$0xff]  ;;  %v12553_v43 = vld [vmem:[#allocation44_spill] sm:$0xff] }
 0x1bc   :  { %v7483_v61 = vpack.c.bf16 %v2097_v49, %v2097_v49  ;;  %v1503_v36 = vpop.f32.mrf.mxu0  ;;  %v10961_v52 = vpop.f32.mrf.mxu1  ;;  %12551 = vst [vmem:[#allocation15_spill] sm:$0xff] %v10971_v33  ;;  %v1161_v13 = vadd.f32 %v12553_v43, %v12552_v58 }
 0x1bd   :  { %v10975_v16 = vpack.c.bf16 %v2100_v4, %v2100_v4  ;;  %v2098_v49 = vmax.f32 %v2034_v53, 0.0  ;;  %v10977_v18 = vadd.f32 %v1503_v36, %v1150_v23  ;;  %v10996_v23 = vpack.c.bf16 %v2086_v62, %v2086_v62  ;;  %v9168_v53 = vld [vmem:[%s12449_s3 + $0x138] sm:$0xff]   ;;  %v9171_v62 = vld [vmem:[%s12449_s3 + $0x170] sm:$0xff]  }
 0x1be   :  { %v8208_v30 = vpop.f32.mrf.mxu0  ;;  %v10981_v20 = vpop.f32.mrf.mxu1  ;;  %v10985_v14 = vsel %vm2329_vm2, %v7483_v61, %v10945_v7  ;;  %v10989_v47 = vsel %vm2329_vm2, %v10813_v56, %v7483_v61  ;;  %v12555_v61 = vld [vmem:[#allocation30_spill] sm:$0xff] }
 0x1bf   :  { %v10991_v33 = vpack.c.bf16 %v2098_v49, %v2098_v49  ;;  %v10993_v4 = vadd.f32 %v8208_v30, %v1161_v13  ;;  %8406 = vmatmul.mubr.bf16.vlgmr.msra.gmra.mxu1 %v10558_v63  ;;  %v11008_v56 = vsel %vm2329_vm2, %v10979_v31, %v10975_v16  ;;  %v1568_v63 = vadd.f32 %v10802_v8, %v12555_v61  ;;  %v9170_v49 = vld [vmem:[%s12449_s3 + $0x130] sm:$0xff]  }
 0x1c0   :  { %v10998_v41 = vpop.f32.mrf.mxu1  ;;  %8409 = vmatprep.mubr.msk.bf16.mxu1 %vm9419_vm1, %v12510_v22  ;;  %8462 = vmatpush3.bf16.msra.mxu1 %v9169_v48  ;;  %12554 = vst [vmem:[#allocation14_spill] sm:$0xff] %v11008_v56  ;;  %v12556_v48 = vld [vmem:[#allocation31_spill] sm:$0xff] }
 0x1c1   :  { %8463 = vmatprep.subr.bf16.mxu1 %v12510_v22  ;;  %v11019_v58 = vsel %vm2329_vm2, %v10996_v23, %v10991_v33  ;;  %v1566_v43 = vadd.f32 %v10815_v2, %v12556_v48  ;;  %v9173_v2 = vld [vmem:[%s12449_s3 + $0x168] sm:$0xff]  }
 0x1c2   :  { %v8267_v36 = vpop.f32.mrf.mxu1  ;;  %8370 = vmatmul.mubr.bf16.vlgmr.msra.gmra.mxu0 %v10534_v5 }
 0x1c3   :  { %v1972_v13 = vadd.f32 %v8267_v36, %v1568_v63  ;;  %8426 = vmatpush3.bf16.msra.mxu0 %v9168_v53  ;;  %8373 = vmatprep.mubr.msk.bf16.mxu0 %vm9419_vm1, %v12510_v22 }
 0x1c4   :  { %v1859_v8 = vpop.f32.mrf.mxu1  ;;  %8427 = vmatprep.subr.bf16.mxu0 %v12510_v22  ;;  %8464 = vmatpush3.bf16.msra.mxu1 %v9171_v62  ;;  %v9172_v62 = vld [vmem:[%s12449_s3 + $0x128] sm:$0xff]  }
 0x1c5   :  { %v2043_v30 = vadd.f32 %v10463_v27, %v1972_v13  ;;  %v1970_v61 = vadd.f32 %v1859_v8, %v1566_v43  ;;  %8465 = vmatprep.subr.bf16.mxu1 %v12510_v22  ;;  %v9175_v43 = vld [vmem:[%s12449_s3 + $0x160] sm:$0xff]   ;;  %v12557_v13 = vld [vmem:[#allocation35_spill] sm:$0xff] }
 0x1c6   :  { %v11034_v5 = vpop.f32.mrf.mxu1  ;;  %v1570_v8 = vadd.f32 %v10859_v25, %v12557_v13  ;;  %v9177_v25 = vld [vmem:[%s12449_s3 + $0x158] sm:$0xff]  }
 0x1c7   :  { %v2041_v53 = vadd.f32 %v10463_v27, %v1970_v61  ;;  %8410 = vmatmul.mubr.bf16.gmra.mxu1 %v10701_v0  ;;  %v2107_v63 = vmax.f32 %v2043_v30, 0.0  ;;  %8428 = vmatpush3.bf16.msra.mxu0 %v9170_v49 }
 0x1c8   :  { %v11039_v36 = vpop.f32.mrf.mxu1  ;;  %8413 = vmatprep.mubr.msk.bf16.mxu1 %vm9419_vm1, %v12510_v22  ;;  %8429 = vmatprep.subr.bf16.mxu0 %v12510_v22 }
 0x1c9   :  { %v2105_v48 = vmax.f32 %v2041_v53, 0.0  ;;  %8466 = vmatpush3.bf16.msra.mxu1 %v9173_v2  ;;  %v7493_v61 = vpack.c.bf16 %v2107_v63, %v2107_v63  ;;  %v9174_v2 = vld [vmem:[%s12449_s3 + $0x120] sm:$0xff]  }
 0x1ca   :  { %v8271_v0 = vpop.f32.mrf.mxu1  ;;  %8467 = vmatprep.subr.bf16.mxu1 %v12510_v22  ;;  %8374 = vmatmul.mubr.bf16.gmra.mxu0 %v10675_v50  ;;  %v2798_v50 = vsel %vm2329_vm2, %v10743_v40, %v10871_v46  ;;  %v9176_v40 = vld [vmem:[%s12449_s3 + $0x118] sm:$0xff]  }
 0x1cb   :  { %v7491_v49 = vpack.c.bf16 %v2105_v48, %v2105_v48  ;;  %v11054_v30 = vadd.f32 %v8271_v0, %v10853_v35  ;;  %8430 = vmatpush3.bf16.msra.mxu0 %v9172_v62  ;;  %8377 = vmatprep.mubr.msk.bf16.mxu0 %vm9419_vm1, %v12510_v22 }
 0x1cc   :  { %v1875_v53 = vpop.f32.mrf.mxu1  ;;  %8431 = vmatprep.subr.bf16.mxu0 %v12510_v22 }
 0x1cd   :  { %v1974_v56 = vadd.f32 %v1875_v53, %v1570_v8  ;;  %8468 = vmatpush3.bf16.msra.mxu1 %v9175_v43  ;;  %v11071_v63 = vsel %vm2329_vm2, %v7491_v49, %v7493_v61  ;;  %v9179_v49 = vld [vmem:[%s12449_s3 + $0x110] sm:$0xff]  }
 0x1ce   :  { %v8272_v35 = vpop.f32.mrf.mxu1  ;;  %8469 = vmatprep.subr.bf16.mxu1 %v12510_v22 }
 0x1cf   :  { %v2045_v62 = vadd.f32 %v10463_v27, %v1974_v56  ;;  %v11075_v48 = vadd.f32 %v8272_v35, %v10881_v60  ;;  %8414 = vmatmul.mubr.bf16.gmra.mxu1 %v2798_v50  ;;  %8432 = vmatpush3.bf16.msra.mxu0 %v9174_v2  ;;  %v9178_v60 = vld [vmem:[%s12449_s3 + $0x150] sm:$0xff]  }
 0x1d0   :  { %v11077_v43 = vpop.f32.mrf.mxu1  ;;  %8417 = vmatprep.mubr.msk.bf16.mxu1 %vm9419_vm1, %v12510_v22  ;;  %8433 = vmatprep.subr.bf16.mxu0 %v12510_v22 }
 0x1d1   :  { %v2109_v46 = vmax.f32 %v2045_v62, 0.0  ;;  %8470 = vmatpush3.bf16.msra.mxu1 %v9177_v25  ;;  %v11107_v25 = vsel %vm2329_vm2, %v10868_v51, %v10931_v17 }
 0x1d2   :  { %v8275_v56 = vpop.f32.mrf.mxu1  ;;  %8471 = vmatprep.subr.bf16.mxu1 %v12510_v22  ;;  %8378 = vmatmul.mubr.bf16.gmra.mxu0 %v10740_v38  ;;  %v9180_v38 = vld [vmem:[%s12449_s3 + $0x148] sm:$0xff]  }
 0x1d3   :  { %v11089_v0 = vpack.c.bf16 %v2109_v46, %v2109_v46  ;;  %v1980_v13 = vadd.f32 %v8275_v56, %v10910_v42  ;;  %8434 = vmatpush3.bf16.msra.mxu0 %v9176_v40  ;;  %8381 = vmatprep.mubr.msk.bf16.mxu0 %vm9419_vm1, %v12510_v22 }
 0x1d4   :  { %v1891_v8 = vpop.f32.mrf.mxu1  ;;  %8435 = vmatprep.subr.bf16.mxu0 %v12510_v22 }
 0x1d5   :  { %v2051_v53 = vadd.f32 %v10463_v27, %v1980_v13  ;;  %v1978_v2 = vadd.f32 %v1891_v8, %v10919_v34  ;;  %8472 = vmatpush3.bf16.msra.mxu1 %v9178_v60  ;;  %v11112_v27 = vsel %vm2329_vm2, %v7493_v61, %v11089_v0  ;;  %v11117_v34 = vld [vmem:[%s12450_s2] ss:$0 sm:$0xff]  ;;  %v9181_v61 = vld [vmem:[%s12449_s3 + $0x108] sm:$0xff]  }
 0x1d6   :  { %v8276_v42 = vpop.f32.mrf.mxu1  ;;  %8473 = vmatprep.subr.bf16.mxu1 %v12510_v22  ;;  %v9183_v8 = vld [vmem:[%s12449_s3 + $0x100] sm:$0xff]  }
 0x1d7   :  { %v2049_v35 = vadd.f32 %v11117_v34, %v1978_v2  ;;  %v11121_v50 = vadd.f32 %v8276_v42, %v10933_v45  ;;  %8418 = vmatmul.mubr.bf16.gmra.mxu1 %v11107_v25  ;;  %v2115_v51 = vmax.f32 %v2051_v53, 0.0  ;;  %8436 = vmatpush3.bf16.msra.mxu0 %v9179_v49  ;;  %v9182_v45 = vld [vmem:[%s12449_s3 + $0x140] sm:$0xff]  }
 0x1d8   :  { %v11124_v17 = vpop.f32.mrf.mxu1  ;;  %8421 = vmatprep.mubr.msk.bf16.mxu1 %vm9419_vm1, %v12510_v22  ;;  %8437 = vmatprep.subr.bf16.mxu0 %v12510_v22 }
 0x1d9   :  { %v2113_v62 = vmax.f32 %v2049_v35, 0.0  ;;  %8474 = vmatpush3.bf16.msra.mxu1 %v9180_v38  ;;  %v7501_v56 = vpack.c.bf16 %v2115_v51, %v2115_v51  ;;  %v9184_v35 = vld [vmem:[%s12449_s3 + $0x1b8] sm:$0xff]   ;;  %v9189_v51 = vld [vmem:[%s12449_s3 + $0x1e8] sm:$0xff]  }
 0x1da   :  { %v8279_v40 = vpop.f32.mrf.mxu1  ;;  %8475 = vmatprep.subr.bf16.mxu1 %v12510_v22  ;;  %8382 = vmatmul.mubr.bf16.gmra.mxu0 %v10925_v3 }
 0x1db   :  { %v7499_v46 = vpack.c.bf16 %v2113_v62, %v2113_v62  ;;  %v11137_v60 = vadd.f32 %v8279_v40, %v10958_v26  ;;  %8385 = vmatprep.mubr.msk.bf16.mxu0 %vm9419_vm1, %v12510_v22  ;;  %8438 = vmatpush3.bf16.msra.mxu0 %v9181_v61  ;;  %v3117_v61 = vsel %vm2329_vm2, %v10640_v11, %v10783_v6  ;;  %v9191_v62 = vld [vmem:[%s12449_s3 + $0x1e0] sm:$0xff]  }
 0x1dc   :  { %v1907_v13 = vpop.f32.mrf.mxu1  ;;  %8439 = vmatprep.subr.bf16.mxu0 %v12510_v22  ;;  %v9190_v11 = vld [vmem:[%s12449_s3 + $0x1a0] sm:$0xff]  }
 0x1dd   :  { %v1982_v49 = vadd.f32 %v1907_v13, %v10977_v18  ;;  %8476 = vmatpush3.bf16.msra.mxu1 %v9182_v45  ;;  %v11149_v26 = vsel %vm2329_vm2, %v7499_v46, %v7501_v56  ;;  %v12558_v6 = vld [vmem:[#allocation18_spill] sm:$0xff]  ;;  %v12559_v45 = vld [vmem:[#allocation29_spill] sm:$0xff] }
 0x1de   :  { %v8280_v53 = vpop.f32.mrf.mxu1  ;;  %8533 = vmatprep.subr.bf16.mxu1 %v12510_v22  ;;  %v1089_v40 = vadd.f32 %v12559_v45, %v12558_v6  ;;  %v9193_v46 = vld [vmem:[%s12449_s3 + $0x1d8] sm:$0xff]   ;;  %v9207_v6 = vld [vmem:[%s12449_s3 + $0x260] sm:$0xff]   ;;  %v12561_v45 = vld [vmem:[#allocation51_spill] sm:$0xff] }
 0x1df   :  { %v2053_v2 = vadd.f32 %v11117_v34, %v1982_v49  ;;  %v11153_v38 = vadd.f32 %v8280_v53, %v10993_v4  ;;  %8422 = vmatmul.mubr.bf16.gmra.mxu1 %v10936_v54  ;;  %8440 = vmatpush3.bf16.msra.mxu0 %v9183_v8  ;;  %v9185_v4 = vld [vmem:[%s12449_s3 + $0x1f8] sm:$0xff]  }
 0x1e0   :  { %8477 = vmatprep.mubr.msk.bf16.mxu1 %vm9419_vm1, %v12510_v22  ;;  %8497 = vmatprep.subr.bf16.mxu0 %v12510_v22  ;;  %v9192_v13 = vld [vmem:[%s12449_s3 + $0x198] sm:$0xff]  }
 0x1e1   :  { %v2117_v18 = vmax.f32 %v2053_v2, 0.0 }
 0x1e2   :  { %8386 = vmatmul.mubr.bf16.gmra.mxu0 %v10913_v55  ;;  %v9187_v55 = vld [vmem:[%s12449_s3 + $0x1f0] sm:$0xff]  }
 0x1e3   :  { %v11159_v42 = vpack.c.bf16 %v2117_v18, %v2117_v18  ;;  %8441 = vmatprep.mubr.msk.bf16.mxu0 %vm9419_vm1, %v12510_v22  ;;  %v3125_v18 = vsel %vm2329_vm2, %v10991_v33, %v10975_v16  ;;  %v9198_v33 = vld [vmem:[%s12449_s3 + $0x1c0] sm:$0xff]  }
 0x1e5   :  { %v11169_v54 = vsel %vm2329_vm2, %v7501_v56, %v11159_v42  ;;  %v1563_v56 = vadd.f32 %v10791_v28, %v1089_v40  ;;  %v12560_v28 = vld [vmem:[#allocation26_spill] sm:$0xff]  ;;  %v9209_v40 = vld [vmem:[%s12449_s3 + $0x258] sm:$0xff]  }
 0x1e6   :  { %v1562_v49 = vadd.f32 %v10763_v29, %v12560_v28  ;;  %v9196_v29 = vld [vmem:[%s12449_s3 + $0x1c8] sm:$0xff]  }
 0x1e7   :  { %8478 = vmatmul.mubr.bf16.vlgmr.msra.gmra.mxu1 %v10609_v10  ;;  %v9186_v10 = vld [vmem:[%s12449_s3 + $0x1b0] sm:$0xff]   ;;  %v1967_v8 = vadd.f32 %v10998_v41, %v1563_v56  ;;  %v12562_v56 = vld [vmem:[#allocation27_spill] sm:$0xff] }
 0x1e8   :  { %8481 = vmatprep.mubr.msk.bf16.mxu1 %vm9419_vm1, %v12510_v22  ;;  %8534 = vmatpush3.bf16.msra.mxu1 %v9185_v4  ;;  %v9195_v41 = vld [vmem:[%s12449_s3 + $0x190] sm:$0xff]   ;;  %v1966_v53 = vadd.f32 %v10961_v52, %v1562_v49  ;;  %v9197_v52 = vld [vmem:[%s12449_s3 + $0x188] sm:$0xff]   ;;  %v12565_v49 = vld [vmem:[#allocation49_spill] sm:$0xff] }
 0x1e9   :  { %8535 = vmatprep.subr.bf16.mxu1 %v12510_v22  ;;  %v2038_v2 = vadd.f32 %v11117_v34, %v1967_v8 }
 0x1ea   :  { %8442 = vmatmul.mubr.bf16.vlgmr.msra.gmra.mxu0 %v10581_v32  ;;  %v9188_v32 = vld [vmem:[%s12449_s3 + $0x1a8] sm:$0xff]   ;;  %v2037_v4 = vadd.f32 %v11117_v34, %v1966_v53 }
 0x1eb   :  { %8498 = vmatpush3.bf16.msra.mxu0 %v9184_v35  ;;  %8445 = vmatprep.mubr.msk.bf16.mxu0 %vm9419_vm1, %v12510_v22  ;;  %v2102_v35 = vmax.f32 %v2038_v2, 0.0  ;;  %v12566_v53 = vld [vmem:[#allocation55_spill] sm:$0xff] }
 0x1ec   :  { %8499 = vmatprep.subr.bf16.mxu0 %v12510_v22  ;;  %8536 = vmatpush3.bf16.msra.mxu1 %v9187_v55  ;;  %v9199_v55 = vld [vmem:[%s12449_s3 + $0x180] sm:$0xff]  }
 0x1ed   :  { %8537 = vmatprep.subr.bf16.mxu1 %v12510_v22 }
 0x1ef   :  { %8482 = vmatmul.mubr.bf16.gmra.mxu1 %v3117_v61  ;;  %8500 = vmatpush3.bf16.msra.mxu0 %v9186_v10  ;;  %v2101_v10 = vmax.f32 %v2037_v4, 0.0  ;;  %v9201_v61 = vld [vmem:[%s12449_s3 + $0x278] sm:$0xff]  }
 0x1f0   :  { %8485 = vmatprep.mubr.msk.bf16.mxu1 %vm9419_vm1, %v12510_v22  ;;  %8501 = vmatprep.subr.bf16.mxu0 %v12510_v22 }
 0x1f1   :  { %8538 = vmatpush3.bf16.msra.mxu1 %v9189_v51  ;;  %v11271_v51 = vpack.c.bf16 %v2102_v35, %v2102_v35 }
 0x1f2   :  { %8539 = vmatprep.subr.bf16.mxu1 %v12510_v22  ;;  %8446 = vmatmul.mubr.bf16.gmra.mxu0 %v10781_v24  ;;  %v11220_v24 = vsel %vm2329_vm2, %v10770_v57, %v10996_v23  ;;  %v9194_v57 = vld [vmem:[%s12449_s3 + $0x1d0] sm:$0xff]  }
 0x1f3   :  { %8502 = vmatpush3.bf16.msra.mxu0 %v9188_v32  ;;  %8449 = vmatprep.mubr.msk.bf16.mxu0 %vm9419_vm1, %v12510_v22  ;;  %v9200_v32 = vld [vmem:[%s12449_s3 + $0x238] sm:$0xff]  }
 0x1f4   :  { %8503 = vmatprep.subr.bf16.mxu0 %v12510_v22 }
 0x1f5   :  { %8540 = vmatpush3.bf16.msra.mxu1 %v9191_v62  ;;  %v9203_v62 = vld [vmem:[%s12449_s3 + $0x270] sm:$0xff]  }
 0x1f6   :  { %8541 = vmatprep.subr.bf16.mxu1 %v12510_v22 }
 0x1f7   :  { %8486 = vmatmul.mubr.bf16.gmra.mxu1 %v11220_v24  ;;  %8504 = vmatpush3.bf16.msra.mxu0 %v9190_v11  ;;  %v9205_v11 = vld [vmem:[%s12449_s3 + $0x268] sm:$0xff]  }
 0x1f8   :  { %8489 = vmatprep.mubr.msk.bf16.mxu1 %vm9419_vm1, %v12510_v22  ;;  %8505 = vmatprep.subr.bf16.mxu0 %v12510_v22 }
 0x1f9   :  { %8542 = vmatpush3.bf16.msra.mxu1 %v9193_v46  ;;  %v3436_v46 = vsel %vm2329_vm2, %v10996_v23, %v10979_v31  ;;  %v9210_v31 = vld [vmem:[%s12449_s3 + $0x250] sm:$0xff]   ;;  %v12564_v23 = vld [vmem:[#allocation25_spill] sm:$0xff] }
 0x1fa   :  { %8543 = vmatprep.subr.bf16.mxu1 %v12510_v22  ;;  %8450 = vmatmul.mubr.bf16.gmra.mxu0 %v10827_v44 }
 0x1fb   :  { %8506 = vmatpush3.bf16.msra.mxu0 %v9192_v13  ;;  %8453 = vmatprep.mubr.msk.bf16.mxu0 %vm9419_vm1, %v12510_v22  ;;  %v12563_v13 = vld [vmem:[#allocation53_spill] sm:$0xff] }
 0x1fc   :  { %8507 = vmatprep.subr.bf16.mxu0 %v12510_v22  ;;  %v1565_v8 = vadd.f32 %v12563_v13, %v12562_v56  ;;  %v12567_v13 = vld [vmem:[#allocation47_spill] sm:$0xff] }
 0x1fd   :  { %8544 = vmatpush3.bf16.msra.mxu1 %v9194_v57  ;;  %v9208_v57 = vld [vmem:[%s12449_s3 + $0x218] sm:$0xff]  }
 0x1fe   :  { %8545 = vmatprep.subr.bf16.mxu1 %v12510_v22  ;;  %v1969_v28 = vadd.f32 %v10981_v20, %v1565_v8  ;;  %v9211_v20 = vld [vmem:[%s12449_s3 + $0x210] sm:$0xff]  }
 0x1ff   :  { %8490 = vmatmul.mubr.bf16.gmra.mxu1 %v3125_v18  ;;  %8508 = vmatpush3.bf16.msra.mxu0 %v9195_v41  ;;  %v1564_v41 = vadd.f32 %v12565_v49, %v12564_v23  ;;  %v9212_v18 = vld [vmem:[%s12449_s3 + $0x248] sm:$0xff]   ;;  %v12569_v49 = vld [vmem:[#allocation33_spill] sm:$0xff] }
 0x200   :  { %8493 = vmatprep.mubr.msk.bf16.mxu1 %vm9419_vm1, %v12510_v22  ;;  %8509 = vmatprep.subr.bf16.mxu0 %v12510_v22  ;;  %v12568_v23 = vld [vmem:[#allocation23_spill] sm:$0xff] }
 0x201   :  { %8546 = vmatpush3.bf16.msra.mxu1 %v9196_v29  ;;  %v1968_v2 = vadd.f32 %v10948_v21, %v1564_v41  ;;  %v2040_v29 = vadd.f32 %v11117_v34, %v1969_v28  ;;  %v9213_v21 = vld [vmem:[%s12449_s3 + $0x208] sm:$0xff]   ;;  %v1105_v41 = vadd.f32 %v12569_v49, %v12568_v23 }
 0x202   :  { %8547 = vmatprep.subr.bf16.mxu1 %v12510_v22  ;;  %8454 = vmatmul.mubr.bf16.gmra.mxu0 %v10985_v14  ;;  %v11278_v14 = vpack.c.bf16 %v2101_v10, %v2101_v10  ;;  %v9215_v10 = vld [vmem:[%s12449_s3 + $0x200] sm:$0xff]   ;;  %v9229_v49 = vld [vmem:[%s12449_s3 + $0x288] sm:$0xff]  }
 0x203   :  { %8457 = vmatprep.mubr.msk.bf16.mxu0 %vm9419_vm1, %v12510_v22  ;;  %8510 = vmatpush3.bf16.msra.mxu0 %v9197_v52  ;;  %v11363_v52 = vsel %vm2329_vm2, %v10975_v16, %v11271_v51  ;;  %v2039_v4 = vadd.f32 %v11117_v34, %v1968_v2  ;;  %v2104_v35 = vmax.f32 %v2040_v29, 0.0  ;;  %v9214_v16 = vld [vmem:[%s12449_s3 + $0x240] sm:$0xff]   ;;  %v9218_v29 = vld [vmem:[%s12449_s3 + $0x2b0] sm:$0xff]  }
 0x204   :  { %8511 = vmatprep.subr.bf16.mxu0 %v12510_v22 }
 0x205   :  { %8548 = vmatpush3.bf16.msra.mxu1 %v9198_v33  ;;  %v11380_v33 = vsel %vm2329_vm2, %v10945_v7, %v11278_v14 }
 0x206   :  { %8605 = vmatprep.subr.bf16.mxu1 %v12510_v22 }
 0x207   :  { %8494 = vmatmul.mubr.bf16.gmra.mxu1 %v11271_v51  ;;  %8512 = vmatpush3.bf16.msra.mxu0 %v9199_v55  ;;  %v11384_v55 = vpop.f32.mrf.mxu1 }
 0x208   :  { %8549 = vmatprep.mubr.msk.bf16.mxu1 %vm9419_vm1, %v12510_v22  ;;  %8569 = vmatprep.subr.bf16.mxu0 %v12510_v22 }
 0x20a   :  { %8458 = vmatmul.mubr.bf16.gmra.mxu0 %v11278_v14 }
 0x20b   :  { %8513 = vmatprep.mubr.msk.bf16.mxu0 %vm9419_vm1, %v12510_v22 }
 0x20f   :  { %8550 = vmatmul.mubr.bf16.vlgmr.msra.gmra.mxu1 %v10662_v15  ;;  %v9202_v15 = vld [vmem:[%s12449_s3 + $0x230] sm:$0xff]  }
 0x210   :  { %8553 = vmatprep.mubr.msk.bf16.mxu1 %vm9419_vm1, %v12510_v22  ;;  %8606 = vmatpush3.bf16.msra.mxu1 %v9201_v61  ;;  %v2103_v61 = vmax.f32 %v2039_v4, 0.0  ;;  %v12573_v4 = vld [vmem:[#allocation13_spill] sm:$0xff] }
 0x211   :  { %8607 = vmatprep.subr.bf16.mxu1 %v12510_v22 }
 0x212   :  { %8514 = vmatmul.mubr.bf16.vlgmr.msra.gmra.mxu0 %v10635_v12  ;;  %v9204_v12 = vld [vmem:[%s12449_s3 + $0x228] sm:$0xff]  }
 0x213   :  { %8570 = vmatpush3.bf16.msra.mxu0 %v9200_v32  ;;  %8517 = vmatprep.mubr.msk.bf16.mxu0 %vm9419_vm1, %v12510_v22  ;;  %v11391_v32 = vpack.c.bf16 %v2104_v35, %v2104_v35 }
 0x214   :  { %8571 = vmatprep.subr.bf16.mxu0 %v12510_v22  ;;  %8608 = vmatpush3.bf16.msra.mxu1 %v9203_v62 }
 0x215   :  { %8609 = vmatprep.subr.bf16.mxu1 %v12510_v22 }
 0x217   :  { %8554 = vmatmul.mubr.bf16.gmra.mxu1 %v10797_v19  ;;  %8572 = vmatpush3.bf16.msra.mxu0 %v9202_v15  ;;  %v9206_v19 = vld [vmem:[%s12449_s3 + $0x220] sm:$0xff]   ;;  %v11398_v15 = vpack.c.bf16 %v2103_v61, %v2103_v61  ;;  %v9220_v61 = vld [vmem:[%s12449_s3 + $0x2a8] sm:$0xff]  }
 0x218   :  { %8557 = vmatprep.mubr.msk.bf16.mxu1 %vm9419_vm1, %v12510_v22  ;;  %8573 = vmatprep.subr.bf16.mxu0 %v12510_v22 }
 0x219   :  { %8610 = vmatpush3.bf16.msra.mxu1 %v9205_v11  ;;  %v11400_v11 = vpop.f32.mrf.mxu0 }
 0x21a   :  { %8611 = vmatprep.subr.bf16.mxu1 %v12510_v22  ;;  %8518 = vmatmul.mubr.bf16.gmra.mxu0 %v12561_v45 }
 0x21b   :  { %8574 = vmatpush3.bf16.msra.mxu0 %v9204_v12  ;;  %8521 = vmatprep.mubr.msk.bf16.mxu0 %vm9419_vm1, %v12510_v22 }
 0x21c   :  { %8575 = vmatprep.subr.bf16.mxu0 %v12510_v22 }
 0x21d   :  { %8612 = vmatpush3.bf16.msra.mxu1 %v9207_v6 }
 0x21e   :  { %8613 = vmatprep.subr.bf16.mxu1 %v12510_v22 }
 0x21f   :  { %8558 = vmatmul.mubr.bf16.gmra.mxu1 %v3436_v46  ;;  %8576 = vmatpush3.bf16.msra.mxu0 %v9206_v19 }
 0x220   :  { %8561 = vmatprep.mubr.msk.bf16.mxu1 %vm9419_vm1, %v12510_v22  ;;  %8577 = vmatprep.subr.bf16.mxu0 %v12510_v22 }
 0x221   :  { %8614 = vmatpush3.bf16.msra.mxu1 %v9209_v40  ;;  %v9217_v40 = vld [vmem:[%s12449_s3 + $0x2f8] sm:$0xff]  }
 0x222   :  { %8615 = vmatprep.subr.bf16.mxu1 %v12510_v22  ;;  %8522 = vmatmul.mubr.bf16.gmra.mxu0 %v12566_v53  ;;  %v12570_v53 = vld [vmem:[#allocation46_spill] sm:$0xff] }
 0x223   :  { %8578 = vmatpush3.bf16.msra.mxu0 %v9208_v57  ;;  %8525 = vmatprep.mubr.msk.bf16.mxu0 %vm9419_vm1, %v12510_v22  ;;  %v9216_v57 = vld [vmem:[%s12449_s3 + $0x2b8] sm:$0xff]  }
 0x224   :  { %8579 = vmatprep.subr.bf16.mxu0 %v12510_v22 }
 0x225   :  { %8616 = vmatpush3.bf16.msra.mxu1 %v9210_v31  ;;  %v9219_v31 = vld [vmem:[%s12449_s3 + $0x2f0] sm:$0xff]  }
 0x226   :  { %8617 = vmatprep.subr.bf16.mxu1 %v12510_v22 }
 0x227   :  { %8562 = vmatmul.mubr.bf16.gmra.mxu1 %v11363_v52  ;;  %8580 = vmatpush3.bf16.msra.mxu0 %v9211_v20  ;;  %v12571_v20 = vld [vmem:[#allocation2_spill] sm:$0xff] }
 0x228   :  { %8565 = vmatprep.mubr.msk.bf16.mxu1 %vm9419_vm1, %v12510_v22  ;;  %8581 = vmatprep.subr.bf16.mxu0 %v12510_v22  ;;  %v1567_v2 = vadd.f32 %v12571_v20, %v1105_v41  ;;  %v9230_v20 = vld [vmem:[%s12449_s3 + $0x2c0] sm:$0xff]  }
 0x229   :  { %8618 = vmatpush3.bf16.msra.mxu1 %v9212_v18  ;;  %v9221_v18 = vld [vmem:[%s12449_s3 + $0x2e8] sm:$0xff]  }
 0x22a   :  { %8619 = vmatprep.subr.bf16.mxu1 %v12510_v22  ;;  %8526 = vmatmul.mubr.bf16.gmra.mxu0 %v11380_v33 }
 0x22b   :  { %8529 = vmatprep.mubr.msk.bf16.mxu0 %vm9419_vm1, %v12510_v22  ;;  %8582 = vmatpush3.bf16.msra.mxu0 %v9213_v21  ;;  %v12572_v21 = vld [vmem:[#allocation32_spill] sm:$0xff] }
 0x22c   :  { %8583 = vmatprep.subr.bf16.mxu0 %v12510_v22  ;;  %v1569_v35 = vadd.f32 %v12573_v4, %v12572_v21  ;;  %v9231_v21 = vld [vmem:[%s12449_s3 + $0x280] sm:$0xff]  }
 0x22d   :  { %8620 = vmatpush3.bf16.msra.mxu1 %v9214_v16  ;;  %v1971_v16 = vadd.f32 %v11039_v36, %v1567_v2  ;;  %v9223_v36 = vld [vmem:[%s12449_s3 + $0x2e0] sm:$0xff]  }
 0x22e   :  { %v2597_v7 = vpop.f32.mrf.mxu1  ;;  %8677 = vmatprep.subr.bf16.mxu1 %v12510_v22 }
 0x22f   :  { %8566 = vmatmul.mubr.bf16.gmra.mxu1 %v11391_v32  ;;  %8584 = vmatpush3.bf16.msra.mxu0 %v9215_v10  ;;  %v1973_v10 = vadd.f32 %v11034_v5, %v1569_v35  ;;  %v9222_v5 = vld [vmem:[%s12449_s3 + $0x2a0] sm:$0xff]  }
 0x230   :  { %v8335_v62 = vpop.f32.mrf.mxu1  ;;  %8621 = vmatprep.mubr.msk.bf16.mxu1 %vm9419_vm1, %v12510_v22  ;;  %8641 = vmatprep.subr.bf16.mxu0 %v12510_v22 }
 0x231   :  { %v12574_v62 = vld [vmem:[#allocation28_spill] sm:$0xff] }
 0x232   :  { %v2600_v12 = vpop.f32.mrf.mxu1  ;;  %v2477_v6 = vpop.f32.mrf.mxu0  ;;  %8530 = vmatmul.mubr.bf16.gmra.mxu0 %v11398_v15 }
 0x233   :  { %v11404_v45 = vadd.f32 %v2597_v7, %v2477_v6  ;;  %8585 = vmatprep.mubr.msk.bf16.mxu0 %vm9419_vm1, %v12510_v22  ;;  %v2042_v7 = vadd.f32 %v11117_v34, %v1971_v16 }
 0x234   :  { %v8336_v19 = vpop.f32.mrf.mxu1  ;;  %v8299_v46 = vpop.f32.mrf.mxu0 }
 0x235   :  { %v2106_v19 = vmax.f32 %v2042_v7, 0.0 }
 0x236   :  { %v2480_v56 = vpop.f32.mrf.mxu0 }
 0x237   :  { %8622 = vmatmul.mubr.bf16.vlgmr.msra.gmra.mxu1 %v12567_v13  ;;  %v11412_v8 = vadd.f32 %v2600_v12, %v2480_v56  ;;  %v12575_v12 = vld [vmem:[#allocation37_spill] sm:$0xff] }
 0x238   :  { %8625 = vmatprep.mubr.msk.bf16.mxu1 %vm9419_vm1, %v12510_v22  ;;  %8678 = vmatpush3.bf16.msra.mxu1 %v9217_v40  ;;  %v8300_v28 = vpop.f32.mrf.mxu0  ;;  %v1121_v6 = vadd.f32 %v12575_v12, %v12574_v62  ;;  %v9224_v56 = vld [vmem:[%s12449_s3 + $0x298] sm:$0xff]  }
 0x239   :  { %8679 = vmatprep.subr.bf16.mxu1 %v12510_v22  ;;  %v9233_v12 = vld [vmem:[%s12449_s3 + $0x378] sm:$0xff]  }
 0x23a   :  { %8586 = vmatmul.mubr.bf16.vlgmr.msra.gmra.mxu0 %v12570_v53  ;;  %v1571_v40 = vadd.f32 %v10886_v37, %v1121_v6  ;;  %v9226_v37 = vld [vmem:[%s12449_s3 + $0x2d0] sm:$0xff]  }
 0x23b   :  { %8642 = vmatpush3.bf16.msra.mxu0 %v9216_v57  ;;  %8589 = vmatprep.mubr.msk.bf16.mxu0 %vm9419_vm1, %v12510_v22  ;;  %v7492_v57 = vpack.c.bf16 %v2106_v19, %v2106_v19 }
 0x23c   :  { %8643 = vmatprep.subr.bf16.mxu0 %v12510_v22  ;;  %8680 = vmatpush3.bf16.msra.mxu1 %v9219_v31  ;;  %v1975_v13 = vadd.f32 %v11077_v43, %v1571_v40  ;;  %v9227_v43 = vld [vmem:[%s12449_s3 + $0x290] sm:$0xff]   ;;  %v9228_v31 = vld [vmem:[%s12449_s3 + $0x2c8] sm:$0xff]   ;;  %v12576_v40 = vld [vmem:[#allocation50_spill] sm:$0xff] }
 0x23d   :  { %8681 = vmatprep.subr.bf16.mxu1 %v12510_v22 }
 0x23e   :  { %v2046_v28 = vadd.f32 %v11117_v34, %v1975_v13  ;;  %v9235_v13 = vld [vmem:[%s12449_s3 + $0x370] sm:$0xff]  }
 0x23f   :  { %8626 = vmatmul.mubr.bf16.gmra.mxu1 %v10905_v59  ;;  %8644 = vmatpush3.bf16.msra.mxu0 %v9218_v29  ;;  %v2044_v59 = vadd.f32 %v11117_v34, %v1973_v10 }
 0x240   :  { %8629 = vmatprep.mubr.msk.bf16.mxu1 %vm9419_vm1, %v12510_v22  ;;  %8645 = vmatprep.subr.bf16.mxu0 %v12510_v22  ;;  %v2110_v41 = vmax.f32 %v2046_v28, 0.0  ;;  %v9236_v28 = vld [vmem:[%s12449_s3 + $0x328] sm:$0xff]  }
 0x241   :  { %8682 = vmatpush3.bf16.msra.mxu1 %v9221_v18  ;;  %v2108_v46 = vmax.f32 %v2044_v59, 0.0 }
 0x242   :  { %8683 = vmatprep.subr.bf16.mxu1 %v12510_v22  ;;  %8590 = vmatmul.mubr.bf16.gmra.mxu0 %v10877_v39  ;;  %v9225_v39 = vld [vmem:[%s12449_s3 + $0x2d8] sm:$0xff]   ;;  %v11514_v4 = vpack.c.bf16 %v2110_v41, %v2110_v41 }
 0x243   :  { %8646 = vmatpush3.bf16.msra.mxu0 %v9220_v61  ;;  %8593 = vmatprep.mubr.msk.bf16.mxu0 %vm9419_vm1, %v12510_v22  ;;  %v9240_v41 = vld [vmem:[%s12449_s3 + $0x318] sm:$0xff]  }
 0x244   :  { %8647 = vmatprep.subr.bf16.mxu0 %v12510_v22 }
 0x245   :  { %8684 = vmatpush3.bf16.msra.mxu1 %v9223_v36 }
 0x246   :  { %8685 = vmatprep.subr.bf16.mxu1 %v12510_v22 }
 0x247   :  { %8630 = vmatmul.mubr.bf16.gmra.mxu1 %v11107_v25  ;;  %8648 = vmatpush3.bf16.msra.mxu0 %v9222_v5  ;;  %v11481_v25 = vpack.c.bf16 %v2108_v46, %v2108_v46 }
 0x248   :  { %8633 = vmatprep.mubr.msk.bf16.mxu1 %vm9419_vm1, %v12510_v22  ;;  %8649 = vmatprep.subr.bf16.mxu0 %v12510_v22 }
 0x249   :  { %8686 = vmatpush3.bf16.msra.mxu1 %v9225_v39 }
 0x24a   :  { %8687 = vmatprep.subr.bf16.mxu1 %v12510_v22  ;;  %8594 = vmatmul.mubr.bf16.gmra.mxu0 %v10925_v3  ;;  %v3747_v3 = vsel %vm2329_vm2, %v7492_v57, %v11481_v25  ;;  %v9234_v57 = vld [vmem:[%s12449_s3 + $0x330] sm:$0xff]  }
 0x24b   :  { %8650 = vmatpush3.bf16.msra.mxu0 %v9224_v56  ;;  %8597 = vmatprep.mubr.msk.bf16.mxu0 %vm9419_vm1, %v12510_v22 }
 0x24c   :  { %8651 = vmatprep.subr.bf16.mxu0 %v12510_v22 }
 0x24d   :  { %8688 = vmatpush3.bf16.msra.mxu1 %v9226_v37  ;;  %v12577_v37 = vld [vmem:[#allocation48_spill] sm:$0xff] }
 0x24e   :  { %8689 = vmatprep.subr.bf16.mxu1 %v12510_v22 }
 0x24f   :  { %v2605_v23 = vpop.f32.mrf.mxu1  ;;  %8634 = vmatmul.mubr.bf16.gmra.mxu1 %v3747_v3  ;;  %8652 = vmatpush3.bf16.msra.mxu0 %v9227_v43  ;;  %v9237_v43 = vld [vmem:[%s12449_s3 + $0x368] sm:$0xff]   ;;  %v12578_v3 = vld [vmem:[#allocation12_spill] sm:$0xff] }
 0x250   :  { %8637 = vmatprep.mubr.msk.bf16.mxu1 %vm9419_vm1, %v12510_v22  ;;  %8653 = vmatprep.subr.bf16.mxu0 %v12510_v22 }
 0x251   :  { %v8339_v53 = vpop.f32.mrf.mxu1  ;;  %8690 = vmatpush3.bf16.msra.mxu1 %v9228_v31  ;;  %v9239_v31 = vld [vmem:[%s12449_s3 + $0x360] sm:$0xff]  }
 0x252   :  { %8691 = vmatprep.subr.bf16.mxu1 %v12510_v22  ;;  %v2485_v2 = vpop.f32.mrf.mxu0  ;;  %8598 = vmatmul.mubr.bf16.gmra.mxu0 %v11071_v63 }
 0x253   :  { %v2608_v29 = vpop.f32.mrf.mxu1  ;;  %v11507_v18 = vadd.f32 %v2605_v23, %v2485_v2  ;;  %8601 = vmatprep.mubr.msk.bf16.mxu0 %vm9419_vm1, %v12510_v22  ;;  %8654 = vmatpush3.bf16.msra.mxu0 %v9229_v49  ;;  %v9241_v23 = vld [vmem:[%s12449_s3 + $0x358] sm:$0xff]  }
 0x254   :  { %v8303_v35 = vpop.f32.mrf.mxu0  ;;  %8655 = vmatprep.subr.bf16.mxu0 %v12510_v22 }
 0x255   :  { %v8340_v16 = vpop.f32.mrf.mxu1  ;;  %8692 = vmatpush3.bf16.msra.mxu1 %v9230_v20  ;;  %v9242_v20 = vld [vmem:[%s12449_s3 + $0x350] sm:$0xff]  }
 0x256   :  { %8749 = vmatprep.subr.bf16.mxu1 %v12510_v22  ;;  %v2488_v63 = vpop.f32.mrf.mxu0  ;;  %v9243_v35 = vld [vmem:[%s12449_s3 + $0x310] sm:$0xff]   ;;  %v2048_v16 = vadd.f32 %v11117_v34, %v11075_v48  ;;  %v9245_v48 = vld [vmem:[%s12449_s3 + $0x308] sm:$0xff]  }
 0x257   :  { %v2613_v10 = vpop.f32.mrf.mxu1  ;;  %8638 = vmatmul.mubr.bf16.gmra.mxu1 %v11514_v4  ;;  %v11519_v61 = vadd.f32 %v2608_v29, %v2488_v63  ;;  %8656 = vmatpush3.bf16.msra.mxu0 %v9231_v21  ;;  %v12579_v29 = vld [vmem:[#allocation11_spill] sm:$0xff] }
 0x258   :  { %8693 = vmatprep.mubr.msk.bf16.mxu1 %vm9419_vm1, %v12510_v22  ;;  %v8304_v36 = vpop.f32.mrf.mxu0  ;;  %8713 = vmatprep.subr.bf16.mxu0 %v12510_v22 }
 0x259   :  { %v8343_v7 = vpop.f32.mrf.mxu1  ;;  %v9244_v36 = vld [vmem:[%s12449_s3 + $0x348] sm:$0xff]  }
 0x25a   :  { %8602 = vmatmul.mubr.bf16.gmra.mxu0 %v11089_v0  ;;  %v9232_v0 = vld [vmem:[%s12449_s3 + $0x338] sm:$0xff]   ;;  %v4055_v7 = vsel %vm2329_vm2, %v11481_v25, %v11514_v4 }
 0x25b   :  { %v2493_v59 = vpop.f32.mrf.mxu0  ;;  %v2616_v5 = vpop.f32.mrf.mxu1  ;;  %8657 = vmatprep.mubr.msk.bf16.mxu0 %vm9419_vm1, %v12510_v22 }
 0x25c   :  { %v11525_v62 = vadd.f32 %v2613_v10, %v2493_v59 }
 0x25d   :  { %v8307_v6 = vpop.f32.mrf.mxu0  ;;  %v8344_v39 = vpop.f32.mrf.mxu1 }
 0x25e   :  { %v2047_v6 = vadd.f32 %v11117_v34, %v11054_v30  ;;  %v2112_v39 = vmax.f32 %v2048_v16, 0.0  ;;  %v9247_v30 = vld [vmem:[%s12449_s3 + $0x300] sm:$0xff]  }
 0x25f   :  { %v2496_v19 = vpop.f32.mrf.mxu0  ;;  %8694 = vmatmul.mubr.bf16.vlgmr.msra.gmra.mxu1 %v12576_v40  ;;  %v12580_v16 = vld [vmem:[#allocation54_spill] sm:$0xff] }
 0x260   :  { %v11533_v46 = vadd.f32 %v2616_v5, %v2496_v19  ;;  %8697 = vmatprep.mubr.msk.bf16.mxu1 %vm9419_vm1, %v12510_v22  ;;  %8750 = vmatpush3.bf16.msra.mxu1 %v9233_v12  ;;  %v9246_v19 = vld [vmem:[%s12449_s3 + $0x340] sm:$0xff]  }
 0x261   :  { %v8308_v56 = vpop.f32.mrf.mxu0  ;;  %8751 = vmatprep.subr.bf16.mxu1 %v12510_v22 }
 0x262   :  { %8658 = vmatmul.mubr.bf16.vlgmr.msra.gmra.mxu0 %v12577_v37  ;;  %v7498_v37 = vpack.c.bf16 %v2112_v39, %v2112_v39 }
 0x263   :  { %8714 = vmatpush3.bf16.msra.mxu0 %v9232_v0  ;;  %8661 = vmatprep.mubr.msk.bf16.mxu0 %vm9419_vm1, %v12510_v22 }
 0x264   :  { %8715 = vmatprep.subr.bf16.mxu0 %v12510_v22  ;;  %8752 = vmatpush3.bf16.msra.mxu1 %v9235_v13  ;;  %v2111_v13 = vmax.f32 %v2047_v6, 0.0 }
 0x265   :  { %8753 = vmatprep.subr.bf16.mxu1 %v12510_v22 }
 0x267   :  { %8698 = vmatmul.mubr.bf16.gmra.mxu1 %v10893_v9  ;;  %8716 = vmatpush3.bf16.msra.mxu0 %v9234_v57  ;;  %v9238_v9 = vld [vmem:[%s12449_s3 + $0x320] sm:$0xff]  }
 0x268   :  { %8701 = vmatprep.mubr.msk.bf16.mxu1 %vm9419_vm1, %v12510_v22  ;;  %8717 = vmatprep.subr.bf16.mxu0 %v12510_v22 }
 0x269   :  { %8754 = vmatpush3.bf16.msra.mxu1 %v9237_v43 }
 0x26a   :  { %8755 = vmatprep.subr.bf16.mxu1 %v12510_v22  ;;  %8662 = vmatmul.mubr.bf16.gmra.mxu0 %v12578_v3 }
 0x26b   :  { %8718 = vmatpush3.bf16.msra.mxu0 %v9236_v28  ;;  %8665 = vmatprep.mubr.msk.bf16.mxu0 %vm9419_vm1, %v12510_v22 }
 0x26c   :  { %8719 = vmatprep.subr.bf16.mxu0 %v12510_v22 }
 0x26d   :  { %8756 = vmatpush3.bf16.msra.mxu1 %v9239_v31  ;;  %v7497_v31 = vpack.c.bf16 %v2111_v13, %v2111_v13 }
 0x26e   :  { %8757 = vmatprep.subr.bf16.mxu1 %v12510_v22 }
 0x26f   :  { %v2621_v49 = vpop.f32.mrf.mxu1  ;;  %8702 = vmatmul.mubr.bf16.gmra.mxu1 %v10953_v1  ;;  %8720 = vmatpush3.bf16.msra.mxu0 %v9238_v9 }
 0x270   :  { %8705 = vmatprep.mubr.msk.bf16.mxu1 %vm9419_vm1, %v12510_v22  ;;  %8721 = vmatprep.subr.bf16.mxu0 %v12510_v22 }
 0x271   :  { %v8347_v53 = vpop.f32.mrf.mxu1  ;;  %8758 = vmatpush3.bf16.msra.mxu1 %v9241_v23 }
 0x272   :  { %8759 = vmatprep.subr.bf16.mxu1 %v12510_v22  ;;  %v2501_v2 = vpop.f32.mrf.mxu0  ;;  %8666 = vmatmul.mubr.bf16.gmra.mxu0 %v12579_v29  ;;  %v9249_v53 = vld [vmem:[%s12449_s3 + $0x3f8] sm:$0xff]  }
 0x273   :  { %v2624_v1 = vpop.f32.mrf.mxu1  ;;  %v11589_v21 = vadd.f32 %v2621_v49, %v2501_v2  ;;  %8722 = vmatpush3.bf16.msra.mxu0 %v9240_v41  ;;  %8669 = vmatprep.mubr.msk.bf16.mxu0 %vm9419_vm1, %v12510_v22 }
 0x274   :  { %v8311_v63 = vpop.f32.mrf.mxu0  ;;  %8723 = vmatprep.subr.bf16.mxu0 %v12510_v22 }
 0x275   :  { %v8348_v10 = vpop.f32.mrf.mxu1  ;;  %8760 = vmatpush3.bf16.msra.mxu1 %v9242_v20 }
 0x276   :  { %8761 = vmatprep.subr.bf16.mxu1 %v12510_v22  ;;  %v2504_v59 = vpop.f32.mrf.mxu0 }
 0x277   :  { %v2629_v5 = vpop.f32.mrf.mxu1  ;;  %8706 = vmatmul.mubr.bf16.gmra.mxu1 %v4055_v7  ;;  %v11606_v12 = vadd.f32 %v2624_v1, %v2504_v59  ;;  %8724 = vmatpush3.bf16.msra.mxu0 %v9243_v35  ;;  %v9251_v7 = vld [vmem:[%s12449_s3 + $0x3f0] sm:$0xff]   ;;  %v12581_v59 = vld [vmem:[#allocation6_spill] sm:$0xff] }
 0x278   :  { %8709 = vmatprep.mubr.msk.bf16.mxu1 %vm9419_vm1, %v12510_v22  ;;  %v8312_v25 = vpop.f32.mrf.mxu0  ;;  %8725 = vmatprep.subr.bf16.mxu0 %v12510_v22 }
 0x279   :  { %v8351_v4 = vpop.f32.mrf.mxu1  ;;  %8762 = vmatpush3.bf16.msra.mxu1 %v9244_v36  ;;  %v12583_v25 = vld [vmem:[#allocation52_spill] sm:$0xff] }
 0x27a   :  { %8763 = vmatprep.subr.bf16.mxu1 %v12510_v22  ;;  %v2509_v40 = vpop.f32.mrf.mxu0  ;;  %8670 = vmatmul.mubr.bf16.gmra.mxu0 %v11112_v27  ;;  %v12584_v4 = vld [vmem:[#allocation19_spill] sm:$0xff] }
 0x27b   :  { %v2632_v0 = vpop.f32.mrf.mxu1  ;;  %v11621_v56 = vadd.f32 %v2629_v5, %v2509_v40  ;;  %8673 = vmatprep.mubr.msk.bf16.mxu0 %vm9419_vm1, %v12510_v22  ;;  %8726 = vmatpush3.bf16.msra.mxu0 %v9245_v48  ;;  %v12582_v5 = vld [vmem:[#allocation41_spill] sm:$0xff] }
 0x27c   :  { %v8315_v57 = vpop.f32.mrf.mxu0  ;;  %8727 = vmatprep.subr.bf16.mxu0 %v12510_v22  ;;  %v1137_v48 = vadd.f32 %v12582_v5, %v12581_v59  ;;  %v9250_v0 = vld [vmem:[%s12449_s3 + $0x3b0] sm:$0xff]   ;;  %v9256_v5 = vld [vmem:[%s12449_s3 + $0x398] sm:$0xff]  }
 0x27d   :  { %v8352_v43 = vpop.f32.mrf.mxu1  ;;  %8764 = vmatpush3.bf16.msra.mxu1 %v9246_v19 }
 0x27e   :  { %8821 = vmatprep.subr.bf16.mxu1 %v12510_v22  ;;  %v2512_v27 = vpop.f32.mrf.mxu0  ;;  %v1575_v19 = vadd.f32 %v12584_v4, %v1137_v48 }
 0x27f   :  { %v2902_v28 = vpop.f32.mrf.mxu1  ;;  %8710 = vmatmul.mubr.bf16.gmra.mxu1 %v7498_v37  ;;  %8728 = vmatpush3.bf16.msra.mxu0 %v9247_v30  ;;  %v9253_v37 = vld [vmem:[%s12449_s3 + $0x3e8] sm:$0xff]  }
 0x280   :  { %8765 = vmatprep.mubr.msk.bf16.mxu1 %vm9419_vm1, %v12510_v22  ;;  %v8316_v3 = vpop.f32.mrf.mxu0  ;;  %8785 = vmatprep.subr.bf16.mxu0 %v12510_v22  ;;  %v1979_v57 = vadd.f32 %v11124_v17, %v1575_v19 }
 0x281   :  { %v8407_v9 = vpop.f32.mrf.mxu1 }
 0x282   :  { %v2745_v23 = vpop.f32.mrf.mxu0  ;;  %8674 = vmatmul.mubr.bf16.gmra.mxu0 %v7497_v31  ;;  %v9252_v31 = vld [vmem:[%s12449_s3 + $0x3a8] sm:$0xff]   ;;  %v9255_v9 = vld [vmem:[%s12449_s3 + $0x3e0] sm:$0xff]  }
 0x283   :  { %v2905_v49 = vpop.f32.mrf.mxu1  ;;  %v2783_v41 = vadd.f32 %v2745_v23, %v11404_v45  ;;  %8729 = vmatprep.mubr.msk.bf16.mxu0 %vm9419_vm1, %v12510_v22  ;;  %v9248_v45 = vld [vmem:[%s12449_s3 + $0x3b8] sm:$0xff]  }
 0x284   :  { %v8371_v20 = vpop.f32.mrf.mxu0 }
 0x285   :  { %v8408_v2 = vpop.f32.mrf.mxu1  ;;  %v11639_v1 = vadd.f32 %v2902_v28, %v2783_v41  ;;  %v2052_v41 = vadd.f32 %v11117_v34, %v11121_v50  ;;  %v9254_v20 = vld [vmem:[%s12449_s3 + $0x3a0] sm:$0xff]  }
 0x286   :  { %v2748_v29 = vpop.f32.mrf.mxu0  ;;  %v12585_v2 = vld [vmem:[#allocation10_spill] sm:$0xff] }
 0x287   :  { %v2910_v35 = vpop.f32.mrf.mxu1  ;;  %8766 = vmatmul.mubr.bf16.vlgmr.msra.gmra.mxu1 %v12580_v16  ;;  %v2784_v63 = vadd.f32 %v2748_v29, %v11412_v8  ;;  %v12586_v29 = vld [vmem:[#allocation45_spill] sm:$0xff] }
 0x288   :  { %8769 = vmatprep.mubr.msk.bf16.mxu1 %vm9419_vm1, %v12510_v22  ;;  %8822 = vmatpush3.bf16.msra.mxu1 %v9249_v53  ;;  %v8372_v10 = vpop.f32.mrf.mxu0 }
 0x289   :  { %v8411_v36 = vpop.f32.mrf.mxu1  ;;  %8823 = vmatprep.subr.bf16.mxu1 %v12510_v22  ;;  %v11654_v8 = vadd.f32 %v2905_v49, %v2784_v63 }
 0x28a   :  { %v2753_v6 = vpop.f32.mrf.mxu0  ;;  %8730 = vmatmul.mubr.bf16.vlgmr.msra.gmra.mxu0 %v12583_v25 }
 0x28b   :  { %v2913_v39 = vpop.f32.mrf.mxu1  ;;  %v2785_v40 = vadd.f32 %v2753_v6, %v11507_v18  ;;  %8786 = vmatpush3.bf16.msra.mxu0 %v9248_v45  ;;  %8733 = vmatprep.mubr.msk.bf16.mxu0 %vm9419_vm1, %v12510_v22 }
 0x28c   :  { %v8375_v30 = vpop.f32.mrf.mxu0  ;;  %8787 = vmatprep.subr.bf16.mxu0 %v12510_v22  ;;  %8824 = vmatpush3.bf16.msra.mxu1 %v9251_v7  ;;  %v2116_v7 = vmax.f32 %v2052_v41, 0.0 }
 0x28d   :  { %v8412_v13 = vpop.f32.mrf.mxu1  ;;  %8825 = vmatprep.subr.bf16.mxu1 %v12510_v22  ;;  %v11670_v18 = vadd.f32 %v2910_v35, %v2785_v40  ;;  %v1153_v35 = vadd.f32 %v12586_v29, %v12585_v2  ;;  %v9259_v40 = vld [vmem:[%s12449_s3 + $0x390] sm:$0xff]  }
 0x28e   :  { %v2756_v43 = vpop.f32.mrf.mxu0  ;;  %v11722_v19 = vpack.c.bf16 %v2116_v7, %v2116_v7 }
 0x28f   :  { %v2918_v27 = vpop.f32.mrf.mxu1  ;;  %8770 = vmatmul.mubr.bf16.gmra.mxu1 %v11019_v58  ;;  %v2786_v28 = vadd.f32 %v2756_v43, %v11519_v61  ;;  %8788 = vmatpush3.bf16.msra.mxu0 %v9250_v0  ;;  %v2050_v58 = vadd.f32 %v11117_v34, %v1979_v57  ;;  %v1579_v45 = vadd.f32 %v11400_v11, %v1153_v35 }
 0x290   :  { %8773 = vmatprep.mubr.msk.bf16.mxu1 %vm9419_vm1, %v12510_v22  ;;  %v8376_v3 = vpop.f32.mrf.mxu0  ;;  %8789 = vmatprep.subr.bf16.mxu0 %v12510_v22 }
 0x291   :  { %v8415_v17 = vpop.f32.mrf.mxu1  ;;  %8826 = vmatpush3.bf16.msra.mxu1 %v9253_v37  ;;  %v11685_v61 = vadd.f32 %v2913_v39, %v2786_v28  ;;  %v2114_v50 = vmax.f32 %v2050_v58, 0.0  ;;  %v1983_v48 = vadd.f32 %v11384_v55, %v1579_v45 }
 0x292   :  { %8827 = vmatprep.subr.bf16.mxu1 %v12510_v22  ;;  %v2761_v23 = vpop.f32.mrf.mxu0  ;;  %8734 = vmatmul.mubr.bf16.gmra.mxu0 %v10989_v47  ;;  %v9257_v47 = vld [vmem:[%s12449_s3 + $0x3d8] sm:$0xff]   ;;  %v9262_v17 = vld [vmem:[%s12449_s3 + $0x3c0] sm:$0xff]  }
 0x293   :  { %v2921_v49 = vpop.f32.mrf.mxu1  ;;  %v2787_v53 = vadd.f32 %v2761_v23, %v11525_v62  ;;  %8790 = vmatpush3.bf16.msra.mxu0 %v9252_v31  ;;  %8737 = vmatprep.mubr.msk.bf16.mxu0 %vm9419_vm1, %v12510_v22  ;;  %v7500_v11 = vpack.c.bf16 %v2114_v50, %v2114_v50  ;;  %v2054_v0 = vadd.f32 %v11117_v34, %v1983_v48 }
 0x294   :  { %v8379_v16 = vpop.f32.mrf.mxu0  ;;  %8791 = vmatprep.subr.bf16.mxu0 %v12510_v22 }
 0x295   :  { %v8416_v63 = vpop.f32.mrf.mxu1  ;;  %8828 = vmatpush3.bf16.msra.mxu1 %v9255_v9  ;;  %v11703_v62 = vadd.f32 %v2918_v27, %v2787_v53  ;;  %v9261_v27 = vld [vmem:[%s12449_s3 + $0x388] sm:$0xff]   ;;  %v2118_v28 = vmax.f32 %v2054_v0, 0.0 }
 0x296   :  { %8829 = vmatprep.subr.bf16.mxu1 %v12510_v22  ;;  %v2764_v10 = vpop.f32.mrf.mxu0 }
 0x297   :  { %v2926_v36 = vpop.f32.mrf.mxu1  ;;  %8774 = vmatmul.mubr.bf16.gmra.mxu1 %v11363_v52  ;;  %v2788_v59 = vadd.f32 %v2764_v10, %v11533_v46  ;;  %8792 = vmatpush3.bf16.msra.mxu0 %v9254_v20  ;;  %v9258_v52 = vld [vmem:[%s12449_s3 + $0x3d0] sm:$0xff]   ;;  %v11760_v41 = vpack.c.bf16 %v2118_v28, %v2118_v28 }
 0x298   :  { %8777 = vmatprep.mubr.msk.bf16.mxu1 %vm9419_vm1, %v12510_v22  ;;  %v8380_v6 = vpop.f32.mrf.mxu0  ;;  %8793 = vmatprep.subr.bf16.mxu0 %v12510_v22 }
 0x299   :  { %v8419_v39 = vpop.f32.mrf.mxu1  ;;  %8830 = vmatpush3.bf16.msra.mxu1 %v9257_v47  ;;  %v11719_v46 = vadd.f32 %v2921_v49, %v2788_v59  ;;  %v9263_v49 = vld [vmem:[%s12449_s3 + $0x380] sm:$0xff]  }
 0x29a   :  { %8831 = vmatprep.subr.bf16.mxu1 %v12510_v22  ;;  %v2769_v25 = vpop.f32.mrf.mxu0  ;;  %8738 = vmatmul.mubr.bf16.gmra.mxu0 %v11380_v33  ;;  %v9260_v33 = vld [vmem:[%s12449_s3 + $0x3c8] sm:$0xff]  }
 0x29b   :  { %v2929_v4 = vpop.f32.mrf.mxu1  ;;  %v2789_v55 = vadd.f32 %v2769_v25, %v11589_v21  ;;  %8794 = vmatpush3.bf16.msra.mxu0 %v9256_v5  ;;  %8741 = vmatprep.mubr.msk.bf16.mxu0 %vm9419_vm1, %v12510_v22  ;;  %v4363_v21 = vsel %vm2329_vm2, %v7500_v11, %v11722_v19 }
 0x29c   :  { %v8383_v30 = vpop.f32.mrf.mxu0  ;;  %8795 = vmatprep.subr.bf16.mxu0 %v12510_v22 }
 0x29d   :  { %v8420_v13 = vpop.f32.mrf.mxu1  ;;  %8832 = vmatpush3.bf16.msra.mxu1 %v9258_v52  ;;  %v11738_v37 = vadd.f32 %v2926_v36, %v2789_v55 }
 0x29e   :  { %8833 = vmatprep.subr.bf16.mxu1 %v12510_v22  ;;  %v2772_v57 = vpop.f32.mrf.mxu0  ;;  %v12588_v13 = vld [vmem:[#allocation15_spill] sm:$0xff] }
 0x29f   :  { %v2934_v43 = vpop.f32.mrf.mxu1  ;;  %8778 = vmatmul.mubr.bf16.gmra.mxu1 %v4363_v21  ;;  %v2790_v34 = vadd.f32 %v2772_v57, %v11606_v12  ;;  %8796 = vmatpush3.bf16.msra.mxu0 %v9259_v40 }
 0x2a0   :  { %8781 = vmatprep.mubr.msk.bf16.mxu1 %vm9419_vm1, %v12510_v22  ;;  %v8384_v31 = vpop.f32.mrf.mxu0  ;;  %8797 = vmatprep.subr.bf16.mxu0 %v12510_v22 }
 0x2a1   :  { %v8423_v3 = vpop.f32.mrf.mxu1  ;;  %8834 = vmatpush3.bf16.msra.mxu1 %v9260_v33  ;;  %v11751_v12 = vadd.f32 %v2929_v4, %v2790_v34  ;;  %v12587_v4 = vld [vmem:[#allocation14_spill] sm:$0xff] }
 0x2a2   :  { %8835 = vmatprep.subr.bf16.mxu1 %v12510_v22  ;;  %v2777_v9 = vpop.f32.mrf.mxu0  ;;  %8742 = vmatmul.mubr.bf16.gmra.mxu0 %v11149_v26  ;;  %v4514_v3 = vsel %vm2329_vm2, %v11278_v14, %v11398_v15  ;;  %v4671_v14 = vsel %vm2329_vm2, %v11722_v19, %v11760_v41 }
 0x2a3   :  { %v2937_v58 = vpop.f32.mrf.mxu1  ;;  %v2791_v23 = vadd.f32 %v2777_v9, %v11621_v56  ;;  %8745 = vmatprep.mubr.msk.bf16.mxu0 %vm9419_vm1, %v12510_v22  ;;  %8798 = vmatpush3.bf16.msra.mxu0 %v9261_v27 }
 0x2a4   :  { %v8387_v53 = vpop.f32.mrf.mxu0  ;;  %8799 = vmatprep.subr.bf16.mxu0 %v12510_v22 }
 0x2a5   :  { %v8424_v20 = vpop.f32.mrf.mxu1  ;;  %8836 = vmatpush3.bf16.msra.mxu1 %v9262_v17  ;;  %v11763_v2 = vadd.f32 %v2934_v43, %v2791_v23 }
 0x2a6   :  { %8877 = vmatprep.subr.bf16.mxu1 %v12510_v22  ;;  %v2780_v26 = vpop.f32.mrf.mxu0 }
 0x2a7   :  { %v3226_v56 = vpop.f32.mrf.mxu1  ;;  %8782 = vmatmul.mubr.bf16.gmra.mxu1 %v11760_v41  ;;  %8800 = vmatpush3.bf16.msra.mxu0 %v9263_v49 }
 0x2a8   :  { %8837 = vmatprep.mubr.msk.bf16.mxu1 %vm9419_vm1, %v12510_v22  ;;  %v8388_v29 = vpop.f32.mrf.mxu0  ;;  %8857 = vmatprep.subr.bf16.mxu0 %v12510_v22 }
 0x2a9   :  { %v8479_v35 = vpop.f32.mrf.mxu1 }
 0x2aa   :  { %v3064_v16 = vpop.f32.mrf.mxu0  ;;  %8746 = vmatmul.mubr.bf16.gmra.mxu0 %v11159_v42 }
 0x2ab   :  { %v3229_v63 = vpop.f32.mrf.mxu1  ;;  %v3102_v47 = vadd.f32 %v3064_v16, %v11639_v1  ;;  %8801 = vmatprep.mubr.msk.bf16.mxu0 %vm9419_vm1, %v12510_v22 }
 0x2ac   :  { %v8443_v50 = vpop.f32.mrf.mxu0 }
 0x2ad   :  { %v8480_v45 = vpop.f32.mrf.mxu1  ;;  %v11774_v10 = vadd.f32 %v3226_v56, %v3102_v47 }
 0x2ae   :  { %v3067_v36 = vpop.f32.mrf.mxu0 }
 0x2af   :  { %v3234_v7 = vpop.f32.mrf.mxu1  ;;  %8838 = vmatmul.mubr.bf16.vlgmr.msra.gmra.mxu1 %v11220_v24  ;;  %v3103_v59 = vadd.f32 %v3067_v36, %v11654_v8 }
 0x2b0   :  { %8841 = vmatprep.mubr.msk.bf16.mxu1 %vm9419_vm1, %v12510_v22  ;;  %v8444_v5 = vpop.f32.mrf.mxu0 }
 0x2b1   :  { %v8483_v42 = vpop.f32.mrf.mxu1  ;;  %v11780_v48 = vadd.f32 %v3229_v63, %v3103_v59 }
 0x2b2   :  { %v3072_v1 = vpop.f32.mrf.mxu0  ;;  %8802 = vmatmul.mubr.bf16.vlgmr.msra.gmra.mxu0 %v10827_v44 }
 0x2b3   :  { %v3237_v6 = vpop.f32.mrf.mxu1  ;;  %v3104_v39 = vadd.f32 %v3072_v1, %v11670_v18  ;;  %8805 = vmatprep.mubr.msk.bf16.mxu0 %vm9419_vm1, %v12510_v22 }
 0x2b4   :  { %v8447_v52 = vpop.f32.mrf.mxu0 }
 0x2b5   :  { %v8484_v24 = vpop.f32.mrf.mxu1  ;;  %v11786_v11 = vadd.f32 %v3234_v7, %v3104_v39 }
 0x2b6   :  { %v3075_v8 = vpop.f32.mrf.mxu0 }
 0x2b7   :  { %v3242_v25 = vpop.f32.mrf.mxu1  ;;  %8842 = vmatmul.mubr.bf16.gmra.mxu1 %v12587_v4  ;;  %v3105_v55 = vadd.f32 %v3075_v8, %v11685_v61  ;;  %v4668_v61 = vsel %vm2329_vm2, %v11271_v51, %v11391_v32 }
 0x2b8   :  { %8845 = vmatprep.mubr.msk.bf16.mxu1 %vm9419_vm1, %v12510_v22  ;;  %v8448_v40 = vpop.f32.mrf.mxu0 }
 0x2b9   :  { %v8487_v44 = vpop.f32.mrf.mxu1  ;;  %v11792_v0 = vadd.f32 %v3237_v6, %v3105_v55 }
 0x2ba   :  { %v3080_v18 = vpop.f32.mrf.mxu0  ;;  %8806 = vmatmul.mubr.bf16.gmra.mxu0 %v12588_v13 }
 0x2bb   :  { %v3245_v30 = vpop.f32.mrf.mxu1  ;;  %v3106_v33 = vadd.f32 %v3080_v18, %v11703_v62  ;;  %8809 = vmatprep.mubr.msk.bf16.mxu0 %vm9419_vm1, %v12510_v22 }
 0x2bc   :  { %v8451_v21 = vpop.f32.mrf.mxu0 }
 0x2bd   :  { %v8488_v57 = vpop.f32.mrf.mxu1  ;;  %v11801_v43 = vadd.f32 %v3242_v25, %v3106_v33  ;;  %v9265_v33 = vld [vmem:[%s12451_s5 + $0x38] sm:$0xff]  }
 0x2be   :  { %v3083_v34 = vpop.f32.mrf.mxu0  ;;  %8878 = vmatpush3.bf16.msra.mxu1 %v9265_v33 }
 0x2bf   :  { %v3250_v27 = vpop.f32.mrf.mxu1  ;;  %8846 = vmatmul.mubr.bf16.gmra.mxu1 %v4668_v61  ;;  %v3107_v28 = vadd.f32 %v3083_v34, %v11719_v46  ;;  %v9417_v46 = vld [vmem:[%s12450_s2] ss:$0 sm:$0xff]  ;;  %v9266_v61 = vld [vmem:[%s12451_s5 + $0x70] sm:$0xff]   ;;  %8879 = vmatprep.subr.bf16.mxu1 %v12510_v22 }
 0x2c0   :  { %8849 = vmatprep.mubr.msk.bf16.mxu1 %vm9419_vm1, %v12510_v22  ;;  %v8452_v62 = vpop.f32.mrf.mxu0  ;;  %v2056_v58 = vadd.f32 %v9417_v46, %v11153_v38  ;;  %v2055_v26 = vadd.f32 %v9417_v46, %v11137_v60  ;;  %v9267_v34 = vld [vmem:[%s12451_s5 + $0x30] sm:$0xff]   ;;  %v9268_v46 = vld [vmem:[%s12451_s5 + $0x68] sm:$0xff]  }
 0x2c1   :  { %v8491_v31 = vpop.f32.mrf.mxu1  ;;  %v11809_v17 = vadd.f32 %v3245_v30, %v3107_v28 }
 0x2c2   :  { %v3088_v9 = vpop.f32.mrf.mxu0  ;;  %8810 = vmatmul.mubr.bf16.gmra.mxu0 %v4514_v3  ;;  %v2120_v56 = vmax.f32 %v2056_v58, 0.0  ;;  %8880 = vmatpush3.bf16.msra.mxu1 %v9267_v34 }
 0x2c3   :  { %v3253_v51 = vpop.f32.mrf.mxu1  ;;  %v3108_v32 = vadd.f32 %v3088_v9, %v11738_v37  ;;  %8813 = vmatprep.mubr.msk.bf16.mxu0 %vm9419_vm1, %v12510_v22  ;;  %8881 = vmatprep.subr.bf16.mxu1 %v12510_v22  ;;  %v9269_v9 = vld [vmem:[%s12451_s5 + $0x28] sm:$0xff]  }
 0x2c4   :  { %v8455_v23 = vpop.f32.mrf.mxu0  ;;  %v7506_v41 = vpack.c.bf16 %v2120_v56, %v2120_v56 }
 0x2c5   :  { %v8492_v49 = vpop.f32.mrf.mxu1  ;;  %v11821_v15 = vadd.f32 %v3250_v27, %v3108_v32 }
 0x2c6   :  { %v3091_v53 = vpop.f32.mrf.mxu0  ;;  %8882 = vmatpush3.bf16.msra.mxu1 %v9269_v9 }
 0x2c7   :  { %v3258_v20 = vpop.f32.mrf.mxu1  ;;  %8850 = vmatmul.mubr.bf16.gmra.mxu1 %v4671_v14  ;;  %v3109_v37 = vadd.f32 %v3091_v53, %v11751_v12  ;;  %v2119_v12 = vmax.f32 %v2055_v26, 0.0  ;;  %8883 = vmatprep.subr.bf16.mxu1 %v12510_v22  ;;  %v9271_v14 = vld [vmem:[%s12451_s5 + $0x20] sm:$0xff]  }
 0x2c8   :  { %8853 = vmatprep.mubr.msk.bf16.mxu1 %vm9419_vm1, %v12510_v22  ;;  %v8456_v38 = vpop.f32.mrf.mxu0 }
 0x2c9   :  { %v8495_v29 = vpop.f32.mrf.mxu1  ;;  %v11827_v35 = vadd.f32 %v3253_v51, %v3109_v37  ;;  %v7505_v7 = vpack.c.bf16 %v2119_v12, %v2119_v12  ;;  %v9270_v37 = vld [vmem:[%s12451_s5 + $0x60] sm:$0xff]  }
 0x2ca   :  { %v3096_v16 = vpop.f32.mrf.mxu0  ;;  %8814 = vmatmul.mubr.bf16.gmra.mxu0 %v11169_v54  ;;  %8884 = vmatpush3.bf16.msra.mxu1 %v9271_v14  ;;  %v9272_v29 = vld [vmem:[%s12451_s5 + $0x18] sm:$0xff]  }
 0x2cb   :  { %v3261_v63 = vpop.f32.mrf.mxu1  ;;  %v3110_v19 = vadd.f32 %v3096_v16, %v11763_v2  ;;  %8817 = vmatprep.mubr.msk.bf16.mxu0 %vm9419_vm1, %v12510_v22  ;;  %8885 = vmatprep.subr.bf16.mxu1 %v12510_v22 }
 0x2cc   :  { %v8459_v47 = vpop.f32.mrf.mxu0 }
 0x2cd   :  { %v8496_v50 = vpop.f32.mrf.mxu1  ;;  %v11833_v45 = vadd.f32 %v3258_v20, %v3110_v19  ;;  %v9273_v47 = vld [vmem:[%s12451_s5 + $0x58] sm:$0xff]  }
 0x2ce   :  { %v3099_v60 = vpop.f32.mrf.mxu0  ;;  %8886 = vmatpush3.bf16.msra.mxu1 %v9272_v29  ;;  %v9274_v50 = vld [vmem:[%s12451_s5 + $0x10] sm:$0xff]  }
 0x2cf   :  { %v3540_v36 = vpop.f32.mrf.mxu1  ;;  %8854 = vmatmul.mubr.bf16.gmra.mxu1 %v7506_v41  ;;  %8887 = vmatprep.subr.bf16.mxu1 %v12510_v22 }
 0x2d0   :  { %8893 = vmatprep.mubr.msk.bf16.mxu1 %vm9419_vm1, %v12510_v22  ;;  %v8460_v59 = vpop.f32.mrf.mxu0 }
 0x2d1   :  { %v8551_v54 = vpop.f32.mrf.mxu1 }
 0x2d2   :  { %v3383_v5 = vpop.f32.mrf.mxu0  ;;  %8818 = vmatmul.mubr.bf16.gmra.mxu0 %v7505_v7  ;;  %8888 = vmatpush3.bf16.msra.mxu1 %v9274_v50 }
 0x2d3   :  { %v3543_v2 = vpop.f32.mrf.mxu1  ;;  %v3421_v42 = vadd.f32 %v3383_v5, %v11774_v10  ;;  %8873 = vmatprep.mubr.msk.bf16.mxu0 %vm9419_vm1, %v12510_v22  ;;  %v9264_v10 = vld [vmem:[%s12451_s5 + $0x78] sm:$0xff]   ;;  %8889 = vmatprep.subr.bf16.mxu1 %v12510_v22 }
 0x2d4   :  { %v8515_v1 = vpop.f32.mrf.mxu0  ;;  %8858 = vmatpush3.bf16.msra.mxu0 %v9264_v10  ;;  %v9279_v10 = vld [vmem:[%s12451_s5 + $0x40] sm:$0xff]  }
 0x2d5   :  { %v8552_v6 = vpop.f32.mrf.mxu1  ;;  %v11840_v39 = vadd.f32 %v3540_v36, %v3421_v42  ;;  %8859 = vmatprep.subr.bf16.mxu0 %v12510_v22 }
 0x2d6   :  { %v3386_v52 = vpop.f32.mrf.mxu0 }
 0x2d7   :  { %v3548_v24 = vpop.f32.mrf.mxu1  ;;  %v3422_v8 = vadd.f32 %v3386_v52, %v11780_v48 }
 0x2d8   :  { %v8516_v25 = vpop.f32.mrf.mxu0  ;;  %8860 = vmatpush3.bf16.msra.mxu0 %v9266_v61 }
 0x2d9   :  { %v8555_v4 = vpop.f32.mrf.mxu1  ;;  %v11843_v55 = vadd.f32 %v3543_v2, %v3422_v8  ;;  %8861 = vmatprep.subr.bf16.mxu0 %v12510_v22  ;;  %v9276_v2 = vld [vmem:[%s12451_s5 + $0x8] sm:$0xff]   ;;  %v9278_v8 = vld [vmem:[%s12451_s5] sm:$0xff]  }
 0x2da   :  { %v3391_v40 = vpop.f32.mrf.mxu0  ;;  %8890 = vmatpush3.bf16.msra.mxu1 %v9276_v2 }
 0x2db   :  { %v3551_v44 = vpop.f32.mrf.mxu1  ;;  %v3423_v18 = vadd.f32 %v3391_v40, %v11786_v11  ;;  %8891 = vmatprep.subr.bf16.mxu1 %v12510_v22 }
 0x2dc   :  { %v8519_v30 = vpop.f32.mrf.mxu0  ;;  %8862 = vmatpush3.bf16.msra.mxu0 %v9268_v46 }
 0x2dd   :  { %v8556_v13 = vpop.f32.mrf.mxu1  ;;  %v11852_v21 = vadd.f32 %v3548_v24, %v3423_v18  ;;  %8863 = vmatprep.subr.bf16.mxu0 %v12510_v22 }
 0x2de   :  { %v3394_v48 = vpop.f32.mrf.mxu0  ;;  %8892 = vmatpush3.bf16.msra.mxu1 %v9278_v8 }
 0x2df   :  { %v3556_v57 = vpop.f32.mrf.mxu1  ;;  %v3424_v11 = vadd.f32 %v3394_v48, %v11792_v0  ;;  %8917 = vmatprep.subr.bf16.mxu1 %v12510_v22 }
 0x2e0   :  { %v8520_v27 = vpop.f32.mrf.mxu0  ;;  %8864 = vmatpush3.bf16.msra.mxu0 %v9270_v37 }
 0x2e1   :  { %v8559_v28 = vpop.f32.mrf.mxu1  ;;  %v11863_v62 = vadd.f32 %v3551_v44, %v3424_v11  ;;  %8865 = vmatprep.subr.bf16.mxu0 %v12510_v22 }
 0x2e2   :  { %v3399_v31 = vpop.f32.mrf.mxu0 }
 0x2e3   :  { %v3559_v3 = vpop.f32.mrf.mxu1  ;;  %v3425_v0 = vadd.f32 %v3399_v31, %v11801_v43 }
 0x2e4   :  { %v8523_v51 = vpop.f32.mrf.mxu0  ;;  %8866 = vmatpush3.bf16.msra.mxu0 %v9273_v47 }
 0x2e5   :  { %v8560_v32 = vpop.f32.mrf.mxu1  ;;  %v11874_v58 = vadd.f32 %v3556_v57, %v3425_v0  ;;  %8867 = vmatprep.subr.bf16.mxu0 %v12510_v22 }
 0x2e6   :  { %v3402_v23 = vpop.f32.mrf.mxu0 }
 0x2e7   :  { %v3564_v49 = vpop.f32.mrf.mxu1  ;;  %v3426_v43 = vadd.f32 %v3402_v23, %v11809_v17 }
 0x2e8   :  { %v8524_v53 = vpop.f32.mrf.mxu0 }
 0x2e9   :  { %v8563_v20 = vpop.f32.mrf.mxu1  ;;  %v11885_v26 = vadd.f32 %v3559_v3, %v3426_v43 }
 0x2ea   :  { %v3407_v56 = vpop.f32.mrf.mxu0 }
 0x2eb   :  { %v3567_v38 = vpop.f32.mrf.mxu1  ;;  %v3427_v17 = vadd.f32 %v3407_v56, %v11821_v15 }
 0x2ec   :  { %v8527_v16 = vpop.f32.mrf.mxu0 }
 0x2ed   :  { %v8564_v63 = vpop.f32.mrf.mxu1  ;;  %v11893_v19 = vadd.f32 %v3564_v49, %v3427_v17 }
 0x2ee   :  { %v3410_v12 = vpop.f32.mrf.mxu0 }
 0x2ef   :  { %v3572_v41 = vpop.f32.mrf.mxu1  ;;  %v3428_v15 = vadd.f32 %v3410_v12, %v11827_v35  ;;  %v9275_v35 = vld [vmem:[%s12451_s5 + $0x50] sm:$0xff]  }
 0x2f0   :  { %v8528_v60 = vpop.f32.mrf.mxu0  ;;  %8868 = vmatpush3.bf16.msra.mxu0 %v9275_v35 }
 0x2f1   :  { %v8567_v36 = vpop.f32.mrf.mxu1  ;;  %v11903_v7 = vadd.f32 %v3567_v38, %v3428_v15  ;;  %8869 = vmatprep.subr.bf16.mxu0 %v12510_v22 }
 0x2f2   :  { %v3415_v59 = vpop.f32.mrf.mxu0 }
 0x2f3   :  { %v3575_v54 = vpop.f32.mrf.mxu1  ;;  %v3429_v5 = vadd.f32 %v3415_v59, %v11833_v45  ;;  %v9277_v45 = vld [vmem:[%s12451_s5 + $0x48] sm:$0xff]  }
 0x2f4   :  { %v8531_v42 = vpop.f32.mrf.mxu0  ;;  %8870 = vmatpush3.bf16.msra.mxu0 %v9277_v45 }
 0x2f5   :  { %v8568_v1 = vpop.f32.mrf.mxu1  ;;  %v11914_v6 = vadd.f32 %v3572_v41, %v3429_v5  ;;  %8871 = vmatprep.subr.bf16.mxu0 %v12510_v22 }
 0x2f6   :  { %v3418_v52 = vpop.f32.mrf.mxu0 }
 0x2f7   :  { %v3848_v24 = vpop.f32.mrf.mxu1 }
 0x2f8   :  { %v8532_v25 = vpop.f32.mrf.mxu0  ;;  %8872 = vmatpush3.bf16.msra.mxu0 %v9279_v10 }
 0x2f9   :  { %v8623_v4 = vpop.f32.mrf.mxu1  ;;  %8897 = vmatprep.subr.bf16.mxu0 %v12510_v22 }
 0x2fa   :  { %v3694_v40 = vpop.f32.mrf.mxu0 }
 0x2fb   :  { %v3851_v44 = vpop.f32.mrf.mxu1  ;;  %v3732_v18 = vadd.f32 %v3694_v40, %v11840_v39 }
 0x2fc   :  { %v8587_v30 = vpop.f32.mrf.mxu0 }
 0x2fd   :  { %v8624_v13 = vpop.f32.mrf.mxu1  ;;  %v3886_v33 = vadd.f32 %v3848_v24, %v3732_v18 }
 0x2fe   :  { %v3697_v48 = vpop.f32.mrf.mxu0 }
 0x2ff   :  { %v3856_v57 = vpop.f32.mrf.mxu1  ;;  %v3733_v11 = vadd.f32 %v3697_v48, %v11843_v55 }
 0x300   :  { %v8588_v61 = vpop.f32.mrf.mxu0 }
 0x301   :  { %v8627_v34 = vpop.f32.mrf.mxu1  ;;  %v3887_v27 = vadd.f32 %v3851_v44, %v3733_v11 }
 0x302   :  { %v3702_v39 = vpop.f32.mrf.mxu0 }
 0x303   :  { %v3859_v28 = vpop.f32.mrf.mxu1  ;;  %v3734_v31 = vadd.f32 %v3702_v39, %v11852_v21 }
 0x304   :  { %v8591_v3 = vpop.f32.mrf.mxu0 }
 0x305   :  { %v8628_v0 = vpop.f32.mrf.mxu1  ;;  %v3888_v9 = vadd.f32 %v3856_v57, %v3734_v31 }
 0x306   :  { %v3705_v51 = vpop.f32.mrf.mxu0 }
 0x307   :  { %v3864_v32 = vpop.f32.mrf.mxu1  ;;  %v3735_v46 = vadd.f32 %v3705_v51, %v11863_v62 }
 0x308   :  { %v8592_v23 = vpop.f32.mrf.mxu0 }
 0x309   :  { %v8631_v49 = vpop.f32.mrf.mxu1  ;;  %v3889_v43 = vadd.f32 %v3859_v28, %v3735_v46 }
 0x30a   :  { %v3710_v14 = vpop.f32.mrf.mxu0 }
 0x30b   :  { %v3867_v53 = vpop.f32.mrf.mxu1  ;;  %v3736_v55 = vadd.f32 %v3710_v14, %v11874_v58 }
 0x30c   :  { %v8595_v20 = vpop.f32.mrf.mxu0 }
 0x30d   :  { %v8632_v37 = vpop.f32.mrf.mxu1  ;;  %v3890_v56 = vadd.f32 %v3864_v32, %v3736_v55 }
 0x30e   :  { %v3713_v38 = vpop.f32.mrf.mxu0 }
 0x30f   :  { %v3872_v17 = vpop.f32.mrf.mxu1  ;;  %v3737_v21 = vadd.f32 %v3713_v38, %v11885_v26 }
 0x310   :  { %v8596_v29 = vpop.f32.mrf.mxu0 }
 0x311   :  { %v8635_v16 = vpop.f32.mrf.mxu1  ;;  %v3891_v63 = vadd.f32 %v3867_v53, %v3737_v21 }
 0x312   :  { %v3718_v12 = vpop.f32.mrf.mxu0 }
 0x313   :  { %v3875_v41 = vpop.f32.mrf.mxu1  ;;  %v3738_v62 = vadd.f32 %v3718_v12, %v11893_v19 }
 0x314   :  { %v8599_v47 = vpop.f32.mrf.mxu0 }
 0x315   :  { %v8636_v15 = vpop.f32.mrf.mxu1  ;;  %v3892_v50 = vadd.f32 %v3872_v17, %v3738_v62 }
 0x316   :  { %v3721_v60 = vpop.f32.mrf.mxu0 }
 0x317   :  { %v3880_v36 = vpop.f32.mrf.mxu1  ;;  %v3739_v58 = vadd.f32 %v3721_v60, %v11903_v7 }
 0x318   :  { %v8600_v59 = vpop.f32.mrf.mxu0 }
 0x319   :  { %v8639_v54 = vpop.f32.mrf.mxu1  ;;  %v3893_v5 = vadd.f32 %v3875_v41, %v3739_v58 }
 0x31a   :  { %v3726_v35 = vpop.f32.mrf.mxu0 }
 0x31b   :  { %v3883_v2 = vpop.f32.mrf.mxu1  ;;  %v3740_v26 = vadd.f32 %v3726_v35, %v11914_v6 }
 0x31c   :  { %v8603_v42 = vpop.f32.mrf.mxu0 }
 0x31d   :  { %v8640_v1 = vpop.f32.mrf.mxu1  ;;  %v3894_v52 = vadd.f32 %v3880_v36, %v3740_v26 }
 0x31e   :  { %v3729_v24 = vpop.f32.mrf.mxu0 }
 0x31f   :  { %v4156_v45 = vpop.f32.mrf.mxu1 }
 0x320   :  { %v8604_v19 = vpop.f32.mrf.mxu0 }
 0x321   :  { %v8695_v8 = vpop.f32.mrf.mxu1 }
 0x322   :  { %v4002_v25 = vpop.f32.mrf.mxu0 }
 0x323   :  { %v4159_v4 = vpop.f32.mrf.mxu1  ;;  %v4040_v40 = vadd.f32 %v4002_v25, %v3886_v33 }
 0x324   :  { %v8659_v44 = vpop.f32.mrf.mxu0 }
 0x325   :  { %v8696_v18 = vpop.f32.mrf.mxu1  ;;  %v11939_v7 = vadd.f32 %v4156_v45, %v4040_v40 }
 0x326   :  { %v4005_v10 = vpop.f32.mrf.mxu0 }
 0x327   :  { %v4164_v30 = vpop.f32.mrf.mxu1  ;;  %v4041_v13 = vadd.f32 %v4005_v10, %v3887_v27 }
 0x328   :  { %v8660_v48 = vpop.f32.mrf.mxu0 }
 0x329   :  { %v8699_v57 = vpop.f32.mrf.mxu1  ;;  %v11941_v6 = vadd.f32 %v4159_v4, %v4041_v13 }
 0x32a   :  { %v4010_v11 = vpop.f32.mrf.mxu0 }
 0x32b   :  { %v4167_v61 = vpop.f32.mrf.mxu1  ;;  %v4042_v34 = vadd.f32 %v4010_v11, %v3888_v9 }
 0x32c   :  { %v8663_v39 = vpop.f32.mrf.mxu0 }
 0x32d   :  { %v8700_v28 = vpop.f32.mrf.mxu1  ;;  %v4196_v31 = vadd.f32 %v4164_v30, %v4042_v34 }
 0x32e   :  { %v4013_v3 = vpop.f32.mrf.mxu0 }
 0x32f   :  { %v4172_v0 = vpop.f32.mrf.mxu1  ;;  %v4043_v33 = vadd.f32 %v4013_v3, %v3889_v43 }
 0x330   :  { %v8664_v51 = vpop.f32.mrf.mxu0 }
 0x331   :  { %v8703_v32 = vpop.f32.mrf.mxu1  ;;  %v11943_v46 = vadd.f32 %v4167_v61, %v4043_v33 }
 0x332   :  { %v4018_v23 = vpop.f32.mrf.mxu0 }
 0x333   :  { %v4175_v49 = vpop.f32.mrf.mxu1  ;;  %v4044_v27 = vadd.f32 %v4018_v23, %v3890_v56 }
 0x334   :  { %v8667_v14 = vpop.f32.mrf.mxu0 }
 0x335   :  { %v8704_v53 = vpop.f32.mrf.mxu1  ;;  %v4198_v55 = vadd.f32 %v4172_v0, %v4044_v27 }
 0x336   :  { %v4021_v20 = vpop.f32.mrf.mxu0 }
 0x337   :  { %v4180_v37 = vpop.f32.mrf.mxu1  ;;  %v4045_v38 = vadd.f32 %v4021_v20, %v3891_v63 }
 0x338   :  { %v8668_v9 = vpop.f32.mrf.mxu0 }
 0x339   :  { %v8707_v17 = vpop.f32.mrf.mxu1  ;;  %v4199_v21 = vadd.f32 %v4175_v49, %v4045_v38 }
 0x33a   :  { %v4026_v29 = vpop.f32.mrf.mxu0 }
 0x33b   :  { %v4183_v16 = vpop.f32.mrf.mxu1  ;;  %v4046_v12 = vadd.f32 %v4026_v29, %v3892_v50 }
 0x33c   :  { %v8671_v43 = vpop.f32.mrf.mxu0 }
 0x33d   :  { %v8708_v41 = vpop.f32.mrf.mxu1  ;;  %v4200_v62 = vadd.f32 %v4180_v37, %v4046_v12 }
 0x33e   :  { %v4029_v47 = vpop.f32.mrf.mxu0 }
 0x33f   :  { %v4188_v15 = vpop.f32.mrf.mxu1  ;;  %v4047_v60 = vadd.f32 %v4029_v47, %v3893_v5 }
 0x340   :  { %v8672_v36 = vpop.f32.mrf.mxu0 }
 0x341   :  { %v8711_v56 = vpop.f32.mrf.mxu1  ;;  %v4201_v58 = vadd.f32 %v4183_v16, %v4047_v60 }
 0x342   :  { %v4034_v59 = vpop.f32.mrf.mxu0 }
 0x343   :  { %v4191_v54 = vpop.f32.mrf.mxu1  ;;  %v4048_v35 = vadd.f32 %v4034_v59, %v3894_v52 }
 0x344   :  { %v8675_v2 = vpop.f32.mrf.mxu0 }
 0x345   :  { %v8712_v63 = vpop.f32.mrf.mxu1  ;;  %v4202_v26 = vadd.f32 %v4188_v15, %v4048_v35 }
 0x346   :  { %v4037_v42 = vpop.f32.mrf.mxu0 }
 0x347   :  { %v4464_v1 = vpop.f32.mrf.mxu1 }
 0x348   :  { %v8676_v24 = vpop.f32.mrf.mxu0 }
 0x349   :  { %v8767_v45 = vpop.f32.mrf.mxu1 }
 0x34a   :  { %v4310_v50 = vpop.f32.mrf.mxu0 }
 0x34b   :  { %v4467_v19 = vpop.f32.mrf.mxu1  ;;  %v4348_v56 = vadd.f32 %v4310_v50, %v11939_v7 }
 0x34c   :  { %v8731_v8 = vpop.f32.mrf.mxu0 }
 0x34d   :  { %v8768_v25 = vpop.f32.mrf.mxu1 }
 0x34e   :  { %v4313_v4 = vpop.f32.mrf.mxu0 }
 0x34f   :  { %v4472_v40 = vpop.f32.mrf.mxu1  ;;  %v4349_v63 = vadd.f32 %v4313_v4, %v11941_v6 }
 0x350   :  { %v8732_v5 = vpop.f32.mrf.mxu0 }
 0x351   :  { %v8771_v44 = vpop.f32.mrf.mxu1  ;;  %v4503_v50 = vadd.f32 %v4467_v19, %v4349_v63 }
 0x352   :  { %v4318_v18 = vpop.f32.mrf.mxu0 }
 0x353   :  { %v11945_v10 = vpop.f32.mrf.mxu1  ;;  %v4350_v30 = vadd.f32 %v4318_v18, %v4196_v31 }
 0x354   :  { %v8735_v52 = vpop.f32.mrf.mxu0 }
 0x355   :  { %v8772_v13 = vpop.f32.mrf.mxu1  ;;  %v11947_v48 = vadd.f32 %v4472_v40, %v4350_v30 }
 0x356   :  { %v11949_v57 = vpop.f32.mrf.mxu0 }
 0x357   :  { %v4480_v11 = vpop.f32.mrf.mxu1 }
 0x358   :  { %v8736_v61 = vpop.f32.mrf.mxu0 }
 0x359   :  { %v8775_v34 = vpop.f32.mrf.mxu1 }
 0x35a   :  { %v4326_v39 = vpop.f32.mrf.mxu0 }
 0x35b   :  { %v4483_v28 = vpop.f32.mrf.mxu1  ;;  %v4352_v3 = vadd.f32 %v4326_v39, %v4198_v55 }
 0x35c   :  { %v8739_v0 = vpop.f32.mrf.mxu0 }
 0x35d   :  { %v8776_v33 = vpop.f32.mrf.mxu1  ;;  %v11951_v51 = vadd.f32 %v4480_v11, %v4352_v3  ;;  %v9280_v11 = vld [vmem:[%s12451_s5 + $0xf8] sm:$0xff]  }
 0x35e   :  { %v4329_v32 = vpop.f32.mrf.mxu0  ;;  %v9281_v33 = vld [vmem:[%s12451_s5 + $0xb8] sm:$0xff]  }
 0x35f   :  { %v4488_v23 = vpop.f32.mrf.mxu1  ;;  %v4353_v49 = vadd.f32 %v4329_v32, %v4199_v21  ;;  %v9282_v32 = vld [vmem:[%s12451_s5 + $0xf0] sm:$0xff]  }
 0x360   :  { %v8740_v31 = vpop.f32.mrf.mxu0 }
 0x361   :  { %v8779_v27 = vpop.f32.mrf.mxu1  ;;  %v11953_v14 = vadd.f32 %v4483_v28, %v4353_v49 }
 0x362   :  { %v4334_v53 = vpop.f32.mrf.mxu0 }
 0x363   :  { %v4491_v20 = vpop.f32.mrf.mxu1  ;;  %v4354_v37 = vadd.f32 %v4334_v53, %v4200_v62 }
 0x364   :  { %v8743_v38 = vpop.f32.mrf.mxu0 }
 0x365   :  { %v8780_v9 = vpop.f32.mrf.mxu1  ;;  %v11955_v17 = vadd.f32 %v4488_v23, %v4354_v37  ;;  %v9284_v37 = vld [vmem:[%s12451_s5 + $0xe8] sm:$0xff]  }
 0x366   :  { %v4337_v29 = vpop.f32.mrf.mxu0 }
 0x367   :  { %v4496_v55 = vpop.f32.mrf.mxu1  ;;  %v4355_v16 = vadd.f32 %v4337_v29, %v4201_v58  ;;  %v4502_v58 = vadd.f32 %v4464_v1, %v4348_v56 }
 0x368   :  { %v8744_v12 = vpop.f32.mrf.mxu0 }
 0x369   :  { %v8783_v43 = vpop.f32.mrf.mxu1  ;;  %v11957_v41 = vadd.f32 %v4491_v20, %v4355_v16  ;;  %v9283_v20 = vld [vmem:[%s12451_s5 + $0xb0] sm:$0xff]  }
 0x36a   :  { %v4342_v47 = vpop.f32.mrf.mxu0 }
 0x36b   :  { %v4499_v21 = vpop.f32.mrf.mxu1  ;;  %v4356_v15 = vadd.f32 %v4342_v47, %v4202_v26  ;;  %v11966_v26 = vld [vmem:[%s12452_s4] ss:$0 sm:$0xff] }
 0x36c   :  { %v8747_v60 = vpop.f32.mrf.mxu0  ;;  %v9286_v47 = vld [vmem:[%s12451_s5 + $0xe0] sm:$0xff]  }
 0x36d   :  { %v8784_v36 = vpop.f32.mrf.mxu1  ;;  %v11960_v59 = vadd.f32 %v4496_v55, %v4356_v15  ;;  %v4351_v55 = vadd.f32 %v11949_v57, %v11943_v46 }
 0x36e   :  { %v4345_v62 = vpop.f32.mrf.mxu0 }
 0x36f   :  { %v4772_v54 = vpop.f32.mrf.mxu1  ;;  %v4505_v60 = vadd.f32 %v11945_v10, %v4351_v55  ;;  %v9304_v55 = vld [vmem:[%s12451_s5 + $0x158] sm:$0xff]  }
 0x370   :  { %v8748_v35 = vpop.f32.mrf.mxu0 }
 0x371   :  { %v8839_v2 = vpop.f32.mrf.mxu1 }
 0x372   :  { %v4618_v42 = vpop.f32.mrf.mxu0 }
 0x373   :  { %v4775_v24 = vpop.f32.mrf.mxu1  ;;  %v4656_v45 = vadd.f32 %v4618_v42, %v4502_v58 }
 0x374   :  { %v8803_v8 = vpop.f32.mrf.mxu0 }
 0x375   :  { %v8840_v25 = vpop.f32.mrf.mxu1  ;;  %v4810_v7 = vadd.f32 %v4772_v54, %v4656_v45  ;;  %v9287_v54 = vld [vmem:[%s12451_s5 + $0xa0] sm:$0xff]  }
 0x376   :  { %v4621_v40 = vpop.f32.mrf.mxu0  ;;  %v9289_v25 = vld [vmem:[%s12451_s5 + $0x98] sm:$0xff]  }
 0x377   :  { %v11968_v5 = vpop.f32.mrf.mxu1  ;;  %v4826_v44 = vadd.f32 %v11966_v26, %v4810_v7  ;;  %v4657_v18 = vadd.f32 %v4621_v40, %v4503_v50 }
 0x378   :  { %v8804_v6 = vpop.f32.mrf.mxu0 }
 0x379   :  { %v8843_v1 = vpop.f32.mrf.mxu1  ;;  %v4835_v4 = vmax.f32 %v4826_v44, 0.0  ;;  %v4811_v30 = vadd.f32 %v4775_v24, %v4657_v18 }
 0x37a   :  { %v4626_v52 = vpop.f32.mrf.mxu0 }
 0x37b   :  { %v11971_v13 = vpop.f32.mrf.mxu1  ;;  %v7507_v61 = vpack.c.bf16 %v4835_v4, %v4835_v4  ;;  %v4827_v19 = vadd.f32 %v11966_v26, %v4811_v30  ;;  %v4658_v24 = vadd.f32 %v4626_v52, %v11947_v48  ;;  %v9291_v30 = vld [vmem:[%s12451_s5 + $0x90] sm:$0xff]  }
 0x37c   :  { %v8807_v34 = vpop.f32.mrf.mxu0 }
 0x37d   :  { %v8844_v39 = vpop.f32.mrf.mxu1  ;;  %v4836_v28 = vmax.f32 %v4827_v19, 0.0  ;;  %8894 = vmatmul.mubr.bf16.vlgmr.msra.gmra.mxu1 %v7507_v61  ;;  %v4812_v6 = vadd.f32 %v11968_v5, %v4658_v24  ;;  %v9322_v24 = vld [vmem:[%s12451_s5 + $0x1d0] sm:$0xff]  }
 0x37e   :  { %8918 = vmatpush3.bf16.msra.mxu1 %v9280_v11  ;;  %v4629_v3 = vpop.f32.mrf.mxu0  ;;  %8933 = vmatprep.mubr.msk.bf16.mxu1 %vm9419_vm1, %v12510_v22  ;;  %v9293_v39 = vld [vmem:[%s12451_s5 + $0x88] sm:$0xff]  }
 0x37f   :  { %v4788_v0 = vpop.f32.mrf.mxu1  ;;  %v7508_v23 = vpack.c.bf16 %v4836_v28, %v4836_v28  ;;  %8919 = vmatprep.subr.bf16.mxu1 %v12510_v22  ;;  %v4659_v35 = vadd.f32 %v4629_v3, %v4505_v60  ;;  %v9294_v28 = vld [vmem:[%s12451_s5 + $0xc0] sm:$0xff]   ;;  %v9312_v60 = vld [vmem:[%s12451_s5 + $0x1f8] sm:$0xff]  }
 0x380   :  { %v8808_v49 = vpop.f32.mrf.mxu0 }
 0x381   :  { %v8847_v31 = vpop.f32.mrf.mxu1  ;;  %8874 = vmatmul.mubr.bf16.vlgmr.msra.gmra.mxu0 %v7508_v23  ;;  %v4813_v7 = vadd.f32 %v11971_v13, %v4659_v35  ;;  %v9296_v23 = vld [vmem:[%s12451_s5 + $0x178] sm:$0xff]   ;;  %v9316_v35 = vld [vmem:[%s12451_s5 + $0x1e8] sm:$0xff]  }
 0x382   :  { %8898 = vmatpush3.bf16.msra.mxu0 %v9281_v33  ;;  %8920 = vmatpush3.bf16.msra.mxu1 %v9282_v32  ;;  %v4634_v27 = vpop.f32.mrf.mxu0  ;;  %v9295_v32 = vld [vmem:[%s12451_s5 + $0x80] sm:$0xff]  }
 0x383   :  { %v4791_v53 = vpop.f32.mrf.mxu1  ;;  %v4660_v38 = vadd.f32 %v4634_v27, %v11951_v51  ;;  %8899 = vmatprep.subr.bf16.mxu0 %v12510_v22  ;;  %8921 = vmatprep.subr.bf16.mxu1 %v12510_v22  ;;  %v9285_v51 = vld [vmem:[%s12451_s5 + $0xa8] sm:$0xff]   ;;  %v4829_v52 = vadd.f32 %v11966_v26, %v4813_v7  ;;  %v9298_v27 = vld [vmem:[%s12451_s5 + $0x170] sm:$0xff]  }
 0x384   :  { %v8811_v9 = vpop.f32.mrf.mxu0  ;;  %8913 = vmatprep.mubr.msk.bf16.mxu0 %vm9419_vm1, %v12510_v22 }
 0x385   :  { %v8848_v29 = vpop.f32.mrf.mxu1  ;;  %v4814_v16 = vadd.f32 %v4788_v0, %v4660_v38  ;;  %v4838_v3 = vmax.f32 %v4829_v52, 0.0  ;;  %v9301_v38 = vld [vmem:[%s12451_s5 + $0x128] sm:$0xff]   ;;  %v9302_v9 = vld [vmem:[%s12451_s5 + $0x160] sm:$0xff]  }
 0x386   :  { %8900 = vmatpush3.bf16.msra.mxu0 %v9283_v20  ;;  %8922 = vmatpush3.bf16.msra.mxu1 %v9284_v37  ;;  %v4637_v12 = vpop.f32.mrf.mxu0  ;;  %v9299_v20 = vld [vmem:[%s12451_s5 + $0x130] sm:$0xff]   ;;  %v9300_v37 = vld [vmem:[%s12451_s5 + $0x168] sm:$0xff]   ;;  %v9303_v29 = vld [vmem:[%s12451_s5 + $0x120] sm:$0xff]  }
 0x387   :  { %v4796_v43 = vpop.f32.mrf.mxu1  ;;  %v12006_v21 = vadd.f32 %v11966_v26, %v4814_v16  ;;  %v4661_v15 = vadd.f32 %v4637_v12, %v11953_v14  ;;  %8901 = vmatprep.subr.bf16.mxu0 %v12510_v22  ;;  %8923 = vmatprep.subr.bf16.mxu1 %v12510_v22  ;;  %v9288_v14 = vld [vmem:[%s12451_s5 + $0xd8] sm:$0xff]   ;;  %v7510_v31 = vpack.c.bf16 %v4838_v3, %v4838_v3  ;;  %v9306_v12 = vld [vmem:[%s12451_s5 + $0x150] sm:$0xff]   ;;  %v9334_v52 = vld [vmem:[%s12451_s5 + $0x208] sm:$0xff]  }
 0x388   :  { %v8812_v46 = vpop.f32.mrf.mxu0  ;;  %v9305_v16 = vld [vmem:[%s12451_s5 + $0x118] sm:$0xff]  }
 0x389   :  { %v8851_v57 = vpop.f32.mrf.mxu1  ;;  %v4815_v36 = vadd.f32 %v4791_v53, %v4661_v15  ;;  %v9310_v15 = vld [vmem:[%s12451_s5 + $0x140] sm:$0xff]   ;;  %v9347_v3 = vld [vmem:[%s12453_s7 + $0xcc] ss:$16 sps:$4 sm:$0xff]  }
 0x38a   :  { %8902 = vmatpush3.bf16.msra.mxu0 %v9285_v51  ;;  %8924 = vmatpush3.bf16.msra.mxu1 %v9286_v47  ;;  %v4642_v56 = vpop.f32.mrf.mxu0  ;;  %v9308_v51 = vld [vmem:[%s12451_s5 + $0x148] sm:$0xff]   ;;  %v9311_v57 = vld [vmem:[%s12451_s5 + $0x100] sm:$0xff]  }
 0x38b   :  { %v4799_v62 = vpop.f32.mrf.mxu1  ;;  %v12019_v2 = vadd.f32 %v11966_v26, %v4815_v36  ;;  %v4662_v63 = vadd.f32 %v4642_v56, %v11955_v17  ;;  %8903 = vmatprep.subr.bf16.mxu0 %v12510_v22  ;;  %8925 = vmatprep.subr.bf16.mxu1 %v12510_v22  ;;  %v9290_v17 = vld [vmem:[%s12451_s5 + $0xd0] sm:$0xff]   ;;  %v9309_v47 = vld [vmem:[%s12451_s5 + $0x108] sm:$0xff]   ;;  %v4839_v36 = vmax.f32 %v12006_v21, 0.0 }
 0x38c   :  { %v8815_v10 = vpop.f32.mrf.mxu0  ;;  %v9315_v21 = vld [vmem:[%s12451_s5 + $0x1b0] sm:$0xff]  }
 0x38d   :  { %v8852_v58 = vpop.f32.mrf.mxu1  ;;  %v4816_v42 = vadd.f32 %v4796_v43, %v4662_v63  ;;  %v9307_v43 = vld [vmem:[%s12451_s5 + $0x110] sm:$0xff]   ;;  %v4840_v46 = vmax.f32 %v12019_v2, 0.0  ;;  %v9317_v2 = vld [vmem:[%s12451_s5 + $0x1a8] sm:$0xff]   ;;  %v9318_v63 = vld [vmem:[%s12451_s5 + $0x1e0] sm:$0xff]  }
 0x38e   :  { %8904 = vmatpush3.bf16.msra.mxu0 %v9287_v54  ;;  %8926 = vmatpush3.bf16.msra.mxu1 %v9288_v14  ;;  %v4645_v45 = vpop.f32.mrf.mxu0  ;;  %v9314_v54 = vld [vmem:[%s12451_s5 + $0x1f0] sm:$0xff]   ;;  %v7511_v14 = vpack.c.bf16 %v4839_v36, %v4839_v36  ;;  %v9319_v10 = vld [vmem:[%s12451_s5 + $0x1a0] sm:$0xff]   ;;  %v9320_v58 = vld [vmem:[%s12451_s5 + $0x1d8] sm:$0xff]  }
 0x38f   :  { %v4804_v8 = vpop.f32.mrf.mxu1  ;;  %v12033_v50 = vadd.f32 %v11966_v26, %v4816_v42  ;;  %v4663_v40 = vadd.f32 %v4645_v45, %v11957_v41  ;;  %8905 = vmatprep.subr.bf16.mxu0 %v12510_v22  ;;  %8927 = vmatprep.subr.bf16.mxu1 %v12510_v22  ;;  %v9292_v41 = vld [vmem:[%s12451_s5 + $0xc8] sm:$0xff]   ;;  %v7512_v56 = vpack.c.bf16 %v4840_v46, %v4840_v46  ;;  %v9321_v42 = vld [vmem:[%s12451_s5 + $0x198] sm:$0xff]   ;;  %v9323_v45 = vld [vmem:[%s12451_s5 + $0x190] sm:$0xff]  }
 0x390   :  { %v8816_v48 = vpop.f32.mrf.mxu0 }
 0x391   :  { %v8855_v44 = vpop.f32.mrf.mxu1  ;;  %v4817_v18 = vadd.f32 %v4799_v62, %v4663_v40  ;;  %v9313_v62 = vld [vmem:[%s12451_s5 + $0x1b8] sm:$0xff]   ;;  %v9327_v40 = vld [vmem:[%s12451_s5 + $0x180] sm:$0xff]   ;;  %v4841_v48 = vmax.f32 %v12033_v50, 0.0  ;;  %v9330_v50 = vld [vmem:[%s12451_s5 + $0x228] sm:$0xff]  }
 0x392   :  { %8906 = vmatpush3.bf16.msra.mxu0 %v9289_v25  ;;  %8928 = vmatpush3.bf16.msra.mxu1 %v9290_v17  ;;  %v4650_v1 = vpop.f32.mrf.mxu0  ;;  %v9325_v25 = vld [vmem:[%s12451_s5 + $0x188] sm:$0xff]   ;;  %v9326_v17 = vld [vmem:[%s12451_s5 + $0x1c0] sm:$0xff]  }
 0x393   :  { %v4807_v4 = vpop.f32.mrf.mxu1  ;;  %v12047_v13 = vadd.f32 %v11966_v26, %v4817_v18  ;;  %v4664_v11 = vadd.f32 %v4650_v1, %v11960_v59  ;;  %8907 = vmatprep.subr.bf16.mxu0 %v12510_v22  ;;  %8929 = vmatprep.subr.bf16.mxu1 %v12510_v22  ;;  %v4828_v59 = vadd.f32 %v11966_v26, %v4812_v6  ;;  %v9328_v18 = vld [vmem:[%s12451_s5 + $0x238] sm:$0xff]   ;;  %v9329_v1 = vld [vmem:[%s12451_s5 + $0x230] sm:$0xff]  }
 0x394   :  { %v8819_v5 = vpop.f32.mrf.mxu0  ;;  %v7513_v6 = vpack.c.bf16 %v4841_v48, %v4841_v48  ;;  %v9331_v4 = vld [vmem:[%s12451_s5 + $0x220] sm:$0xff]  }
 0x395   :  { %v8856_v61 = vpop.f32.mrf.mxu1  ;;  %v4818_v19 = vadd.f32 %v4804_v8, %v4664_v11  ;;  %v4837_v49 = vmax.f32 %v4828_v59, 0.0  ;;  %v9324_v8 = vld [vmem:[%s12451_s5 + $0x1c8] sm:$0xff]   ;;  %v4842_v7 = vmax.f32 %v12047_v13, 0.0  ;;  %v9335_v13 = vld [vmem:[%s12451_s5 + $0x200] sm:$0xff]  }
 0x396   :  { %8908 = vmatpush3.bf16.msra.mxu0 %v9291_v30  ;;  %8930 = vmatpush3.bf16.msra.mxu1 %v9292_v41  ;;  %v4653_v34 = vpop.f32.mrf.mxu0  ;;  %v9332_v30 = vld [vmem:[%s12451_s5 + $0x218] sm:$0xff]   ;;  %v9333_v41 = vld [vmem:[%s12451_s5 + $0x210] sm:$0xff]  }
 0x397   :  { %v12060_v0 = vadd.f32 %v11966_v26, %v4818_v19  ;;  %8909 = vmatprep.subr.bf16.mxu0 %v12510_v22  ;;  %8931 = vmatprep.subr.bf16.mxu1 %v12510_v22  ;;  %v9297_v26 = vld [vmem:[%s12451_s5 + $0x138] sm:$0xff]   ;;  %v7509_v53 = vpack.c.bf16 %v4837_v49, %v4837_v49  ;;  %v7514_v44 = vpack.c.bf16 %v4842_v7, %v4842_v7  ;;  %v9336_v61 = vld [vmem:[%s12453_s7 + $0xe0] ss:$16 sps:$4 sm:$0xff]   ;;  %v9338_v19 = vld [vmem:[%s12453_s7 + $0xe4] ss:$16 sps:$4 sm:$0xff]  }
 0x398   :  { %v8820_v33 = vpop.f32.mrf.mxu0  ;;  %v9339_v34 = vld [vmem:[%s12453_s7 + $0xe8] ss:$16 sps:$4 sm:$0xff]   ;;  %v9356_v49 = vld [vmem:[%s12453_s7 + $0x84] ss:$16 sps:$4 sm:$0xff]  }
 0x399   :  { %v4843_v11 = vmax.f32 %v12060_v0, 0.0  ;;  %v9345_v59 = vld [vmem:[%s12453_s7 + $0xc8] ss:$16 sps:$4 sm:$0xff]   ;;  %v9350_v0 = vld [vmem:[%s12453_s7 + $0xa4] ss:$16 sps:$4 sm:$0xff]  }
 0x39a   :  { %8910 = vmatpush3.bf16.msra.mxu0 %v9293_v39  ;;  %8932 = vmatpush3.bf16.msra.mxu1 %v9294_v28  ;;  %v9341_v39 = vld [vmem:[%s12453_s7 + $0xec] ss:$16 sps:$4 sm:$0xff]   ;;  %v9344_v28 = vld [vmem:[%s12453_s7 + $0xc4] ss:$16 sps:$4 sm:$0xff]   ;;  %v9348_v33 = vld [vmem:[%s12453_s7 + $0xa0] ss:$16 sps:$4 sm:$0xff]  }
 0x39b   :  { %8911 = vmatprep.subr.bf16.mxu0 %v12510_v22  ;;  %8957 = vmatprep.subr.bf16.mxu1 %v12510_v22  ;;  %v7515_v5 = vpack.c.bf16 %v4843_v11, %v4843_v11 }
 0x39d   :  { %8934 = vmatmul.mubr.bf16.vlgmr.msra.gmra.mxu1 %v7510_v31  ;;  %v9359_v31 = vld [vmem:[%s12453_s7 + $0x8c] ss:$16 sps:$4 sm:$0xff]  }
 0x39e   :  { %8912 = vmatpush3.bf16.msra.mxu0 %v9295_v32  ;;  %8958 = vmatpush3.bf16.msra.mxu1 %v9296_v23  ;;  %v9353_v32 = vld [vmem:[%s12453_s7 + $0xac] ss:$16 sps:$4 sm:$0xff]   ;;  %v9351_v23 = vld [vmem:[%s12453_s7 + $0xa8] ss:$16 sps:$4 sm:$0xff]  }
 0x39f   :  { %8937 = vmatprep.subr.bf16.mxu0 %v12510_v22  ;;  %8959 = vmatprep.subr.bf16.mxu1 %v12510_v22 }
 0x3a0   :  { %8973 = vmatprep.mubr.msk.bf16.mxu1 %vm9419_vm1, %v12510_v22 }
 0x3a1   :  { %8914 = vmatmul.mubr.bf16.vlgmr.msra.gmra.mxu0 %v7509_v53  ;;  %v9362_v53 = vld [vmem:[%s12453_s7 + $0x64] ss:$16 sps:$4 sm:$0xff]  }
 0x3a2   :  { %8938 = vmatpush3.bf16.msra.mxu0 %v9297_v26  ;;  %8960 = vmatpush3.bf16.msra.mxu1 %v9298_v27  ;;  %v9354_v26 = vld [vmem:[%s12453_s7 + $0x80] ss:$16 sps:$4 sm:$0xff]   ;;  %v9357_v27 = vld [vmem:[%s12453_s7 + $0x88] ss:$16 sps:$4 sm:$0xff]  }
 0x3a3   :  { %8939 = vmatprep.subr.bf16.mxu0 %v12510_v22  ;;  %8961 = vmatprep.subr.bf16.mxu1 %v12510_v22 }
 0x3a4   :  { %8953 = vmatprep.mubr.msk.bf16.mxu0 %vm9419_vm1, %v12510_v22 }
 0x3a6   :  { %8940 = vmatpush3.bf16.msra.mxu0 %v9299_v20  ;;  %8962 = vmatpush3.bf16.msra.mxu1 %v9300_v37  ;;  %v9360_v20 = vld [vmem:[%s12453_s7 + $0x60] ss:$16 sps:$4 sm:$0xff]   ;;  %v9365_v37 = vld [vmem:[%s12453_s7 + $0x6c] ss:$16 sps:$4 sm:$0xff]  }
 0x3a7   :  { %8941 = vmatprep.subr.bf16.mxu0 %v12510_v22  ;;  %8963 = vmatprep.subr.bf16.mxu1 %v12510_v22 }
 0x3aa   :  { %8942 = vmatpush3.bf16.msra.mxu0 %v9301_v38  ;;  %8964 = vmatpush3.bf16.msra.mxu1 %v9302_v9  ;;  %v9363_v38 = vld [vmem:[%s12453_s7 + $0x68] ss:$16 sps:$4 sm:$0xff]   ;;  %v9368_v9 = vld [vmem:[%s12453_s7 + $0x44] ss:$16 sps:$4 sm:$0xff]  }
 0x3ab   :  { %8943 = vmatprep.subr.bf16.mxu0 %v12510_v22  ;;  %8965 = vmatprep.subr.bf16.mxu1 %v12510_v22 }
 0x3ae   :  { %8944 = vmatpush3.bf16.msra.mxu0 %v9303_v29  ;;  %8966 = vmatpush3.bf16.msra.mxu1 %v9304_v55  ;;  %v9371_v29 = vld [vmem:[%s12453_s7 + $0x4c] ss:$16 sps:$4 sm:$0xff]   ;;  %v9366_v55 = vld [vmem:[%s12453_s7 + $0x40] ss:$16 sps:$4 sm:$0xff]  }
 0x3af   :  { %8945 = vmatprep.subr.bf16.mxu0 %v12510_v22  ;;  %8967 = vmatprep.subr.bf16.mxu1 %v12510_v22 }
 0x3b2   :  { %8946 = vmatpush3.bf16.msra.mxu0 %v9305_v16  ;;  %8968 = vmatpush3.bf16.msra.mxu1 %v9306_v12  ;;  %v9369_v12 = vld [vmem:[%s12453_s7 + $0x48] ss:$16 sps:$4 sm:$0xff]  }
 0x3b3   :  { %8947 = vmatprep.subr.bf16.mxu0 %v12510_v22  ;;  %8969 = vmatprep.subr.bf16.mxu1 %v12510_v22 }
 0x3b6   :  { %8948 = vmatpush3.bf16.msra.mxu0 %v9307_v43  ;;  %8970 = vmatpush3.bf16.msra.mxu1 %v9308_v51  ;;  %v9374_v51 = vld [vmem:[%s12453_s7 + $0x24] ss:$16 sps:$4 sm:$0xff]  }
 0x3b7   :  { %8949 = vmatprep.subr.bf16.mxu0 %v12510_v22  ;;  %8971 = vmatprep.subr.bf16.mxu1 %v12510_v22 }
 0x3ba   :  { %8950 = vmatpush3.bf16.msra.mxu0 %v9309_v47  ;;  %8972 = vmatpush3.bf16.msra.mxu1 %v9310_v15  ;;  %v9377_v47 = vld [vmem:[%s12453_s7 + $0x2c] ss:$16 sps:$4 sm:$0xff]  }
 0x3bb   :  { %8951 = vmatprep.subr.bf16.mxu0 %v12510_v22  ;;  %8997 = vmatprep.subr.bf16.mxu1 %v12510_v22 }
 0x3bd   :  { %8974 = vmatmul.mubr.bf16.vlgmr.msra.gmra.mxu1 %v7512_v56 }
 0x3be   :  { %8952 = vmatpush3.bf16.msra.mxu0 %v9311_v57  ;;  %8998 = vmatpush3.bf16.msra.mxu1 %v9312_v60  ;;  %v9372_v57 = vld [vmem:[%s12453_s7 + $0x20] ss:$16 sps:$4 sm:$0xff]   ;;  %v9375_v60 = vld [vmem:[%s12453_s7 + $0x28] ss:$16 sps:$4 sm:$0xff]  }
 0x3bf   :  { %8977 = vmatprep.subr.bf16.mxu0 %v12510_v22  ;;  %8999 = vmatprep.subr.bf16.mxu1 %v12510_v22 }
 0x3c0   :  { %9013 = vmatprep.mubr.msk.bf16.mxu1 %vm9419_vm1, %v12510_v22 }
 0x3c1   :  { %8954 = vmatmul.mubr.bf16.vlgmr.msra.gmra.mxu0 %v7511_v14  ;;  %v9383_v14 = vld [vmem:[%s12453_s7 + $0xc] ss:$16 sps:$4 sm:$0xff]  }
 0x3c2   :  { %8978 = vmatpush3.bf16.msra.mxu0 %v9313_v62  ;;  %9000 = vmatpush3.bf16.msra.mxu1 %v9314_v54  ;;  %v9380_v54 = vld [vmem:[%s12453_s7 + $0x4] ss:$16 sps:$4 sm:$0xff]  }
 0x3c3   :  { %8979 = vmatprep.subr.bf16.mxu0 %v12510_v22  ;;  %9001 = vmatprep.subr.bf16.mxu1 %v12510_v22 }
 0x3c4   :  { %8993 = vmatprep.mubr.msk.bf16.mxu0 %vm9419_vm1, %v12510_v22 }
 0x3c6   :  { %8980 = vmatpush3.bf16.msra.mxu0 %v9315_v21  ;;  %9002 = vmatpush3.bf16.msra.mxu1 %v9316_v35  ;;  %v9378_v35 = vld [vmem:[%s12453_s7] ss:$16 sps:$4 sm:$0xff]  }
 0x3c7   :  { %8981 = vmatprep.subr.bf16.mxu0 %v12510_v22  ;;  %9003 = vmatprep.subr.bf16.mxu1 %v12510_v22 }
 0x3ca   :  { %8982 = vmatpush3.bf16.msra.mxu0 %v9317_v2  ;;  %9004 = vmatpush3.bf16.msra.mxu1 %v9318_v63  ;;  %v9381_v2 = vld [vmem:[%s12453_s7 + $0x8] ss:$16 sps:$4 sm:$0xff]  }
 0x3cb   :  { %8983 = vmatprep.subr.bf16.mxu0 %v12510_v22  ;;  %9005 = vmatprep.subr.bf16.mxu1 %v12510_v22 }
 0x3ce   :  { %8984 = vmatpush3.bf16.msra.mxu0 %v9319_v10  ;;  %9006 = vmatpush3.bf16.msra.mxu1 %v9320_v58  ;;  %v9420_v10 = vmov 0   ;;  %v9384_v58 = vld [vmem:[%s12454_s9 + $0x78] sm:$0xff]  }
 0x3cf   :  { %8985 = vmatprep.subr.bf16.mxu0 %v12510_v22  ;;  %9007 = vmatprep.subr.bf16.mxu1 %v12510_v22 }
 0x3d2   :  { %8986 = vmatpush3.bf16.msra.mxu0 %v9321_v42  ;;  %9008 = vmatpush3.bf16.msra.mxu1 %v9322_v24  ;;  %v9385_v42 = vld [vmem:[%s12454_s9 + $0xf8] sm:$0xff]  }
 0x3d3   :  { %8987 = vmatprep.subr.bf16.mxu0 %v12510_v22  ;;  %9009 = vmatprep.subr.bf16.mxu1 %v12510_v22 }
 0x3d6   :  { %8988 = vmatpush3.bf16.msra.mxu0 %v9323_v45  ;;  %9010 = vmatpush3.bf16.msra.mxu1 %v9324_v8 }
 0x3d7   :  { %8989 = vmatprep.subr.bf16.mxu0 %v12510_v22  ;;  %9011 = vmatprep.subr.bf16.mxu1 %v12510_v22 }
 0x3da   :  { %8990 = vmatpush3.bf16.msra.mxu0 %v9325_v25  ;;  %9012 = vmatpush3.bf16.msra.mxu1 %v9326_v17 }
 0x3db   :  { %8991 = vmatprep.subr.bf16.mxu0 %v12510_v22  ;;  %6056 = vmatprep.subr.bf16.mxu1 %v9338_v19 }
 0x3dd   :  { %9014 = vmatmul.mubr.bf16.vlgmr.msra.gmra.mxu1 %v7514_v44 }
 0x3de   :  { %8992 = vmatpush3.bf16.msra.mxu0 %v9327_v40  ;;  %6057 = vmatpush1.bf16.msra.mxu1 %v9336_v61 }
 0x3df   :  { %9017 = vmatprep.subr.bf16.mxu0 %v12510_v22  ;;  %6058 = vmatprep.subr.bf16.mxu1 %v9344_v28 }
 0x3e0   :  { %6088 = vmatprep.mubr.bf16.mxu1 %v9420_v10 }
 0x3e1   :  { %8994 = vmatmul.mubr.bf16.vlgmr.msra.gmra.mxu0 %v7513_v6 }
 0x3e2   :  { %9018 = vmatpush3.bf16.msra.mxu0 %v9328_v18  ;;  %9033 = vmatprep.mubr.msk.bf16.mxu0 %vm9419_vm1, %v12510_v22 }
 0x3e3   :  { %9019 = vmatprep.subr.bf16.mxu0 %v12510_v22 }
 0x3e6   :  { %9020 = vmatpush3.bf16.msra.mxu0 %v9329_v1 }
 0x3e7   :  { %9021 = vmatprep.subr.bf16.mxu0 %v12510_v22 }
 0x3ea   :  { %9022 = vmatpush3.bf16.msra.mxu0 %v9330_v50 }
 0x3eb   :  { %9023 = vmatprep.subr.bf16.mxu0 %v12510_v22 }
 0x3ee   :  { %9024 = vmatpush3.bf16.msra.mxu0 %v9331_v4 }
 0x3ef   :  { %9025 = vmatprep.subr.bf16.mxu0 %v12510_v22 }
 0x3f2   :  { %9026 = vmatpush3.bf16.msra.mxu0 %v9332_v30 }
 0x3f3   :  { %9027 = vmatprep.subr.bf16.mxu0 %v12510_v22 }
 0x3f6   :  { %9028 = vmatpush3.bf16.msra.mxu0 %v9333_v41 }
 0x3f7   :  { %9029 = vmatprep.subr.bf16.mxu0 %v12510_v22 }
 0x3fa   :  { %9030 = vmatpush3.bf16.msra.mxu0 %v9334_v52 }
 0x3fb   :  { %9031 = vmatprep.subr.bf16.mxu0 %v12510_v22  ;;  %v9342_v22 = vld [vmem:[%s12453_s7 + $0xc0] ss:$16 sps:$4 sm:$0xff]  }
 0x3fc   :  { %6059 = vmatpush1.bf16.msra.mxu1 %v9342_v22 }
 0x3fd   :  { %6060 = vmatprep.subr.bf16.mxu1 %v9350_v0 }
 0x3fe   :  { %9032 = vmatpush3.bf16.msra.mxu0 %v9335_v13 }
 0x3ff   :  { %6097 = vmatprep.subr.bf16.mxu0 %v9341_v39 }
 0x400   :  { %6061 = vmatpush1.bf16.msra.mxu1 %v9348_v33 }
 0x401   :  { %9034 = vmatmul.mubr.bf16.vlgmr.msra.gmra.mxu0 %v7515_v5  ;;  %6062 = vmatprep.subr.bf16.mxu1 %v9356_v49 }
 0x402   :  { %6098 = vmatpush1.bf16.msra.mxu0 %v9339_v34  ;;  %6129 = vmatprep.mubr.bf16.mxu0 %v9420_v10  ;;  %v9408_v10 = vld [vmem:[%s12454_s9 + $0x48] sm:$0xff]  }
 0x403   :  { %6099 = vmatprep.subr.bf16.mxu0 %v9347_v3 }
 0x404   :  { %6063 = vmatpush1.bf16.msra.mxu1 %v9354_v26 }
 0x405   :  { %6064 = vmatprep.subr.bf16.mxu1 %v9362_v53 }
 0x406   :  { %6100 = vmatpush1.bf16.msra.mxu0 %v9345_v59 }
 0x407   :  { %6101 = vmatprep.subr.bf16.mxu0 %v9353_v32 }
 0x408   :  { %6065 = vmatpush1.bf16.msra.mxu1 %v9360_v20 }
 0x409   :  { %6066 = vmatprep.subr.bf16.mxu1 %v9368_v9 }
 0x40a   :  { %6102 = vmatpush1.bf16.msra.mxu0 %v9351_v23  ;;  %v7377_v23 = vld [vmem:[%s12455_s6] ss:$0 sm:$0xff] }
 0x40b   :  { %6103 = vmatprep.subr.bf16.mxu0 %v9359_v31 }
 0x40c   :  { %6067 = vmatpush1.bf16.msra.mxu1 %v9366_v55  ;;  %v9389_v55 = vld [vmem:[%s12454_s9 + $0xf0] sm:$0xff]  }
 0x40d   :  { %6068 = vmatprep.subr.bf16.mxu1 %v9374_v51  ;;  %v9393_v51 = vld [vmem:[%s12454_s9 + $0xe8] sm:$0xff]  }
 0x40e   :  { %6104 = vmatpush1.bf16.msra.mxu0 %v9357_v27 }
 0x40f   :  { %6105 = vmatprep.subr.bf16.mxu0 %v9365_v37  ;;  %v9386_v37 = vld [vmem:[%s12454_s9 + $0x38] sm:$0xff]  }
 0x410   :  { %6069 = vmatpush1.bf16.msra.mxu1 %v9372_v57  ;;  %v9397_v57 = vld [vmem:[%s12454_s9 + $0xe0] sm:$0xff]  }
 0x411   :  { %6070 = vmatprep.subr.bf16.mxu1 %v9380_v54  ;;  %v9402_v54 = vld [vmem:[%s12454_s9 + $0x18] sm:$0xff]  }
 0x412   :  { %6106 = vmatpush1.bf16.msra.mxu0 %v9363_v38  ;;  %v9387_v38 = vld [vmem:[%s12454_s9 + $0xb8] sm:$0xff]  }
 0x413   :  { %6107 = vmatprep.subr.bf16.mxu0 %v9371_v29  ;;  %v9388_v29 = vld [vmem:[%s12454_s9 + $0x70] sm:$0xff]  }
 0x414   :  { %6071 = vmatpush1.bf16.msra.mxu1 %v9378_v35  ;;  %v9405_v35 = vld [vmem:[%s12454_s9 + $0xd0] sm:$0xff]  }
 0x415   :  { %7949 = vmatprep.subr.bf16.mxu1 %v9384_v58  ;;  %v9409_v58 = vld [vmem:[%s12454_s9 + $0xc8] sm:$0xff]  }
 0x416   :  { %6108 = vmatpush1.bf16.msra.mxu0 %v9369_v12  ;;  %v9391_v12 = vld [vmem:[%s12454_s9 + $0xb0] sm:$0xff]  }
 0x417   :  { %6109 = vmatprep.subr.bf16.mxu0 %v9377_v47  ;;  %v9394_v47 = vld [vmem:[%s12454_s9 + $0x28] sm:$0xff]  }
 0x41a   :  { %6110 = vmatpush1.bf16.msra.mxu0 %v9375_v60  ;;  %v9398_v60 = vld [vmem:[%s12454_s9 + $0x20] sm:$0xff]  }
 0x41b   :  { %6111 = vmatprep.subr.bf16.mxu0 %v9383_v14  ;;  %v9403_v14 = vld [vmem:[%s12454_s9 + $0x98] sm:$0xff]  }
 0x41e   :  { %6112 = vmatpush1.bf16.msra.mxu0 %v9381_v2  ;;  %v9406_v2 = vld [vmem:[%s12454_s9 + $0x10] sm:$0xff]  }
 0x41f   :  { %7971 = vmatprep.subr.bf16.mxu0 %v9385_v42  ;;  %v9410_v42 = vld [vmem:[%s12454_s9 + $0x8] sm:$0xff]  }
 0x43d   :  { %v5084_v16 = vpop.f32.mrf.mxu1 }
 0x43f   :  { %v8895_v43 = vpop.f32.mrf.mxu1 }
 0x440   :  { %v9392_v43 = vld [vmem:[%s12454_s9 + $0x68] sm:$0xff]  }
 0x441   :  { %v4996_v15 = vpop.f32.mrf.mxu0  ;;  %v5087_v46 = vpop.f32.mrf.mxu1 }
 0x442   :  { %v5085_v36 = vadd.f32 %v5084_v16, %v4996_v15  ;;  %v9390_v16 = vld [vmem:[%s12454_s9 + $0x30] sm:$0xff]   ;;  %v9395_v15 = vld [vmem:[%s12454_s9 + $0xa8] sm:$0xff]   ;;  %v9396_v46 = vld [vmem:[%s12454_s9 + $0x60] sm:$0xff]  }
 0x443   :  { %v8875_v56 = vpop.f32.mrf.mxu0  ;;  %v8896_v62 = vpop.f32.mrf.mxu1 }
 0x444   :  { %v9400_v56 = vld [vmem:[%s12454_s9 + $0x58] sm:$0xff]  }
 0x445   :  { %v4999_v21 = vpop.f32.mrf.mxu0  ;;  %v9401_v62 = vld [vmem:[%s12454_s9 + $0xd8] sm:$0xff]  }
 0x446   :  { %v9404_v21 = vld [vmem:[%s12454_s9 + $0x50] sm:$0xff]  }
 0x447   :  { %v8876_v63 = vpop.f32.mrf.mxu0 }
 0x448   :  { %v9407_v63 = vld [vmem:[%s12454_s9 + $0x90] sm:$0xff]  }
 0x45d   :  { %v5295_v24 = vpop.f32.mrf.mxu1 }
 0x45f   :  { %v8935_v45 = vpop.f32.mrf.mxu1 }
 0x460   :  { %v9412_v45 = vld [vmem:[%s12454_s9 + $0x40] sm:$0xff]  }
 0x461   :  { %v5189_v8 = vpop.f32.mrf.mxu0  ;;  %v5298_v25 = vpop.f32.mrf.mxu1 }
 0x462   :  { %v5195_v17 = vadd.f32 %v5189_v8, %v5085_v36  ;;  %v9399_v36 = vld [vmem:[%s12454_s9 + $0xa0] sm:$0xff]  }
 0x463   :  { %v8915_v7 = vpop.f32.mrf.mxu0  ;;  %v8936_v40 = vpop.f32.mrf.mxu1  ;;  %v9413_v8 = vld [vmem:[%s12454_s9 + $0xc0] sm:$0xff]  }
 0x464   :  { %v5301_v48 = vadd.f32 %v5295_v24, %v5195_v17  ;;  %v9411_v24 = vld [vmem:[%s12454_s9 + $0x88] sm:$0xff]   ;;  %v9414_v25 = vld [vmem:[%s12454_s9] sm:$0xff]   ;;  %v5876_v7 = vlaneseq }
 0x465   :  { %v5192_v44 = vpop.f32.mrf.mxu0  ;;  %v9415_v17 = vld [vmem:[%s12454_s9 + $0x80] sm:$0xff]  }
 0x466   :  { %v5877_v40 = vshrl.u32 %v5876_v7, 7 }
 0x467   :  { %v8916_v18 = vpop.f32.mrf.mxu0 }
 0x468   :  { %v5886_v44 = vsub.s32 2, %v5877_v40  ;;  %v5874_v18 = vld [vmem:[%s12456_s8] sm:$0xf] }
 0x47d   :  { %v5507_v6 = vpop.f32.mrf.mxu1 }
 0x47f   :  { %v8975_v1 = vpop.f32.mrf.mxu1 }
 0x480   :  { %v5890_v1 = vsub.s32 3, %v5877_v40 }
 0x481   :  { %v5401_v50 = vpop.f32.mrf.mxu0  ;;  %v5510_v4 = vpop.f32.mrf.mxu1 }
 0x482   :  { %v5407_v59 = vadd.f32 %v5401_v50, %v5301_v48  ;;  %v5878_v48 = vsub.s32 0, %v5877_v40  ;;  %v5887_v4 = vrot.slane %v5874_v18, %v5886_v44 }
 0x483   :  { %v8955_v30 = vpop.f32.mrf.mxu0  ;;  %v8976_v41 = vpop.f32.mrf.mxu1 }
 0x484   :  { %v5513_v3 = vadd.f32 %v5507_v6, %v5407_v59  ;;  %v5882_v6 = vsub.s32 1, %v5877_v40  ;;  %v5879_v50 = vrot.slane %v5874_v18, %v5878_v48  ;;  %v5891_v41 = vrot.slane %v5874_v18, %v5890_v1 }
 0x485   :  { %v5404_v52 = vpop.f32.mrf.mxu0 }
 0x486   :  { %v5883_v30 = vrot.slane %v5874_v18, %v5882_v6 }
 0x487   :  { %v8956_v13 = vpop.f32.mrf.mxu0 }
 0x49d   :  { %v5719_v11 = vpop.f32.mrf.mxu1 }
 0x49f   :  { %v9015_v5 = vpop.f32.mrf.mxu1 }
 0x4a1   :  { %v5613_v61 = vpop.f32.mrf.mxu0  ;;  %v5722_v19 = vpop.f32.mrf.mxu1 }
 0x4a2   :  { %v5619_v0 = vadd.f32 %v5613_v61, %v5513_v3 }
 0x4a3   :  { %v8995_v34 = vpop.f32.mrf.mxu0  ;;  %v9016_v39 = vpop.f32.mrf.mxu1 }
 0x4a4   :  { %v5725_v33 = vadd.f32 %v5719_v11, %v5619_v0 }
 0x4a5   :  { %v5616_v22 = vpop.f32.mrf.mxu0 }
 0x4a7   :  { %v8996_v28 = vpop.f32.mrf.mxu0 }
 0x4c1   :  { %v5825_v32 = vpop.f32.mrf.mxu0 }
 0x4c2   :  { %v5831_v49 = vadd.f32 %v5825_v32, %v5725_v33 }
 0x4c3   :  { %v9035_v31 = vpop.f32.mrf.mxu0 }
 0x4c4   :  { %v5839_v26 = vadd.f32 %v7377_v23, %v5831_v49 }
 0x4c5   :  { %v5828_v27 = vpop.f32.mrf.mxu0 }
 0x4c6   :  { %v5840_v53 = vmax.f32 %v5839_v26, 0.0 }
 0x4c7   :  { %v9036_v20 = vpop.f32.mrf.mxu0 }
 0x4c8   :  { %v5841_v9 = vpack.c.bf16 %v5840_v53, %v5840_v53 }
 0x4ca   :  { %6089 = vmatmul.mubr.bf16.vlgmr.msra.gmra.mxu1 %v5841_v9  ;;  %6130 = vmatmul.mubr.bf16.vlgmr.msra.gmra.mxu0 %v5841_v9 }
 0x4cb   :  { %7950 = vmatpush3.bf16.msra.mxu1 %v9386_v37  ;;  %7972 = vmatpush3.bf16.msra.mxu0 %v9387_v38  ;;  %v7410_v37 = vld [vmem:[%s12457_s10] ss:$0 sm:$0xff] }
 0x4cc   :  { %7951 = vmatprep.subr.bf16.mxu1 %v9388_v29  ;;  %7973 = vmatprep.subr.bf16.mxu0 %v9389_v55 }
 0x4cf   :  { %7952 = vmatpush3.bf16.msra.mxu1 %v9390_v16  ;;  %7974 = vmatpush3.bf16.msra.mxu0 %v9391_v12 }
 0x4d0   :  { %7953 = vmatprep.subr.bf16.mxu1 %v9392_v43  ;;  %7975 = vmatprep.subr.bf16.mxu0 %v9393_v51 }
 0x4d3   :  { %7954 = vmatpush3.bf16.msra.mxu1 %v9394_v47  ;;  %7976 = vmatpush3.bf16.msra.mxu0 %v9395_v15 }
 0x4d4   :  { %7955 = vmatprep.subr.bf16.mxu1 %v9396_v46  ;;  %7977 = vmatprep.subr.bf16.mxu0 %v9397_v57 }
 0x4d7   :  { %7956 = vmatpush3.bf16.msra.mxu1 %v9398_v60  ;;  %7978 = vmatpush3.bf16.msra.mxu0 %v9399_v36 }
 0x4d8   :  { %7957 = vmatprep.subr.bf16.mxu1 %v9400_v56  ;;  %7979 = vmatprep.subr.bf16.mxu0 %v9401_v62 }
 0x4db   :  { %7958 = vmatpush3.bf16.msra.mxu1 %v9402_v54  ;;  %7980 = vmatpush3.bf16.msra.mxu0 %v9403_v14 }
 0x4dc   :  { %7959 = vmatprep.subr.bf16.mxu1 %v9404_v21  ;;  %7981 = vmatprep.subr.bf16.mxu0 %v9405_v35 }
 0x4df   :  { %7960 = vmatpush3.bf16.msra.mxu1 %v9406_v2  ;;  %7982 = vmatpush3.bf16.msra.mxu0 %v9407_v63 }
 0x4e0   :  { %7961 = vmatprep.subr.bf16.mxu1 %v9408_v10  ;;  %7983 = vmatprep.subr.bf16.mxu0 %v9409_v58 }
 0x4e3   :  { %7962 = vmatpush3.bf16.msra.mxu1 %v9410_v42  ;;  %7984 = vmatpush3.bf16.msra.mxu0 %v9411_v24 }
 0x4e4   :  { %7963 = vmatprep.subr.bf16.mxu1 %v9412_v45  ;;  %7985 = vmatprep.subr.bf16.mxu0 %v9413_v8 }
 0x4e7   :  { %7964 = vmatpush3.bf16.msra.mxu1 %v9414_v25  ;;  %7986 = vmatpush3.bf16.msra.mxu0 %v9415_v17 }
 0x58a   :  { %v6090_v52 = vpop.f32.mrf.mxu1  ;;  %v6131_v13 = vpop.f32.mrf.mxu0 }
 0x58b   :  { %v6091_v11 = vadd.f32 %v6090_v52, %v5879_v50  ;;  %v6132_v5 = vadd.f32 %v6131_v13, %v5887_v4 }
 0x58c   :  { %v6092_v61 = vpop.f32.mrf.mxu1  ;;  %v6133_v19 = vpop.f32.mrf.mxu0 }
 0x58d   :  { %v6093_v34 = vadd.f32 %v6092_v61, %v5883_v30  ;;  %v6134_v39 = vadd.f32 %v6133_v19, %v5891_v41  ;;  %v6138_v22 = vmax.f32 %v6091_v11, 0.0  ;;  %v6140_v28 = vmax.f32 %v6132_v5, 0.0 }
 0x58e   :  { %v6094_v59 = vpop.f32.mrf.mxu1  ;;  %v6135_v3 = vpop.f32.mrf.mxu0 }
 0x58f   :  { %v6139_v0 = vmax.f32 %v6093_v34, 0.0  ;;  %v6141_v33 = vmax.f32 %v6134_v39, 0.0  ;;  %v6142_v26 = vpack.c.bf16 %v6138_v22, %v6138_v22  ;;  %v6144_v27 = vpack.c.bf16 %v6140_v28, %v6140_v28 }
 0x590   :  { %v6095_v32 = vpop.f32.mrf.mxu1  ;;  %v6136_v23 = vpop.f32.mrf.mxu0 }
 0x591   :  { %v6143_v49 = vpack.c.bf16 %v6139_v0, %v6139_v0  ;;  %v6145_v31 = vpack.c.bf16 %v6141_v33, %v6141_v33 }
 0x593   :  { %6441 = vmatprep.mubr.bf16.mxu1 %v6143_v49  ;;  %6481 = vmatprep.mubr.bf16.mxu0 %v6145_v31 }
 0x594   :  { %6442 = vmatmul.mubr.bf16.vlgmr.msra.gmra.mxu1 %v6142_v26  ;;  %6482 = vmatmul.mubr.bf16.vlgmr.msra.gmra.mxu0 %v6144_v27 }
 0x654   :  { %v7965_v53 = vpop.f32.mrf.mxu1  ;;  %v7987_v20 = vpop.f32.mrf.mxu0 }
 0x656   :  { %v7966_v38 = vpop.f32.mrf.mxu1  ;;  %v7988_v9 = vpop.f32.mrf.mxu0 }
 0x657   :  { %v7967_v29 = vadd.f32 %v7966_v38, %v7965_v53  ;;  %v7989_v43 = vadd.f32 %v7988_v9, %v7987_v20 }
 0x658   :  { %v7968_v55 = vpop.f32.mrf.mxu1  ;;  %v7990_v16 = vpop.f32.mrf.mxu0 }
 0x659   :  { %v6444_v12 = vadd.f32 %v7967_v29, %v7410_v37 }
 0x65a   :  { %v7969_v51 = vpop.f32.mrf.mxu1  ;;  %v7991_v47 = vpop.f32.mrf.mxu0 }
 0x65b   :  { %v6484_v15 = vadd.f32 %v7989_v43, %v6444_v12 }
 0x65d   :  { %6489 = vst [vmem:[%s12458_s11] sm:$0xff] %v6484_v15 }

</bundles_post_ra>
